<compile_context>
chip_gen: v5e
topology: v5e:2x2
jax: 0.10.0
libtpu: 0.0.40
codegen_flags: <defaults>
</compile_context>

<pallas_src>
import jax
import jax.numpy as jnp
from jax import lax
from jax.experimental import pallas as pl
from jax.experimental.pallas import tpu as pltpu

_BN_EPS = 1e-5     # BatchNorm2d default


# --------------------------- VMEM-aware budgets -------------------------------

def _query_vmem_capacity():
    try:
        info = pltpu.get_tpu_info()
        for name in ("vmem_capacity_bytes", "vmem_size_bytes", "vmem_bytes"):
            v = getattr(info, name, None)
            if v:
                return int(v)
    except Exception:
        pass
    return 64 * 1024 * 1024        # conservative fallback (v7x physical VMEM)


_VMEM_CAP = _query_vmem_capacity()
_SMALL_VMEM = _VMEM_CAP <= (96 << 20)            # v7x-class parts (64 MiB)
_TILE_BUDGET = (16 << 20) if _SMALL_VMEM else (32 << 20)    # pipelined working set
_RESIDENT_CAP = (16 << 20) if _SMALL_VMEM else (56 << 20)   # VMEM-resident BN output


def _cparams(semantics, need_bytes):
    limit = max(32 << 20, int(need_bytes) + (8 << 20))
    limit = min(limit, _VMEM_CAP - (8 << 20))
    return pltpu.CompilerParams(dimension_semantics=semantics,
                                vmem_limit_bytes=limit)


def _tile_m(m, bytes_per_col):
    """(lane_tile, n_tiles) for streaming (C, m) operand sets.

    The tile is sized from the VMEM budget (not a fixed TM_MAX) so every grid
    step moves enough bytes to amortize the ~0.35us per-step pipeline
    overhead.  Whenever n_tiles > 1 the tile is a multiple of 128 lanes;
    ragged tails are Pallas partial edge blocks (no jnp.pad of the operands).
    """
    if m * bytes_per_col <= _TILE_BUDGET or m <= 128:
        return m, 1
    tm = max(128, (_TILE_BUDGET // bytes_per_col) // 128 * 128)
    tm = min(tm, (m // 128) * 128)
    return tm, pl.cdiv(m, tm)


# ------------------------------ in-kernel math --------------------------------

def _gelu_exact(x):
    """PyTorch nn.GELU() (exact, erf-based).

    erf via the A&S 7.1.26 polynomial (~1.5e-7 abs err); the 1/(1+p|z|)
    divide runs on the EUP (approx reciprocal, otherwise-idle slot) and the
    sign handling is folded into one select.
    """
    a1, a2, a3, a4, a5 = (0.254829592, -0.284496736, 1.421413741,
                          -1.453152027, 1.061405429)
    z = x * 0.7071067811865476
    az = jnp.abs(z)
    t = pl.reciprocal(1.0 + 0.3275911 * az, approx=True)
    poly = ((((a5 * t + a4) * t + a3) * t + a2) * t + a1) * t
    q = poly * jnp.exp(-az * az)               # q = 1 - erf(|z|)
    return 0.5 * x * jnp.where(z >= 0.0, 2.0 - q, q)


def _conv1x1(w, x):
    """(Cout, Cin) @ (Cin, TM) -> (Cout, TM).

    For the tiny channel counts of this block (Cin <= 16) a K<=16 matmul is
    <1% MXU occupancy and pays MXU push/pop latency, so the contraction is an
    unrolled VPU broadcast-FMA over Cin (lane-dense, full-vreg work).  Larger
    Cin falls back to the MXU.
    """
    cout, cin = w.shape
    if cin <= 32:
        acc = w[:, 0:1] * x[0:1, :]
        for ci in range(1, cin):
            acc = acc + w[:, ci:ci + 1] * x[ci:ci + 1, :]
        return acc
    return jnp.dot(w, x, preferred_element_type=jnp.float32)


# ------------------------------ Pallas kernels --------------------------------

def _conv_gelu_kernel(x_ref, w_ref, o_ref):
    o_ref[...] = _gelu_exact(_conv1x1(w_ref[...], x_ref[...]))


def _add3_conv_kernel(a_ref, b_ref, c_ref, w_ref, o_ref):
    o_ref[...] = _conv1x1(w_ref[...], a_ref[...] + b_ref[...] + c_ref[...])


# ------------------------------ kernel wrappers --------------------------------

def conv1x1_gelu(x_cm, w):
    """gelu_exact(w @ x);  x_cm: (Cin, M) channels-major, w: (Cout, Cin)."""
    cin, m = x_cm.shape
    cout = w.shape[0]
    bpc = 4 * (2 * cin + 2 * cout)           # double-buffered in + out bytes/col
    tm, nm = _tile_m(m, bpc)
    return pl.pallas_call(
        _conv_gelu_kernel,
        out_shape=jax.ShapeDtypeStruct((cout, m), jnp.float32),
        grid_spec=pltpu.PrefetchScalarGridSpec(
            num_scalar_prefetch=0, grid=(nm,),
            in_specs=[pl.BlockSpec((cin, tm), lambda j: (0, j)),
                      pl.BlockSpec((cout, cin), lambda j: (0, 0))],
            out_specs=pl.BlockSpec((cout, tm), lambda j: (0, j))),
        compiler_params=_cparams(("parallel",), bpc * tm + 4 * cout * cin),
    )(x_cm, w)


def conv1x1_add3(a_cm, b_cm, c_cm, w):
    """w @ (a + b + c): 3-way elementwise add fused into the final 1x1 conv."""
    cin, m = a_cm.shape
    cout = w.shape[0]
    bpc = 4 * (6 * cin + 2 * cout)
    tm, nm = _tile_m(m, bpc)
    return pl.pallas_call(
        _add3_conv_kernel,
        out_shape=jax.ShapeDtypeStruct((cout, m), jnp.float32),
        grid_spec=pltpu.PrefetchScalarGridSpec(
            num_scalar_prefetch=0, grid=(nm,),
            in_specs=[pl.BlockSpec((cin, tm), lambda j: (0, j)),
                      pl.BlockSpec((cin, tm), lambda j: (0, j)),
                      pl.BlockSpec((cin, tm), lambda j: (0, j)),
                      pl.BlockSpec((cout, cin), lambda j: (0, 0))],
            out_specs=pl.BlockSpec((cout, tm), lambda j: (0, j))),
        compiler_params=_cparams(("parallel",), bpc * tm + 4 * cout * cin),
    )(a_cm, b_cm, c_cm, w)


# --------------------- fused spectral conv + BN(train) + ReLU ------------------

def _spectral_single_tile(re, im, w, g_re, b_re, g_im, b_im, eps):
    """Whole problem fits in VMEM: one grid step, exact two-pass BN variance."""
    c, m = re.shape
    inv_m = 1.0 / m

    def kernel(re_ref, im_ref, w_ref, gr_ref, br_ref, gi_ref, bi_ref,
               ore_ref, oim_ref):
        wv = w_ref[...]
        rev = re_ref[...]
        imv = im_ref[...]
        y_re = _conv1x1(wv[:c, :c], rev) + _conv1x1(wv[:c, c:], imv)
        y_im = _conv1x1(wv[c:, :c], rev) + _conv1x1(wv[c:, c:], imv)
        for y, g_ref, b_ref, o_ref in ((y_re, gr_ref, br_ref, ore_ref),
                                       (y_im, gi_ref, bi_ref, oim_ref)):
            mean = jnp.sum(y, axis=1, keepdims=True) * inv_m
            d = y - mean
            var = jnp.sum(d * d, axis=1, keepdims=True) * inv_m   # exact, centered
            scale = g_ref[...] * lax.rsqrt(var + eps)
            bias = b_ref[...] - mean * scale
            o_ref[...] = jnp.maximum(y * scale + bias, 0.0)

    small = pl.BlockSpec((c, 1), lambda j: (0, 0))
    full = pl.BlockSpec((c, m), lambda j: (0, 0))
    need = 4 * (12 * c * m + 4 * c * c + 8 * c)
    return pl.pallas_call(
        kernel,
        out_shape=(jax.ShapeDtypeStruct((c, m), jnp.float32),
                   jax.ShapeDtypeStruct((c, m), jnp.float32)),
        grid_spec=pltpu.PrefetchScalarGridSpec(
            num_scalar_prefetch=0, grid=(1,),
            in_specs=[full, full,
                      pl.BlockSpec((2 * c, 2 * c), lambda j: (0, 0)),
                      small, small, small, small],
            out_specs=(full, full)),
        compiler_params=_cparams(("arbitrary",), need),
    )(re, im, w, g_re, b_re, g_im, b_im)


def _spectral_resident(re, im, w, g_re, b_re, g_im, b_im, eps):
    """Streaming inputs, VMEM-resident outputs: conv tiles land in the resident
    output blocks while per-channel sums accumulate in scratch; the last grid
    step computes the exact (centered) variance straight from the resident
    buffer and normalizes it in tm-wide lane slices -> the (C, M) intermediate
    never makes an extra HBM round trip."""
    c, m = re.shape
    tm, nm = _tile_m(m, 16 * c)            # two double-buffered (c, tm) streams
    mp = nm * tm
    ragged = (m % tm) != 0
    inv_m = 1.0 / m

    def kernel(re_ref, im_ref, w_ref, gr_ref, br_ref, gi_ref, bi_ref,
               ore_ref, oim_ref, sr, si):
        j = pl.program_id(0)

        @pl.when(j == 0)
        def _init():
            sr[...] = jnp.zeros_like(sr)
            si[...] = jnp.zeros_like(si)

        wv = w_ref[...]
        rev = re_ref[...]
        imv = im_ref[...]
        y_re = _conv1x1(wv[:c, :c], rev) + _conv1x1(wv[:c, c:], imv)
        y_im = _conv1x1(wv[c:, :c], rev) + _conv1x1(wv[c:, c:], imv)
        off = pl.multiple_of(j * tm, 128) if nm > 1 else 0
        ore_ref[:, pl.ds(off, tm)] = y_re
        oim_ref[:, pl.ds(off, tm)] = y_im
        if ragged:
            col = j * tm + lax.broadcasted_iota(jnp.int32, (1, tm), 1)
            y_re = jnp.where(col < m, y_re, 0.0)
            y_im = jnp.where(col < m, y_im, 0.0)
        sr[...] += jnp.sum(y_re, axis=1, keepdims=True)
        si[...] += jnp.sum(y_im, axis=1, keepdims=True)

        @pl.when(j == nm - 1)
        def _finalize():
            mean_re = sr[...] * inv_m
            mean_im = si[...] * inv_m
            sr[...] = jnp.zeros_like(sr)
            si[...] = jnp.zeros_like(si)

            def var_body(t, carry):                 # exact two-pass variance
                o = pl.multiple_of(t * tm, 128) if nm > 1 else 0
                dr = ore_ref[:, pl.ds(o, tm)] - mean_re
                di = oim_ref[:, pl.ds(o, tm)] - mean_im
                if ragged:
                    col = t * tm + lax.broadcasted_iota(jnp.int32, (1, tm), 1)
                    dr = jnp.where(col < m, dr, 0.0)
                    di = jnp.where(col < m, di, 0.0)
                sr[...] += jnp.sum(dr * dr, axis=1, keepdims=True)
                si[...] += jnp.sum(di * di, axis=1, keepdims=True)
                return carry

            lax.fori_loop(0, nm, var_body, 0)
            scale_re = gr_ref[...] * lax.rsqrt(sr[...] * inv_m + eps)
            bias_re = br_ref[...] - mean_re * scale_re
            scale_im = gi_ref[...] * lax.rsqrt(si[...] * inv_m + eps)
            bias_im = bi_ref[...] - mean_im * scale_im

            def norm_body(t, carry):                # slice-wise normalize+ReLU
                o = pl.multiple_of(t * tm, 128) if nm > 1 else 0
                ore_ref[:, pl.ds(o, tm)] = jnp.maximum(
                    ore_ref[:, pl.ds(o, tm)] * scale_re + bias_re, 0.0)
                oim_ref[:, pl.ds(o, tm)] = jnp.maximum(
                    oim_ref[:, pl.ds(o, tm)] * scale_im + bias_im, 0.0)
                return carry

            lax.fori_loop(0, nm, norm_body, 0)

    small = pl.BlockSpec((c, 1), lambda j: (0, 0))
    need = 8 * c * mp + 16 * c * tm + 4 * (4 * c * c + 8 * c)
    o_re, o_im = pl.pallas_call(
        kernel,
        out_shape=(jax.ShapeDtypeStruct((c, mp), jnp.float32),
                   jax.ShapeDtypeStruct((c, mp), jnp.float32)),
        grid_spec=pltpu.PrefetchScalarGridSpec(
            num_scalar_prefetch=0, grid=(nm,),
            in_specs=[pl.BlockSpec((c, tm), lambda j: (0, j)),
                      pl.BlockSpec((c, tm), lambda j: (0, j)),
                      pl.BlockSpec((2 * c, 2 * c), lambda j: (0, 0)),
                      small, small, small, small],
            out_specs=(pl.BlockSpec((c, mp), lambda j: (0, 0)),
                       pl.BlockSpec((c, mp), lambda j: (0, 0))),
            scratch_shapes=[pltpu.VMEM((c, 1), jnp.float32),
                            pltpu.VMEM((c, 1), jnp.float32)]),
        compiler_params=_cparams(("arbitrary",), need),
    )(re, im, w, g_re, b_re, g_im, b_im)
    if mp != m:
        o_re, o_im = o_re[:, :m], o_im[:, :m]
    return o_re, o_im


def _scale_bias_relu(y, scale, bias):
    c, m = y.shape
    tm, nm = _tile_m(m, 16 * c)

    def kernel(y_ref, s_ref, b_ref, o_ref):
        o_ref[...] = jnp.maximum(y_ref[...] * s_ref[...] + b_ref[...], 0.0)

    return pl.pallas_call(
        kernel,
        out_shape=jax.ShapeDtypeStruct((c, m), jnp.float32),
        grid_spec=pltpu.PrefetchScalarGridSpec(
            num_scalar_prefetch=0, grid=(nm,),
            in_specs=[pl.BlockSpec((c, tm), lambda j: (0, j)),
                      pl.BlockSpec((c, 1), lambda j: (0, 0)),
                      pl.BlockSpec((c, 1), lambda j: (0, 0))],
            out_specs=pl.BlockSpec((c, tm), lambda j: (0, j))),
        compiler_params=_cparams(("parallel",), 16 * c * tm),
    )(y, scale, bias)


def _spectral_two_pass(re, im, w, g_re, b_re, g_im, b_im, eps):
    """Fallback when the resident output exceeds the generation-specific VMEM
    cap: pass 1 = conv + streamed stats to HBM; pass 2 = scale+bias+ReLU."""
    c, m = re.shape
    tm, nm = _tile_m(m, 32 * c)            # 2 in + 2 out streams, double-buffered
    ragged = (m % tm) != 0

    def pass1(re_ref, im_ref, w_ref, yre_ref, yim_ref, st_ref, acc):
        j = pl.program_id(0)

        @pl.when(j == 0)
        def _init():
            acc[...] = jnp.zeros_like(acc)

        wv = w_ref[...]
        rev = re_ref[...]
        imv = im_ref[...]
        y_re = _conv1x1(wv[:c, :c], rev) + _conv1x1(wv[:c, c:], imv)
        y_im = _conv1x1(wv[c:, :c], rev) + _conv1x1(wv[c:, c:], imv)
        yre_ref[...] = y_re
        yim_ref[...] = y_im
        if ragged:
            col = j * tm + lax.broadcasted_iota(jnp.int32, (1, tm), 1)
            y_re = jnp.where(col < m, y_re, 0.0)
            y_im = jnp.where(col < m, y_im, 0.0)
        acc[:, 0:1] += jnp.sum(y_re, axis=1, keepdims=True)
        acc[:, 1:2] += jnp.sum(y_re * y_re, axis=1, keepdims=True)
        acc[:, 2:3] += jnp.sum(y_im, axis=1, keepdims=True)
        acc[:, 3:4] += jnp.sum(y_im * y_im, axis=1, keepdims=True)

        @pl.when(j == nm - 1)
        def _flush():
            st_ref[...] = acc[...]

    tile = pl.BlockSpec((c, tm), lambda j: (0, j))
    y_re, y_im, st = pl.pallas_call(
        pass1,
        out_shape=(jax.ShapeDtypeStruct((c, m), jnp.float32),
                   jax.ShapeDtypeStruct((c, m), jnp.float32),
                   jax.ShapeDtypeStruct((c, 4), jnp.float32)),
        grid_spec=pltpu.PrefetchScalarGridSpec(
            num_scalar_prefetch=0, grid=(nm,),
            in_specs=[tile, tile, pl.BlockSpec((2 * c, 2 * c), lambda j: (0, 0))],
            out_specs=(tile, tile, pl.BlockSpec((c, 4), lambda j: (0, 0))),
            scratch_shapes=[pltpu.VMEM((c, 4), jnp.float32)]),
        compiler_params=_cparams(("arbitrary",), 32 * c * tm + 16 * c * c),
    )(re, im, w)

    # tiny (C,1) per-channel scale/bias from the streamed sums (negligible glue)
    inv_m = 1.0 / m
    mean_re, mean_im = st[:, 0:1] * inv_m, st[:, 2:3] * inv_m
    var_re = jnp.maximum(st[:, 1:2] * inv_m - mean_re * mean_re, 0.0)
    var_im = jnp.maximum(st[:, 3:4] * inv_m - mean_im * mean_im, 0.0)
    s_re = g_re * lax.rsqrt(var_re + eps)
    s_im = g_im * lax.rsqrt(var_im + eps)
    return (_scale_bias_relu(y_re, s_re, b_re - mean_re * s_re),
            _scale_bias_relu(y_im, s_im, b_im - mean_im * s_im))


def spectral_conv_bn_relu(re, im, w, gamma, beta, eps=_BN_EPS):
    """relu(BN_train(conv1x1([re ; im]))) on the spectral rows, fused in Pallas.

    Real and imaginary channels stay as two separate (C, M) streams (no re/im
    channel interleave / de-interleave transposes); the (2C, 2C) weight and the
    BN gamma/beta are laid out in blocked [re_channels ; im_channels] order.
    Returns (out_re, out_im), each (C, M).
    """
    c, m = re.shape
    g_re, g_im = gamma[:c].reshape(c, 1), gamma[c:].reshape(c, 1)
    b_re, b_im = beta[:c].reshape(c, 1), beta[c:].reshape(c, 1)
    if 32 * c * m <= _TILE_BUDGET:
        return _spectral_single_tile(re, im, w, g_re, b_re, g_im, b_im, eps)
    if 8 * c * m <= _RESIDENT_CAP:
        return _spectral_resident(re, im, w, g_re, b_re, g_im, b_im, eps)
    return _spectral_two_pass(re, im, w, g_re, b_re, g_im, b_im, eps)


# ------------------------------ module forward --------------------------------

def fourier_unit(x_cm, b, h, w, w2d, gamma, beta):
    """FourierUnit(C->C): rfft2('ortho') -> 1x1 conv(2C->2C) -> BN(train) ->
    ReLU -> irfft2, operating on the channels-major (C, B*H*W) layout.  The FFT
    axes are already the trailing two, so no permutes are needed around it."""
    c = x_cm.shape[0]
    x4 = x_cm.reshape(c, b, h, w)
    # TODO(synk): rfft2/irfft2 have no Pallas primitive; computed with jnp.fft.
    z = jnp.fft.rfft2(x4, norm="ortho")                       # (C, B, H, Wf) c64
    wf = z.shape[-1]
    m = b * h * wf
    re = jnp.real(z).reshape(c, m)
    im = jnp.imag(z).reshape(c, m)
    o_re, o_im = spectral_conv_bn_relu(re, im, w2d, gamma, beta)   # Pallas hot path
    zc = jax.lax.complex(o_re.reshape(c, b, h, wf), o_im.reshape(c, b, h, wf))
    out = jnp.fft.irfft2(zc, s=(h, w), norm="ortho")          # (C, B, H, W)
    return out.reshape(c, b * h * w)


def ffc_forward(x, p):
    b, cin, h, w = x.shape
    # stride=1 -> nn.Identity downsample
    # single layout change at entry: NCHW -> channels-major (C, B*H*W)
    x_cm = jnp.transpose(x, (1, 0, 2, 3)).reshape(cin, b * h * w)

    # conv1: spectral-normalized 1x1 conv (bias=False) + exact GELU   [Pallas]
    x1 = conv1x1_gelu(x_cm, p["w1"])                          # (ch, B*H*W)
    ch = x1.shape[0]

    # global Fourier unit
    out_fu = fourier_unit(x1, b, h, w, p["w_fu"], p["fu_gamma"], p["fu_beta"])

    # local Fourier unit (enable_lfu=True): quarter spatially, stack on channels
    h2, w2 = h // 2, w // 2
    xs = x1.reshape(ch, b, h, w)[: ch // 4]
    xs = jnp.concatenate(jnp.split(xs, 2, axis=2), axis=0)    # H halves -> channels
    xs = jnp.concatenate(jnp.split(xs, 2, axis=3), axis=0)    # W halves -> channels
    xs = fourier_unit(xs.reshape(ch, b * h2 * w2), b, h2, w2,
                      p["w_lfu"], p["lfu_gamma"], p["lfu_beta"])
    # TODO(synk): the 2x2 replication below is still an XLA materialization;
    # folding it into conv2's index_map needs W/2 to be a 128-lane multiple.
    xs = jnp.tile(xs.reshape(ch, b, h2, w2), (1, 1, 2, 2)).reshape(ch, b * h * w)

    # conv2 on (x1 + fu + lfu); the 3-way add is fused into the Pallas kernel
    out = conv1x1_add3(x1, out_fu, xs, p["w2"])               # (Cout, B*H*W)
    cout = out.shape[0]
    return jnp.transpose(out.reshape(cout, b, h, w), (1, 0, 2, 3))


# ------------------------------ parameter init --------------------------------

def init_params(key, in_channels, out_channels):
    ch = out_channels // 2
    k1, k2, k3, k4 = jax.random.split(key, 4)
    # conv1 weight (out=ch, in=in_channels) with spectral norm: divide by the
    # exact top singular value (deterministic stand-in for torch's single-step
    # power-iteration estimate).
    w1 = jax.random.normal(k1, (ch, in_channels), jnp.float32) * 0.3
    w1 = w1 / jnp.linalg.svd(w1, compute_uv=False)[0]
    # FourierUnit / LFU spectral conv weights (2*ch -> 2*ch), (out, in) layout.
    # Channel convention is blocked [re_0..re_{ch-1}, im_0..im_{ch-1}] (a fixed
    # permutation of torch's interleaved order; self-consistent with gamma/beta
    # and equivalent in distribution for a freshly-initialized module).
    w_fu = jax.random.normal(k2, (2 * ch, 2 * ch), jnp.float32) * 0.2
    w_lfu = jax.random.normal(k3, (2 * ch, 2 * ch), jnp.float32) * 0.2
    # conv2 weight (out_channels, ch), (out, in) layout
    w2 = jax.random.normal(k4, (out_channels, ch), jnp.float32) * 0.3
    two_ch = 2 * ch
    return dict(
        w1=w1, w_fu=w_fu, w_lfu=w_lfu, w2=w2,
        # BatchNorm2d default init: gamma=1, beta=0
        fu_gamma=jnp.ones((two_ch,), jnp.float32),
        fu_beta=jnp.zeros((two_ch,), jnp.float32),
        lfu_gamma=jnp.ones((two_ch,), jnp.float32),
        lfu_beta=jnp.zeros((two_ch,), jnp.float32),
    )


if __name__ == "__main__":
    key = jax.random.PRNGKey(0)
    kx, kp = jax.random.split(key)
    in_channels, out_channels = 4, 8
    x = jax.random.normal(kx, (2, in_channels, 16, 16), jnp.float32)
    params = init_params(kp, in_channels, out_channels)

    out = jax.jit(ffc_forward)(x, params)
    out = jax.block_until_ready(out)
    assert out.shape == (2, out_channels, 16, 16), out.shape
    assert bool(jnp.all(jnp.isfinite(out)))
    print("KERNEL_OK")
</pallas_src>

<mosaic_0001>
module attributes {stable_mosaic.version = 11 : i64} {
  func.func @_conv_gelu_kernel(%arg0: i32, %arg1: memref<4x512xf32, #tpu.memory_space<vmem>>, %arg2: memref<4x4xf32, #tpu.memory_space<vmem>>, %arg3: memref<4x512xf32, #tpu.memory_space<vmem>>) attributes {dimension_semantics = [#tpu.dimension_semantics<parallel>], iteration_bounds = array<i64: 1>, scalar_prefetch = 0 : i64, scratch_operands = 0 : i64, tpu.core_type = #tpu.core_type<tc>, window_params = [{transform_indices = @transform_0, window_bounds = array<i64: 4, 512>}, {pipeline_mode = #tpu.pipeline_mode<synchronous>, transform_indices = @transform_1, window_bounds = array<i64: 4, 4>}, {transform_indices = @transform_2, window_bounds = array<i64: 4, 512>}]} {
    %c0 = arith.constant 0 : index
    %c0_0 = arith.constant 0 : index
    %0 = vector.load %arg2[%c0, %c0_0] : memref<4x4xf32, #tpu.memory_space<vmem>>, vector<4x4xf32>
    %c0_1 = arith.constant 0 : index
    %c0_2 = arith.constant 0 : index
    %1 = vector.load %arg1[%c0_1, %c0_2] : memref<4x512xf32, #tpu.memory_space<vmem>>, vector<4x512xf32>
    %2 = vector.extract_strided_slice %0 {offsets = [0, 0], sizes = [4, 1], strides = [1, 1]} : vector<4x4xf32> to vector<4x1xf32>
    %3 = vector.extract_strided_slice %1 {offsets = [0, 0], sizes = [1, 512], strides = [1, 1]} : vector<4x512xf32> to vector<1x512xf32>
    %4 = vector.broadcast %2 : vector<4x1xf32> to vector<4x512xf32>
    %5 = vector.broadcast %3 : vector<1x512xf32> to vector<4x512xf32>
    %6 = arith.mulf %4, %5 : vector<4x512xf32>
    %7 = vector.extract_strided_slice %0 {offsets = [0, 1], sizes = [4, 1], strides = [1, 1]} : vector<4x4xf32> to vector<4x1xf32>
    %8 = vector.extract_strided_slice %1 {offsets = [1, 0], sizes = [1, 512], strides = [1, 1]} : vector<4x512xf32> to vector<1x512xf32>
    %9 = vector.broadcast %7 : vector<4x1xf32> to vector<4x512xf32>
    %10 = vector.broadcast %8 : vector<1x512xf32> to vector<4x512xf32>
    %11 = arith.mulf %9, %10 : vector<4x512xf32>
    %12 = arith.addf %6, %11 : vector<4x512xf32>
    %13 = vector.extract_strided_slice %0 {offsets = [0, 2], sizes = [4, 1], strides = [1, 1]} : vector<4x4xf32> to vector<4x1xf32>
    %14 = vector.extract_strided_slice %1 {offsets = [2, 0], sizes = [1, 512], strides = [1, 1]} : vector<4x512xf32> to vector<1x512xf32>
    %15 = vector.broadcast %13 : vector<4x1xf32> to vector<4x512xf32>
    %16 = vector.broadcast %14 : vector<1x512xf32> to vector<4x512xf32>
    %17 = arith.mulf %15, %16 : vector<4x512xf32>
    %18 = arith.addf %12, %17 : vector<4x512xf32>
    %19 = vector.extract_strided_slice %0 {offsets = [0, 3], sizes = [4, 1], strides = [1, 1]} : vector<4x4xf32> to vector<4x1xf32>
    %20 = vector.extract_strided_slice %1 {offsets = [3, 0], sizes = [1, 512], strides = [1, 1]} : vector<4x512xf32> to vector<1x512xf32>
    %21 = vector.broadcast %19 : vector<4x1xf32> to vector<4x512xf32>
    %22 = vector.broadcast %20 : vector<1x512xf32> to vector<4x512xf32>
    %23 = arith.mulf %21, %22 : vector<4x512xf32>
    %24 = arith.addf %18, %23 : vector<4x512xf32>
    %cst = arith.constant 0.707106769 : f32
    %25 = vector.broadcast %cst : f32 to vector<4x512xf32>
    %26 = arith.mulf %24, %25 : vector<4x512xf32>
    %27 = math.absf %26 : vector<4x512xf32>
    %cst_3 = arith.constant 0.327591091 : f32
    %28 = vector.broadcast %cst_3 : f32 to vector<4x512xf32>
    %29 = arith.mulf %28, %27 : vector<4x512xf32>
    %cst_4 = arith.constant 1.000000e+00 : f32
    %30 = vector.broadcast %cst_4 : f32 to vector<4x512xf32>
    %31 = arith.addf %30, %29 : vector<4x512xf32>
    %32 = tpu.reciprocal %31 {approx = true} : vector<4x512xf32> -> vector<4x512xf32>
    %cst_5 = arith.constant 1.06140542 : f32
    %33 = vector.broadcast %cst_5 : f32 to vector<4x512xf32>
    %34 = arith.mulf %33, %32 : vector<4x512xf32>
    %cst_6 = arith.constant -1.45315206 : f32
    %35 = vector.broadcast %cst_6 : f32 to vector<4x512xf32>
    %36 = arith.addf %34, %35 : vector<4x512xf32>
    %37 = arith.mulf %36, %32 : vector<4x512xf32>
    %cst_7 = arith.constant 1.42141378 : f32
    %38 = vector.broadcast %cst_7 : f32 to vector<4x512xf32>
    %39 = arith.addf %37, %38 : vector<4x512xf32>
    %40 = arith.mulf %39, %32 : vector<4x512xf32>
    %cst_8 = arith.constant -0.284496725 : f32
    %41 = vector.broadcast %cst_8 : f32 to vector<4x512xf32>
    %42 = arith.addf %40, %41 : vector<4x512xf32>
    %43 = arith.mulf %42, %32 : vector<4x512xf32>
    %cst_9 = arith.constant 0.254829586 : f32
    %44 = vector.broadcast %cst_9 : f32 to vector<4x512xf32>
    %45 = arith.addf %43, %44 : vector<4x512xf32>
    %46 = arith.mulf %45, %32 : vector<4x512xf32>
    %cst_10 = arith.constant 0.000000e+00 : f32
    %47 = vector.broadcast %cst_10 : f32 to vector<4x512xf32>
    %48 = arith.subf %47, %27 : vector<4x512xf32>
    %49 = arith.mulf %48, %27 : vector<4x512xf32>
    %50 = math.exp %49 : vector<4x512xf32>
    %51 = arith.mulf %46, %50 : vector<4x512xf32>
    %cst_11 = arith.constant 5.000000e-01 : f32
    %52 = vector.broadcast %cst_11 : f32 to vector<4x512xf32>
    %53 = arith.mulf %52, %24 : vector<4x512xf32>
    %cst_12 = arith.constant 0.000000e+00 : f32
    %54 = vector.broadcast %cst_12 : f32 to vector<4x512xf32>
    %55 = arith.cmpf oge, %26, %54 : vector<4x512xf32>
    %cst_13 = arith.constant 2.000000e+00 : f32
    %56 = vector.broadcast %cst_13 : f32 to vector<4x512xf32>
    %57 = arith.subf %56, %51 : vector<4x512xf32>
    %58 = arith.select %55, %57, %51 : vector<4x512xi1>, vector<4x512xf32>
    %59 = arith.mulf %53, %58 : vector<4x512xf32>
    %c0_14 = arith.constant 0 : index
    %c0_15 = arith.constant 0 : index
    %60 = vector.load %arg3[%c0_14, %c0_15] : memref<4x512xf32, #tpu.memory_space<vmem>>, vector<4x512xf32>
    tpu.vector_store %arg3[%c0_14, %c0_15], %59 {strides = array<i32>} : memref<4x512xf32, #tpu.memory_space<vmem>>, vector<4x512xf32>,
    return
  }
  func.func @transform_0(%arg0: i32) -> (i32, i32) {
    %c0_i32 = arith.constant 0 : i32
    %c0_i32_0 = arith.constant 0 : i32
    return %c0_i32, %arg0 : i32, i32
  }
  func.func @transform_1(%arg0: i32) -> (i32, i32) {
    %c0_i32 = arith.constant 0 : i32
    %c0_i32_0 = arith.constant 0 : i32
    %c0_i32_1 = arith.constant 0 : i32
    return %c0_i32, %c0_i32_0 : i32, i32
  }
  func.func @transform_2(%arg0: i32) -> (i32, i32) {
    %c0_i32 = arith.constant 0 : i32
    %c0_i32_0 = arith.constant 0 : i32
    return %c0_i32, %arg0 : i32, i32
  }
}

module attributes {stable_mosaic.version = 11 : i64} {
  func.func @kernel(%arg0: i32, %arg1: memref<4x288xf32, #tpu.memory_space<vmem>>, %arg2: memref<4x288xf32, #tpu.memory_space<vmem>>, %arg3: memref<8x8xf32, #tpu.memory_space<vmem>>, %arg4: memref<4x1xf32, #tpu.memory_space<vmem>>, %arg5: memref<4x1xf32, #tpu.memory_space<vmem>>, %arg6: memref<4x1xf32, #tpu.memory_space<vmem>>, %arg7: memref<4x1xf32, #tpu.memory_space<vmem>>, %arg8: memref<4x288xf32, #tpu.memory_space<vmem>>, %arg9: memref<4x288xf32, #tpu.memory_space<vmem>>) attributes {dimension_semantics = [#tpu.dimension_semantics<arbitrary>], iteration_bounds = array<i64: 1>, scalar_prefetch = 0 : i64, scratch_operands = 0 : i64, tpu.core_type = #tpu.core_type<tc>, window_params = [{pipeline_mode = #tpu.pipeline_mode<synchronous>, transform_indices = @transform_0, window_bounds = array<i64: 4, 288>}, {pipeline_mode = #tpu.pipeline_mode<synchronous>, transform_indices = @transform_1, window_bounds = array<i64: 4, 288>}, {pipeline_mode = #tpu.pipeline_mode<synchronous>, transform_indices = @transform_2, window_bounds = array<i64: 8, 8>}, {pipeline_mode = #tpu.pipeline_mode<synchronous>, transform_indices = @transform_3, window_bounds = array<i64: 4, 1>}, {pipeline_mode = #tpu.pipeline_mode<synchronous>, transform_indices = @transform_4, window_bounds = array<i64: 4, 1>}, {pipeline_mode = #tpu.pipeline_mode<synchronous>, transform_indices = @transform_5, window_bounds = array<i64: 4, 1>}, {pipeline_mode = #tpu.pipeline_mode<synchronous>, transform_indices = @transform_6, window_bounds = array<i64: 4, 1>}, {pipeline_mode = #tpu.pipeline_mode<synchronous>, transform_indices = @transform_7, window_bounds = array<i64: 4, 288>}, {pipeline_mode = #tpu.pipeline_mode<synchronous>, transform_indices = @transform_8, window_bounds = array<i64: 4, 288>}]} {
    %c0 = arith.constant 0 : index
    %c0_0 = arith.constant 0 : index
    %0 = vector.load %arg3[%c0, %c0_0] : memref<8x8xf32, #tpu.memory_space<vmem>>, vector<8x8xf32>
    %c0_1 = arith.constant 0 : index
    %c0_2 = arith.constant 0 : index
    %1 = vector.load %arg1[%c0_1, %c0_2] : memref<4x288xf32, #tpu.memory_space<vmem>>, vector<4x288xf32>
    %c0_3 = arith.constant 0 : index
    %c0_4 = arith.constant 0 : index
    %2 = vector.load %arg2[%c0_3, %c0_4] : memref<4x288xf32, #tpu.memory_space<vmem>>, vector<4x288xf32>
    %3 = vector.extract_strided_slice %0 {offsets = [0, 0], sizes = [4, 4], strides = [1, 1]} : vector<8x8xf32> to vector<4x4xf32>
    %4 = vector.extract_strided_slice %3 {offsets = [0, 0], sizes = [4, 1], strides = [1, 1]} : vector<4x4xf32> to vector<4x1xf32>
    %5 = vector.extract_strided_slice %1 {offsets = [0, 0], sizes = [1, 288], strides = [1, 1]} : vector<4x288xf32> to vector<1x288xf32>
    %6 = vector.broadcast %4 : vector<4x1xf32> to vector<4x288xf32>
    %7 = vector.broadcast %5 : vector<1x288xf32> to vector<4x288xf32>
    %8 = arith.mulf %6, %7 : vector<4x288xf32>
    %9 = vector.extract_strided_slice %3 {offsets = [0, 1], sizes = [4, 1], strides = [1, 1]} : vector<4x4xf32> to vector<4x1xf32>
    %10 = vector.extract_strided_slice %1 {offsets = [1, 0], sizes = [1, 288], strides = [1, 1]} : vector<4x288xf32> to vector<1x288xf32>
    %11 = vector.broadcast %9 : vector<4x1xf32> to vector<4x288xf32>
    %12 = vector.broadcast %10 : vector<1x288xf32> to vector<4x288xf32>
    %13 = arith.mulf %11, %12 : vector<4x288xf32>
    %14 = arith.addf %8, %13 : vector<4x288xf32>
    %15 = vector.extract_strided_slice %3 {offsets = [0, 2], sizes = [4, 1], strides = [1, 1]} : vector<4x4xf32> to vector<4x1xf32>
    %16 = vector.extract_strided_slice %1 {offsets = [2, 0], sizes = [1, 288], strides = [1, 1]} : vector<4x288xf32> to vector<1x288xf32>
    %17 = vector.broadcast %15 : vector<4x1xf32> to vector<4x288xf32>
    %18 = vector.broadcast %16 : vector<1x288xf32> to vector<4x288xf32>
    %19 = arith.mulf %17, %18 : vector<4x288xf32>
    %20 = arith.addf %14, %19 : vector<4x288xf32>
    %21 = vector.extract_strided_slice %3 {offsets = [0, 3], sizes = [4, 1], strides = [1, 1]} : vector<4x4xf32> to vector<4x1xf32>
    %22 = vector.extract_strided_slice %1 {offsets = [3, 0], sizes = [1, 288], strides = [1, 1]} : vector<4x288xf32> to vector<1x288xf32>
    %23 = vector.broadcast %21 : vector<4x1xf32> to vector<4x288xf32>
    %24 = vector.broadcast %22 : vector<1x288xf32> to vector<4x288xf32>
    %25 = arith.mulf %23, %24 : vector<4x288xf32>
    %26 = arith.addf %20, %25 : vector<4x288xf32>
    %27 = vector.extract_strided_slice %0 {offsets = [0, 4], sizes = [4, 4], strides = [1, 1]} : vector<8x8xf32> to vector<4x4xf32>
    %28 = vector.extract_strided_slice %27 {offsets = [0, 0], sizes = [4, 1], strides = [1, 1]} : vector<4x4xf32> to vector<4x1xf32>
    %29 = vector.extract_strided_slice %2 {offsets = [0, 0], sizes = [1, 288], strides = [1, 1]} : vector<4x288xf32> to vector<1x288xf32>
    %30 = vector.broadcast %28 : vector<4x1xf32> to vector<4x288xf32>
    %31 = vector.broadcast %29 : vector<1x288xf32> to vector<4x288xf32>
    %32 = arith.mulf %30, %31 : vector<4x288xf32>
    %33 = vector.extract_strided_slice %27 {offsets = [0, 1], sizes = [4, 1], strides = [1, 1]} : vector<4x4xf32> to vector<4x1xf32>
    %34 = vector.extract_strided_slice %2 {offsets = [1, 0], sizes = [1, 288], strides = [1, 1]} : vector<4x288xf32> to vector<1x288xf32>
    %35 = vector.broadcast %33 : vector<4x1xf32> to vector<4x288xf32>
    %36 = vector.broadcast %34 : vector<1x288xf32> to vector<4x288xf32>
    %37 = arith.mulf %35, %36 : vector<4x288xf32>
    %38 = arith.addf %32, %37 : vector<4x288xf32>
    %39 = vector.extract_strided_slice %27 {offsets = [0, 2], sizes = [4, 1], strides = [1, 1]} : vector<4x4xf32> to vector<4x1xf32>
    %40 = vector.extract_strided_slice %2 {offsets = [2, 0], sizes = [1, 288], strides = [1, 1]} : vector<4x288xf32> to vector<1x288xf32>
    %41 = vector.broadcast %39 : vector<4x1xf32> to vector<4x288xf32>
    %42 = vector.broadcast %40 : vector<1x288xf32> to vector<4x288xf32>
    %43 = arith.mulf %41, %42 : vector<4x288xf32>
    %44 = arith.addf %38, %43 : vector<4x288xf32>
    %45 = vector.extract_strided_slice %27 {offsets = [0, 3], sizes = [4, 1], strides = [1, 1]} : vector<4x4xf32> to vector<4x1xf32>
    %46 = vector.extract_strided_slice %2 {offsets = [3, 0], sizes = [1, 288], strides = [1, 1]} : vector<4x288xf32> to vector<1x288xf32>
    %47 = vector.broadcast %45 : vector<4x1xf32> to vector<4x288xf32>
    %48 = vector.broadcast %46 : vector<1x288xf32> to vector<4x288xf32>
    %49 = arith.mulf %47, %48 : vector<4x288xf32>
    %50 = arith.addf %44, %49 : vector<4x288xf32>
    %51 = arith.addf %26, %50 : vector<4x288xf32>
    %52 = vector.extract_strided_slice %0 {offsets = [4, 0], sizes = [4, 4], strides = [1, 1]} : vector<8x8xf32> to vector<4x4xf32>
    %53 = vector.extract_strided_slice %52 {offsets = [0, 0], sizes = [4, 1], strides = [1, 1]} : vector<4x4xf32> to vector<4x1xf32>
    %54 = vector.extract_strided_slice %1 {offsets = [0, 0], sizes = [1, 288], strides = [1, 1]} : vector<4x288xf32> to vector<1x288xf32>
    %55 = vector.broadcast %53 : vector<4x1xf32> to vector<4x288xf32>
    %56 = vector.broadcast %54 : vector<1x288xf32> to vector<4x288xf32>
    %57 = arith.mulf %55, %56 : vector<4x288xf32>
    %58 = vector.extract_strided_slice %52 {offsets = [0, 1], sizes = [4, 1], strides = [1, 1]} : vector<4x4xf32> to vector<4x1xf32>
    %59 = vector.extract_strided_slice %1 {offsets = [1, 0], sizes = [1, 288], strides = [1, 1]} : vector<4x288xf32> to vector<1x288xf32>
    %60 = vector.broadcast %58 : vector<4x1xf32> to vector<4x288xf32>
    %61 = vector.broadcast %59 : vector<1x288xf32> to vector<4x288xf32>
    %62 = arith.mulf %60, %61 : vector<4x288xf32>
    %63 = arith.addf %57, %62 : vector<4x288xf32>
    %64 = vector.extract_strided_slice %52 {offsets = [0, 2], sizes = [4, 1], strides = [1, 1]} : vector<4x4xf32> to vector<4x1xf32>
    %65 = vector.extract_strided_slice %1 {offsets = [2, 0], sizes = [1, 288], strides = [1, 1]} : vector<4x288xf32> to vector<1x288xf32>
    %66 = vector.broadcast %64 : vector<4x1xf32> to vector<4x288xf32>
    %67 = vector.broadcast %65 : vector<1x288xf32> to vector<4x288xf32>
    %68 = arith.mulf %66, %67 : vector<4x288xf32>
    %69 = arith.addf %63, %68 : vector<4x288xf32>
    %70 = vector.extract_strided_slice %52 {offsets = [0, 3], sizes = [4, 1], strides = [1, 1]} : vector<4x4xf32> to vector<4x1xf32>
    %71 = vector.extract_strided_slice %1 {offsets = [3, 0], sizes = [1, 288], strides = [1, 1]} : vector<4x288xf32> to vector<1x288xf32>
    %72 = vector.broadcast %70 : vector<4x1xf32> to vector<4x288xf32>
    %73 = vector.broadcast %71 : vector<1x288xf32> to vector<4x288xf32>
    %74 = arith.mulf %72, %73 : vector<4x288xf32>
    %75 = arith.addf %69, %74 : vector<4x288xf32>
    %76 = vector.extract_strided_slice %0 {offsets = [4, 4], sizes = [4, 4], strides = [1, 1]} : vector<8x8xf32> to vector<4x4xf32>
    %77 = vector.extract_strided_slice %76 {offsets = [0, 0], sizes = [4, 1], strides = [1, 1]} : vector<4x4xf32> to vector<4x1xf32>
    %78 = vector.extract_strided_slice %2 {offsets = [0, 0], sizes = [1, 288], strides = [1, 1]} : vector<4x288xf32> to vector<1x288xf32>
    %79 = vector.broadcast %77 : vector<4x1xf32> to vector<4x288xf32>
    %80 = vector.broadcast %78 : vector<1x288xf32> to vector<4x288xf32>
    %81 = arith.mulf %79, %80 : vector<4x288xf32>
    %82 = vector.extract_strided_slice %76 {offsets = [0, 1], sizes = [4, 1], strides = [1, 1]} : vector<4x4xf32> to vector<4x1xf32>
    %83 = vector.extract_strided_slice %2 {offsets = [1, 0], sizes = [1, 288], strides = [1, 1]} : vector<4x288xf32> to vector<1x288xf32>
    %84 = vector.broadcast %82 : vector<4x1xf32> to vector<4x288xf32>
    %85 = vector.broadcast %83 : vector<1x288xf32> to vector<4x288xf32>
    %86 = arith.mulf %84, %85 : vector<4x288xf32>
    %87 = arith.addf %81, %86 : vector<4x288xf32>
    %88 = vector.extract_strided_slice %76 {offsets = [0, 2], sizes = [4, 1], strides = [1, 1]} : vector<4x4xf32> to vector<4x1xf32>
    %89 = vector.extract_strided_slice %2 {offsets = [2, 0], sizes = [1, 288], strides = [1, 1]} : vector<4x288xf32> to vector<1x288xf32>
    %90 = vector.broadcast %88 : vector<4x1xf32> to vector<4x288xf32>
    %91 = vector.broadcast %89 : vector<1x288xf32> to vector<4x288xf32>
    %92 = arith.mulf %90, %91 : vector<4x288xf32>
    %93 = arith.addf %87, %92 : vector<4x288xf32>
    %94 = vector.extract_strided_slice %76 {offsets = [0, 3], sizes = [4, 1], strides = [1, 1]} : vector<4x4xf32> to vector<4x1xf32>
    %95 = vector.extract_strided_slice %2 {offsets = [3, 0], sizes = [1, 288], strides = [1, 1]} : vector<4x288xf32> to vector<1x288xf32>
    %96 = vector.broadcast %94 : vector<4x1xf32> to vector<4x288xf32>
    %97 = vector.broadcast %95 : vector<1x288xf32> to vector<4x288xf32>
    %98 = arith.mulf %96, %97 : vector<4x288xf32>
    %99 = arith.addf %93, %98 : vector<4x288xf32>
    %100 = arith.addf %75, %99 : vector<4x288xf32>
    %cst = arith.constant dense<0.000000e+00> : vector<4xf32>
    %101 = vector.multi_reduction <add>, %51, %cst [1] : vector<4x288xf32> to vector<4xf32>
    %102 = vector.shape_cast %101 : vector<4xf32> to vector<4x1xf32>
    %cst_5 = arith.constant 0.00347222225 : f32
    %103 = vector.broadcast %cst_5 : f32 to vector<4x1xf32>
    %104 = arith.mulf %102, %103 : vector<4x1xf32>
    %105 = vector.broadcast %104 : vector<4x1xf32> to vector<4x288xf32>
    %106 = arith.subf %51, %105 : vector<4x288xf32>
    %107 = arith.mulf %106, %106 : vector<4x288xf32>
    %cst_6 = arith.constant dense<0.000000e+00> : vector<4xf32>
    %108 = vector.multi_reduction <add>, %107, %cst_6 [1] : vector<4x288xf32> to vector<4xf32>
    %109 = vector.shape_cast %108 : vector<4xf32> to vector<4x1xf32>
    %cst_7 = arith.constant 0.00347222225 : f32
    %110 = vector.broadcast %cst_7 : f32 to vector<4x1xf32>
    %111 = arith.mulf %109, %110 : vector<4x1xf32>
    %c0_8 = arith.constant 0 : index
    %c0_9 = arith.constant 0 : index
    %112 = vector.load %arg4[%c0_8, %c0_9] : memref<4x1xf32, #tpu.memory_space<vmem>>, vector<4x1xf32>
    %cst_10 = arith.constant 9.99999974E-6 : f32
    %113 = vector.broadcast %cst_10 : f32 to vector<4x1xf32>
    %114 = arith.addf %111, %113 : vector<4x1xf32>
    %115 = math.rsqrt %114 : vector<4x1xf32>
    %116 = arith.mulf %112, %115 : vector<4x1xf32>
    %c0_11 = arith.constant 0 : index
    %c0_12 = arith.constant 0 : index
    %117 = vector.load %arg5[%c0_11, %c0_12] : memref<4x1xf32, #tpu.memory_space<vmem>>, vector<4x1xf32>
    %118 = arith.mulf %104, %116 : vector<4x1xf32>
    %119 = arith.subf %117, %118 : vector<4x1xf32>
    %120 = vector.broadcast %116 : vector<4x1xf32> to vector<4x288xf32>
    %121 = arith.mulf %51, %120 : vector<4x288xf32>
    %122 = vector.broadcast %119 : vector<4x1xf32> to vector<4x288xf32>
    %123 = arith.addf %121, %122 : vector<4x288xf32>
    %cst_13 = arith.constant 0.000000e+00 : f32
    %124 = vector.broadcast %cst_13 : f32 to vector<4x288xf32>
    %125 = arith.maximumf %123, %124 : vector<4x288xf32>
    %c0_14 = arith.constant 0 : index
    %c0_15 = arith.constant 0 : index
    %126 = vector.load %arg8[%c0_14, %c0_15] : memref<4x288xf32, #tpu.memory_space<vmem>>, vector<4x288xf32>
    tpu.vector_store %arg8[%c0_14, %c0_15], %125 {strides = array<i32>} : memref<4x288xf32, #tpu.memory_space<vmem>>, vector<4x288xf32>,
    %cst_16 = arith.constant dense<0.000000e+00> : vector<4xf32>
    %127 = vector.multi_reduction <add>, %100, %cst_16 [1] : vector<4x288xf32> to vector<4xf32>
    %128 = vector.shape_cast %127 : vector<4xf32> to vector<4x1xf32>
    %cst_17 = arith.constant 0.00347222225 : f32
    %129 = vector.broadcast %cst_17 : f32 to vector<4x1xf32>
    %130 = arith.mulf %128, %129 : vector<4x1xf32>
    %131 = vector.broadcast %130 : vector<4x1xf32> to vector<4x288xf32>
    %132 = arith.subf %100, %131 : vector<4x288xf32>
    %133 = arith.mulf %132, %132 : vector<4x288xf32>
    %cst_18 = arith.constant dense<0.000000e+00> : vector<4xf32>
    %134 = vector.multi_reduction <add>, %133, %cst_18 [1] : vector<4x288xf32> to vector<4xf32>
    %135 = vector.shape_cast %134 : vector<4xf32> to vector<4x1xf32>
    %cst_19 = arith.constant 0.00347222225 : f32
    %136 = vector.broadcast %cst_19 : f32 to vector<4x1xf32>
    %137 = arith.mulf %135, %136 : vector<4x1xf32>
    %c0_20 = arith.constant 0 : index
    %c0_21 = arith.constant 0 : index
    %138 = vector.load %arg6[%c0_20, %c0_21] : memref<4x1xf32, #tpu.memory_space<vmem>>, vector<4x1xf32>
    %cst_22 = arith.constant 9.99999974E-6 : f32
    %139 = vector.broadcast %cst_22 : f32 to vector<4x1xf32>
    %140 = arith.addf %137, %139 : vector<4x1xf32>
    %141 = math.rsqrt %140 : vector<4x1xf32>
    %142 = arith.mulf %138, %141 : vector<4x1xf32>
    %c0_23 = arith.constant 0 : index
    %c0_24 = arith.constant 0 : index
    %143 = vector.load %arg7[%c0_23, %c0_24] : memref<4x1xf32, #tpu.memory_space<vmem>>, vector<4x1xf32>
    %144 = arith.mulf %130, %142 : vector<4x1xf32>
    %145 = arith.subf %143, %144 : vector<4x1xf32>
    %146 = vector.broadcast %142 : vector<4x1xf32> to vector<4x288xf32>
    %147 = arith.mulf %100, %146 : vector<4x288xf32>
    %148 = vector.broadcast %145 : vector<4x1xf32> to vector<4x288xf32>
    %149 = arith.addf %147, %148 : vector<4x288xf32>
    %cst_25 = arith.constant 0.000000e+00 : f32
    %150 = vector.broadcast %cst_25 : f32 to vector<4x288xf32>
    %151 = arith.maximumf %149, %150 : vector<4x288xf32>
    %c0_26 = arith.constant 0 : index
    %c0_27 = arith.constant 0 : index
    %152 = vector.load %arg9[%c0_26, %c0_27] : memref<4x288xf32, #tpu.memory_space<vmem>>, vector<4x288xf32>
    tpu.vector_store %arg9[%c0_26, %c0_27], %151 {strides = array<i32>} : memref<4x288xf32, #tpu.memory_space<vmem>>, vector<4x288xf32>,
    return
  }
  func.func @transform_0(%arg0: i32) -> (i32, i32) {
    %c0_i32 = arith.constant 0 : i32
    %c0_i32_0 = arith.constant 0 : i32
    %c0_i32_1 = arith.constant 0 : i32
    return %c0_i32, %c0_i32_0 : i32, i32
  }
  func.func @transform_1(%arg0: i32) -> (i32, i32) {
    %c0_i32 = arith.constant 0 : i32
    %c0_i32_0 = arith.constant 0 : i32
    %c0_i32_1 = arith.constant 0 : i32
    return %c0_i32, %c0_i32_0 : i32, i32
  }
  func.func @transform_2(%arg0: i32) -> (i32, i32) {
    %c0_i32 = arith.constant 0 : i32
    %c0_i32_0 = arith.constant 0 : i32
    %c0_i32_1 = arith.constant 0 : i32
    return %c0_i32, %c0_i32_0 : i32, i32
  }
  func.func @transform_3(%arg0: i32) -> (i32, i32) {
    %c0_i32 = arith.constant 0 : i32
    %c0_i32_0 = arith.constant 0 : i32
    %c0_i32_1 = arith.constant 0 : i32
    return %c0_i32, %c0_i32_0 : i32, i32
  }
  func.func @transform_4(%arg0: i32) -> (i32, i32) {
    %c0_i32 = arith.constant 0 : i32
    %c0_i32_0 = arith.constant 0 : i32
    %c0_i32_1 = arith.constant 0 : i32
    return %c0_i32, %c0_i32_0 : i32, i32
  }
  func.func @transform_5(%arg0: i32) -> (i32, i32) {
    %c0_i32 = arith.constant 0 : i32
    %c0_i32_0 = arith.constant 0 : i32
    %c0_i32_1 = arith.constant 0 : i32
    return %c0_i32, %c0_i32_0 : i32, i32
  }
  func.func @transform_6(%arg0: i32) -> (i32, i32) {
    %c0_i32 = arith.constant 0 : i32
    %c0_i32_0 = arith.constant 0 : i32
    %c0_i32_1 = arith.constant 0 : i32
    return %c0_i32, %c0_i32_0 : i32, i32
  }
  func.func @transform_7(%arg0: i32) -> (i32, i32) {
    %c0_i32 = arith.constant 0 : i32
    %c0_i32_0 = arith.constant 0 : i32
    %c0_i32_1 = arith.constant 0 : i32
    return %c0_i32, %c0_i32_0 : i32, i32
  }
  func.func @transform_8(%arg0: i32) -> (i32, i32) {
    %c0_i32 = arith.constant 0 : i32
    %c0_i32_0 = arith.constant 0 : i32
    %c0_i32_1 = arith.constant 0 : i32
    return %c0_i32, %c0_i32_0 : i32, i32
  }
}

module attributes {stable_mosaic.version = 11 : i64} {
  func.func @kernel(%arg0: i32, %arg1: memref<4x80xf32, #tpu.memory_space<vmem>>, %arg2: memref<4x80xf32, #tpu.memory_space<vmem>>, %arg3: memref<8x8xf32, #tpu.memory_space<vmem>>, %arg4: memref<4x1xf32, #tpu.memory_space<vmem>>, %arg5: memref<4x1xf32, #tpu.memory_space<vmem>>, %arg6: memref<4x1xf32, #tpu.memory_space<vmem>>, %arg7: memref<4x1xf32, #tpu.memory_space<vmem>>, %arg8: memref<4x80xf32, #tpu.memory_space<vmem>>, %arg9: memref<4x80xf32, #tpu.memory_space<vmem>>) attributes {dimension_semantics = [#tpu.dimension_semantics<arbitrary>], iteration_bounds = array<i64: 1>, scalar_prefetch = 0 : i64, scratch_operands = 0 : i64, tpu.core_type = #tpu.core_type<tc>, window_params = [{pipeline_mode = #tpu.pipeline_mode<synchronous>, transform_indices = @transform_0, window_bounds = array<i64: 4, 80>}, {pipeline_mode = #tpu.pipeline_mode<synchronous>, transform_indices = @transform_1, window_bounds = array<i64: 4, 80>}, {pipeline_mode = #tpu.pipeline_mode<synchronous>, transform_indices = @transform_2, window_bounds = array<i64: 8, 8>}, {pipeline_mode = #tpu.pipeline_mode<synchronous>, transform_indices = @transform_3, window_bounds = array<i64: 4, 1>}, {pipeline_mode = #tpu.pipeline_mode<synchronous>, transform_indices = @transform_4, window_bounds = array<i64: 4, 1>}, {pipeline_mode = #tpu.pipeline_mode<synchronous>, transform_indices = @transform_5, window_bounds = array<i64: 4, 1>}, {pipeline_mode = #tpu.pipeline_mode<synchronous>, transform_indices = @transform_6, window_bounds = array<i64: 4, 1>}, {pipeline_mode = #tpu.pipeline_mode<synchronous>, transform_indices = @transform_7, window_bounds = array<i64: 4, 80>}, {pipeline_mode = #tpu.pipeline_mode<synchronous>, transform_indices = @transform_8, window_bounds = array<i64: 4, 80>}]} {
    %c0 = arith.constant 0 : index
    %c0_0 = arith.constant 0 : index
    %0 = vector.load %arg3[%c0, %c0_0] : memref<8x8xf32, #tpu.memory_space<vmem>>, vector<8x8xf32>
    %c0_1 = arith.constant 0 : index
    %c0_2 = arith.constant 0 : index
    %1 = vector.load %arg1[%c0_1, %c0_2] : memref<4x80xf32, #tpu.memory_space<vmem>>, vector<4x80xf32>
    %c0_3 = arith.constant 0 : index
    %c0_4 = arith.constant 0 : index
    %2 = vector.load %arg2[%c0_3, %c0_4] : memref<4x80xf32, #tpu.memory_space<vmem>>, vector<4x80xf32>
    %3 = vector.extract_strided_slice %0 {offsets = [0, 0], sizes = [4, 4], strides = [1, 1]} : vector<8x8xf32> to vector<4x4xf32>
    %4 = vector.extract_strided_slice %3 {offsets = [0, 0], sizes = [4, 1], strides = [1, 1]} : vector<4x4xf32> to vector<4x1xf32>
    %5 = vector.extract_strided_slice %1 {offsets = [0, 0], sizes = [1, 80], strides = [1, 1]} : vector<4x80xf32> to vector<1x80xf32>
    %6 = vector.broadcast %4 : vector<4x1xf32> to vector<4x80xf32>
    %7 = vector.broadcast %5 : vector<1x80xf32> to vector<4x80xf32>
    %8 = arith.mulf %6, %7 : vector<4x80xf32>
    %9 = vector.extract_strided_slice %3 {offsets = [0, 1], sizes = [4, 1], strides = [1, 1]} : vector<4x4xf32> to vector<4x1xf32>
    %10 = vector.extract_strided_slice %1 {offsets = [1, 0], sizes = [1, 80], strides = [1, 1]} : vector<4x80xf32> to vector<1x80xf32>
    %11 = vector.broadcast %9 : vector<4x1xf32> to vector<4x80xf32>
    %12 = vector.broadcast %10 : vector<1x80xf32> to vector<4x80xf32>
    %13 = arith.mulf %11, %12 : vector<4x80xf32>
    %14 = arith.addf %8, %13 : vector<4x80xf32>
    %15 = vector.extract_strided_slice %3 {offsets = [0, 2], sizes = [4, 1], strides = [1, 1]} : vector<4x4xf32> to vector<4x1xf32>
    %16 = vector.extract_strided_slice %1 {offsets = [2, 0], sizes = [1, 80], strides = [1, 1]} : vector<4x80xf32> to vector<1x80xf32>
    %17 = vector.broadcast %15 : vector<4x1xf32> to vector<4x80xf32>
    %18 = vector.broadcast %16 : vector<1x80xf32> to vector<4x80xf32>
    %19 = arith.mulf %17, %18 : vector<4x80xf32>
    %20 = arith.addf %14, %19 : vector<4x80xf32>
    %21 = vector.extract_strided_slice %3 {offsets = [0, 3], sizes = [4, 1], strides = [1, 1]} : vector<4x4xf32> to vector<4x1xf32>
    %22 = vector.extract_strided_slice %1 {offsets = [3, 0], sizes = [1, 80], strides = [1, 1]} : vector<4x80xf32> to vector<1x80xf32>
    %23 = vector.broadcast %21 : vector<4x1xf32> to vector<4x80xf32>
    %24 = vector.broadcast %22 : vector<1x80xf32> to vector<4x80xf32>
    %25 = arith.mulf %23, %24 : vector<4x80xf32>
    %26 = arith.addf %20, %25 : vector<4x80xf32>
    %27 = vector.extract_strided_slice %0 {offsets = [0, 4], sizes = [4, 4], strides = [1, 1]} : vector<8x8xf32> to vector<4x4xf32>
    %28 = vector.extract_strided_slice %27 {offsets = [0, 0], sizes = [4, 1], strides = [1, 1]} : vector<4x4xf32> to vector<4x1xf32>
    %29 = vector.extract_strided_slice %2 {offsets = [0, 0], sizes = [1, 80], strides = [1, 1]} : vector<4x80xf32> to vector<1x80xf32>
    %30 = vector.broadcast %28 : vector<4x1xf32> to vector<4x80xf32>
    %31 = vector.broadcast %29 : vector<1x80xf32> to vector<4x80xf32>
    %32 = arith.mulf %30, %31 : vector<4x80xf32>
    %33 = vector.extract_strided_slice %27 {offsets = [0, 1], sizes = [4, 1], strides = [1, 1]} : vector<4x4xf32> to vector<4x1xf32>
    %34 = vector.extract_strided_slice %2 {offsets = [1, 0], sizes = [1, 80], strides = [1, 1]} : vector<4x80xf32> to vector<1x80xf32>
    %35 = vector.broadcast %33 : vector<4x1xf32> to vector<4x80xf32>
    %36 = vector.broadcast %34 : vector<1x80xf32> to vector<4x80xf32>
    %37 = arith.mulf %35, %36 : vector<4x80xf32>
    %38 = arith.addf %32, %37 : vector<4x80xf32>
    %39 = vector.extract_strided_slice %27 {offsets = [0, 2], sizes = [4, 1], strides = [1, 1]} : vector<4x4xf32> to vector<4x1xf32>
    %40 = vector.extract_strided_slice %2 {offsets = [2, 0], sizes = [1, 80], strides = [1, 1]} : vector<4x80xf32> to vector<1x80xf32>
    %41 = vector.broadcast %39 : vector<4x1xf32> to vector<4x80xf32>
    %42 = vector.broadcast %40 : vector<1x80xf32> to vector<4x80xf32>
    %43 = arith.mulf %41, %42 : vector<4x80xf32>
    %44 = arith.addf %38, %43 : vector<4x80xf32>
    %45 = vector.extract_strided_slice %27 {offsets = [0, 3], sizes = [4, 1], strides = [1, 1]} : vector<4x4xf32> to vector<4x1xf32>
    %46 = vector.extract_strided_slice %2 {offsets = [3, 0], sizes = [1, 80], strides = [1, 1]} : vector<4x80xf32> to vector<1x80xf32>
    %47 = vector.broadcast %45 : vector<4x1xf32> to vector<4x80xf32>
    %48 = vector.broadcast %46 : vector<1x80xf32> to vector<4x80xf32>
    %49 = arith.mulf %47, %48 : vector<4x80xf32>
    %50 = arith.addf %44, %49 : vector<4x80xf32>
    %51 = arith.addf %26, %50 : vector<4x80xf32>
    %52 = vector.extract_strided_slice %0 {offsets = [4, 0], sizes = [4, 4], strides = [1, 1]} : vector<8x8xf32> to vector<4x4xf32>
    %53 = vector.extract_strided_slice %52 {offsets = [0, 0], sizes = [4, 1], strides = [1, 1]} : vector<4x4xf32> to vector<4x1xf32>
    %54 = vector.extract_strided_slice %1 {offsets = [0, 0], sizes = [1, 80], strides = [1, 1]} : vector<4x80xf32> to vector<1x80xf32>
    %55 = vector.broadcast %53 : vector<4x1xf32> to vector<4x80xf32>
    %56 = vector.broadcast %54 : vector<1x80xf32> to vector<4x80xf32>
    %57 = arith.mulf %55, %56 : vector<4x80xf32>
    %58 = vector.extract_strided_slice %52 {offsets = [0, 1], sizes = [4, 1], strides = [1, 1]} : vector<4x4xf32> to vector<4x1xf32>
    %59 = vector.extract_strided_slice %1 {offsets = [1, 0], sizes = [1, 80], strides = [1, 1]} : vector<4x80xf32> to vector<1x80xf32>
    %60 = vector.broadcast %58 : vector<4x1xf32> to vector<4x80xf32>
    %61 = vector.broadcast %59 : vector<1x80xf32> to vector<4x80xf32>
    %62 = arith.mulf %60, %61 : vector<4x80xf32>
    %63 = arith.addf %57, %62 : vector<4x80xf32>
    %64 = vector.extract_strided_slice %52 {offsets = [0, 2], sizes = [4, 1], strides = [1, 1]} : vector<4x4xf32> to vector<4x1xf32>
    %65 = vector.extract_strided_slice %1 {offsets = [2, 0], sizes = [1, 80], strides = [1, 1]} : vector<4x80xf32> to vector<1x80xf32>
    %66 = vector.broadcast %64 : vector<4x1xf32> to vector<4x80xf32>
    %67 = vector.broadcast %65 : vector<1x80xf32> to vector<4x80xf32>
    %68 = arith.mulf %66, %67 : vector<4x80xf32>
    %69 = arith.addf %63, %68 : vector<4x80xf32>
    %70 = vector.extract_strided_slice %52 {offsets = [0, 3], sizes = [4, 1], strides = [1, 1]} : vector<4x4xf32> to vector<4x1xf32>
    %71 = vector.extract_strided_slice %1 {offsets = [3, 0], sizes = [1, 80], strides = [1, 1]} : vector<4x80xf32> to vector<1x80xf32>
    %72 = vector.broadcast %70 : vector<4x1xf32> to vector<4x80xf32>
    %73 = vector.broadcast %71 : vector<1x80xf32> to vector<4x80xf32>
    %74 = arith.mulf %72, %73 : vector<4x80xf32>
    %75 = arith.addf %69, %74 : vector<4x80xf32>
    %76 = vector.extract_strided_slice %0 {offsets = [4, 4], sizes = [4, 4], strides = [1, 1]} : vector<8x8xf32> to vector<4x4xf32>
    %77 = vector.extract_strided_slice %76 {offsets = [0, 0], sizes = [4, 1], strides = [1, 1]} : vector<4x4xf32> to vector<4x1xf32>
    %78 = vector.extract_strided_slice %2 {offsets = [0, 0], sizes = [1, 80], strides = [1, 1]} : vector<4x80xf32> to vector<1x80xf32>
    %79 = vector.broadcast %77 : vector<4x1xf32> to vector<4x80xf32>
    %80 = vector.broadcast %78 : vector<1x80xf32> to vector<4x80xf32>
    %81 = arith.mulf %79, %80 : vector<4x80xf32>
    %82 = vector.extract_strided_slice %76 {offsets = [0, 1], sizes = [4, 1], strides = [1, 1]} : vector<4x4xf32> to vector<4x1xf32>
    %83 = vector.extract_strided_slice %2 {offsets = [1, 0], sizes = [1, 80], strides = [1, 1]} : vector<4x80xf32> to vector<1x80xf32>
    %84 = vector.broadcast %82 : vector<4x1xf32> to vector<4x80xf32>
    %85 = vector.broadcast %83 : vector<1x80xf32> to vector<4x80xf32>
    %86 = arith.mulf %84, %85 : vector<4x80xf32>
    %87 = arith.addf %81, %86 : vector<4x80xf32>
    %88 = vector.extract_strided_slice %76 {offsets = [0, 2], sizes = [4, 1], strides = [1, 1]} : vector<4x4xf32> to vector<4x1xf32>
    %89 = vector.extract_strided_slice %2 {offsets = [2, 0], sizes = [1, 80], strides = [1, 1]} : vector<4x80xf32> to vector<1x80xf32>
    %90 = vector.broadcast %88 : vector<4x1xf32> to vector<4x80xf32>
    %91 = vector.broadcast %89 : vector<1x80xf32> to vector<4x80xf32>
    %92 = arith.mulf %90, %91 : vector<4x80xf32>
    %93 = arith.addf %87, %92 : vector<4x80xf32>
    %94 = vector.extract_strided_slice %76 {offsets = [0, 3], sizes = [4, 1], strides = [1, 1]} : vector<4x4xf32> to vector<4x1xf32>
    %95 = vector.extract_strided_slice %2 {offsets = [3, 0], sizes = [1, 80], strides = [1, 1]} : vector<4x80xf32> to vector<1x80xf32>
    %96 = vector.broadcast %94 : vector<4x1xf32> to vector<4x80xf32>
    %97 = vector.broadcast %95 : vector<1x80xf32> to vector<4x80xf32>
    %98 = arith.mulf %96, %97 : vector<4x80xf32>
    %99 = arith.addf %93, %98 : vector<4x80xf32>
    %100 = arith.addf %75, %99 : vector<4x80xf32>
    %cst = arith.constant dense<0.000000e+00> : vector<4xf32>
    %101 = vector.multi_reduction <add>, %51, %cst [1] : vector<4x80xf32> to vector<4xf32>
    %102 = vector.shape_cast %101 : vector<4xf32> to vector<4x1xf32>
    %cst_5 = arith.constant 1.250000e-02 : f32
    %103 = vector.broadcast %cst_5 : f32 to vector<4x1xf32>
    %104 = arith.mulf %102, %103 : vector<4x1xf32>
    %105 = vector.broadcast %104 : vector<4x1xf32> to vector<4x80xf32>
    %106 = arith.subf %51, %105 : vector<4x80xf32>
    %107 = arith.mulf %106, %106 : vector<4x80xf32>
    %cst_6 = arith.constant dense<0.000000e+00> : vector<4xf32>
    %108 = vector.multi_reduction <add>, %107, %cst_6 [1] : vector<4x80xf32> to vector<4xf32>
    %109 = vector.shape_cast %108 : vector<4xf32> to vector<4x1xf32>
    %cst_7 = arith.constant 1.250000e-02 : f32
    %110 = vector.broadcast %cst_7 : f32 to vector<4x1xf32>
    %111 = arith.mulf %109, %110 : vector<4x1xf32>
    %c0_8 = arith.constant 0 : index
    %c0_9 = arith.constant 0 : index
    %112 = vector.load %arg4[%c0_8, %c0_9] : memref<4x1xf32, #tpu.memory_space<vmem>>, vector<4x1xf32>
    %cst_10 = arith.constant 9.99999974E-6 : f32
    %113 = vector.broadcast %cst_10 : f32 to vector<4x1xf32>
    %114 = arith.addf %111, %113 : vector<4x1xf32>
    %115 = math.rsqrt %114 : vector<4x1xf32>
    %116 = arith.mulf %112, %115 : vector<4x1xf32>
    %c0_11 = arith.constant 0 : index
    %c0_12 = arith.constant 0 : index
    %117 = vector.load %arg5[%c0_11, %c0_12] : memref<4x1xf32, #tpu.memory_space<vmem>>, vector<4x1xf32>
    %118 = arith.mulf %104, %116 : vector<4x1xf32>
    %119 = arith.subf %117, %118 : vector<4x1xf32>
    %120 = vector.broadcast %116 : vector<4x1xf32> to vector<4x80xf32>
    %121 = arith.mulf %51, %120 : vector<4x80xf32>
    %122 = vector.broadcast %119 : vector<4x1xf32> to vector<4x80xf32>
    %123 = arith.addf %121, %122 : vector<4x80xf32>
    %cst_13 = arith.constant 0.000000e+00 : f32
    %124 = vector.broadcast %cst_13 : f32 to vector<4x80xf32>
    %125 = arith.maximumf %123, %124 : vector<4x80xf32>
    %c0_14 = arith.constant 0 : index
    %c0_15 = arith.constant 0 : index
    %126 = vector.load %arg8[%c0_14, %c0_15] : memref<4x80xf32, #tpu.memory_space<vmem>>, vector<4x80xf32>
    tpu.vector_store %arg8[%c0_14, %c0_15], %125 {strides = array<i32>} : memref<4x80xf32, #tpu.memory_space<vmem>>, vector<4x80xf32>,
    %cst_16 = arith.constant dense<0.000000e+00> : vector<4xf32>
    %127 = vector.multi_reduction <add>, %100, %cst_16 [1] : vector<4x80xf32> to vector<4xf32>
    %128 = vector.shape_cast %127 : vector<4xf32> to vector<4x1xf32>
    %cst_17 = arith.constant 1.250000e-02 : f32
    %129 = vector.broadcast %cst_17 : f32 to vector<4x1xf32>
    %130 = arith.mulf %128, %129 : vector<4x1xf32>
    %131 = vector.broadcast %130 : vector<4x1xf32> to vector<4x80xf32>
    %132 = arith.subf %100, %131 : vector<4x80xf32>
    %133 = arith.mulf %132, %132 : vector<4x80xf32>
    %cst_18 = arith.constant dense<0.000000e+00> : vector<4xf32>
    %134 = vector.multi_reduction <add>, %133, %cst_18 [1] : vector<4x80xf32> to vector<4xf32>
    %135 = vector.shape_cast %134 : vector<4xf32> to vector<4x1xf32>
    %cst_19 = arith.constant 1.250000e-02 : f32
    %136 = vector.broadcast %cst_19 : f32 to vector<4x1xf32>
    %137 = arith.mulf %135, %136 : vector<4x1xf32>
    %c0_20 = arith.constant 0 : index
    %c0_21 = arith.constant 0 : index
    %138 = vector.load %arg6[%c0_20, %c0_21] : memref<4x1xf32, #tpu.memory_space<vmem>>, vector<4x1xf32>
    %cst_22 = arith.constant 9.99999974E-6 : f32
    %139 = vector.broadcast %cst_22 : f32 to vector<4x1xf32>
    %140 = arith.addf %137, %139 : vector<4x1xf32>
    %141 = math.rsqrt %140 : vector<4x1xf32>
    %142 = arith.mulf %138, %141 : vector<4x1xf32>
    %c0_23 = arith.constant 0 : index
    %c0_24 = arith.constant 0 : index
    %143 = vector.load %arg7[%c0_23, %c0_24] : memref<4x1xf32, #tpu.memory_space<vmem>>, vector<4x1xf32>
    %144 = arith.mulf %130, %142 : vector<4x1xf32>
    %145 = arith.subf %143, %144 : vector<4x1xf32>
    %146 = vector.broadcast %142 : vector<4x1xf32> to vector<4x80xf32>
    %147 = arith.mulf %100, %146 : vector<4x80xf32>
    %148 = vector.broadcast %145 : vector<4x1xf32> to vector<4x80xf32>
    %149 = arith.addf %147, %148 : vector<4x80xf32>
    %cst_25 = arith.constant 0.000000e+00 : f32
    %150 = vector.broadcast %cst_25 : f32 to vector<4x80xf32>
    %151 = arith.maximumf %149, %150 : vector<4x80xf32>
    %c0_26 = arith.constant 0 : index
    %c0_27 = arith.constant 0 : index
    %152 = vector.load %arg9[%c0_26, %c0_27] : memref<4x80xf32, #tpu.memory_space<vmem>>, vector<4x80xf32>
    tpu.vector_store %arg9[%c0_26, %c0_27], %151 {strides = array<i32>} : memref<4x80xf32, #tpu.memory_space<vmem>>, vector<4x80xf32>,
    return
  }
  func.func @transform_0(%arg0: i32) -> (i32, i32) {
    %c0_i32 = arith.constant 0 : i32
    %c0_i32_0 = arith.constant 0 : i32
    %c0_i32_1 = arith.constant 0 : i32
    return %c0_i32, %c0_i32_0 : i32, i32
  }
  func.func @transform_1(%arg0: i32) -> (i32, i32) {
    %c0_i32 = arith.constant 0 : i32
    %c0_i32_0 = arith.constant 0 : i32
    %c0_i32_1 = arith.constant 0 : i32
    return %c0_i32, %c0_i32_0 : i32, i32
  }
  func.func @transform_2(%arg0: i32) -> (i32, i32) {
    %c0_i32 = arith.constant 0 : i32
    %c0_i32_0 = arith.constant 0 : i32
    %c0_i32_1 = arith.constant 0 : i32
    return %c0_i32, %c0_i32_0 : i32, i32
  }
  func.func @transform_3(%arg0: i32) -> (i32, i32) {
    %c0_i32 = arith.constant 0 : i32
    %c0_i32_0 = arith.constant 0 : i32
    %c0_i32_1 = arith.constant 0 : i32
    return %c0_i32, %c0_i32_0 : i32, i32
  }
  func.func @transform_4(%arg0: i32) -> (i32, i32) {
    %c0_i32 = arith.constant 0 : i32
    %c0_i32_0 = arith.constant 0 : i32
    %c0_i32_1 = arith.constant 0 : i32
    return %c0_i32, %c0_i32_0 : i32, i32
  }
  func.func @transform_5(%arg0: i32) -> (i32, i32) {
    %c0_i32 = arith.constant 0 : i32
    %c0_i32_0 = arith.constant 0 : i32
    %c0_i32_1 = arith.constant 0 : i32
    return %c0_i32, %c0_i32_0 : i32, i32
  }
  func.func @transform_6(%arg0: i32) -> (i32, i32) {
    %c0_i32 = arith.constant 0 : i32
    %c0_i32_0 = arith.constant 0 : i32
    %c0_i32_1 = arith.constant 0 : i32
    return %c0_i32, %c0_i32_0 : i32, i32
  }
  func.func @transform_7(%arg0: i32) -> (i32, i32) {
    %c0_i32 = arith.constant 0 : i32
    %c0_i32_0 = arith.constant 0 : i32
    %c0_i32_1 = arith.constant 0 : i32
    return %c0_i32, %c0_i32_0 : i32, i32
  }
  func.func @transform_8(%arg0: i32) -> (i32, i32) {
    %c0_i32 = arith.constant 0 : i32
    %c0_i32_0 = arith.constant 0 : i32
    %c0_i32_1 = arith.constant 0 : i32
    return %c0_i32, %c0_i32_0 : i32, i32
  }
}

module attributes {stable_mosaic.version = 11 : i64} {
  func.func @_add3_conv_kernel(%arg0: i32, %arg1: memref<4x512xf32, #tpu.memory_space<vmem>>, %arg2: memref<4x512xf32, #tpu.memory_space<vmem>>, %arg3: memref<4x512xf32, #tpu.memory_space<vmem>>, %arg4: memref<8x4xf32, #tpu.memory_space<vmem>>, %arg5: memref<8x512xf32, #tpu.memory_space<vmem>>) attributes {dimension_semantics = [#tpu.dimension_semantics<parallel>], iteration_bounds = array<i64: 1>, scalar_prefetch = 0 : i64, scratch_operands = 0 : i64, tpu.core_type = #tpu.core_type<tc>, window_params = [{transform_indices = @transform_0, window_bounds = array<i64: 4, 512>}, {transform_indices = @transform_1, window_bounds = array<i64: 4, 512>}, {transform_indices = @transform_2, window_bounds = array<i64: 4, 512>}, {pipeline_mode = #tpu.pipeline_mode<synchronous>, transform_indices = @transform_3, window_bounds = array<i64: 8, 4>}, {transform_indices = @transform_4, window_bounds = array<i64: 8, 512>}]} {
    %c0 = arith.constant 0 : index
    %c0_0 = arith.constant 0 : index
    %0 = vector.load %arg4[%c0, %c0_0] : memref<8x4xf32, #tpu.memory_space<vmem>>, vector<8x4xf32>
    %c0_1 = arith.constant 0 : index
    %c0_2 = arith.constant 0 : index
    %1 = vector.load %arg1[%c0_1, %c0_2] : memref<4x512xf32, #tpu.memory_space<vmem>>, vector<4x512xf32>
    %c0_3 = arith.constant 0 : index
    %c0_4 = arith.constant 0 : index
    %2 = vector.load %arg2[%c0_3, %c0_4] : memref<4x512xf32, #tpu.memory_space<vmem>>, vector<4x512xf32>
    %3 = arith.addf %1, %2 : vector<4x512xf32>
    %c0_5 = arith.constant 0 : index
    %c0_6 = arith.constant 0 : index
    %4 = vector.load %arg3[%c0_5, %c0_6] : memref<4x512xf32, #tpu.memory_space<vmem>>, vector<4x512xf32>
    %5 = arith.addf %3, %4 : vector<4x512xf32>
    %6 = vector.extract_strided_slice %0 {offsets = [0, 0], sizes = [8, 1], strides = [1, 1]} : vector<8x4xf32> to vector<8x1xf32>
    %7 = vector.extract_strided_slice %5 {offsets = [0, 0], sizes = [1, 512], strides = [1, 1]} : vector<4x512xf32> to vector<1x512xf32>
    %8 = vector.broadcast %6 : vector<8x1xf32> to vector<8x512xf32>
    %9 = vector.broadcast %7 : vector<1x512xf32> to vector<8x512xf32>
    %10 = arith.mulf %8, %9 : vector<8x512xf32>
    %11 = vector.extract_strided_slice %0 {offsets = [0, 1], sizes = [8, 1], strides = [1, 1]} : vector<8x4xf32> to vector<8x1xf32>
    %12 = vector.extract_strided_slice %5 {offsets = [1, 0], sizes = [1, 512], strides = [1, 1]} : vector<4x512xf32> to vector<1x512xf32>
    %13 = vector.broadcast %11 : vector<8x1xf32> to vector<8x512xf32>
    %14 = vector.broadcast %12 : vector<1x512xf32> to vector<8x512xf32>
    %15 = arith.mulf %13, %14 : vector<8x512xf32>
    %16 = arith.addf %10, %15 : vector<8x512xf32>
    %17 = vector.extract_strided_slice %0 {offsets = [0, 2], sizes = [8, 1], strides = [1, 1]} : vector<8x4xf32> to vector<8x1xf32>
    %18 = vector.extract_strided_slice %5 {offsets = [2, 0], sizes = [1, 512], strides = [1, 1]} : vector<4x512xf32> to vector<1x512xf32>
    %19 = vector.broadcast %17 : vector<8x1xf32> to vector<8x512xf32>
    %20 = vector.broadcast %18 : vector<1x512xf32> to vector<8x512xf32>
    %21 = arith.mulf %19, %20 : vector<8x512xf32>
    %22 = arith.addf %16, %21 : vector<8x512xf32>
    %23 = vector.extract_strided_slice %0 {offsets = [0, 3], sizes = [8, 1], strides = [1, 1]} : vector<8x4xf32> to vector<8x1xf32>
    %24 = vector.extract_strided_slice %5 {offsets = [3, 0], sizes = [1, 512], strides = [1, 1]} : vector<4x512xf32> to vector<1x512xf32>
    %25 = vector.broadcast %23 : vector<8x1xf32> to vector<8x512xf32>
    %26 = vector.broadcast %24 : vector<1x512xf32> to vector<8x512xf32>
    %27 = arith.mulf %25, %26 : vector<8x512xf32>
    %28 = arith.addf %22, %27 : vector<8x512xf32>
    %c0_7 = arith.constant 0 : index
    %c0_8 = arith.constant 0 : index
    %29 = vector.load %arg5[%c0_7, %c0_8] : memref<8x512xf32, #tpu.memory_space<vmem>>, vector<8x512xf32>
    tpu.vector_store %arg5[%c0_7, %c0_8], %28 {strides = array<i32>} : memref<8x512xf32, #tpu.memory_space<vmem>>, vector<8x512xf32>,
    return
  }
  func.func @transform_0(%arg0: i32) -> (i32, i32) {
    %c0_i32 = arith.constant 0 : i32
    %c0_i32_0 = arith.constant 0 : i32
    return %c0_i32, %arg0 : i32, i32
  }
  func.func @transform_1(%arg0: i32) -> (i32, i32) {
    %c0_i32 = arith.constant 0 : i32
    %c0_i32_0 = arith.constant 0 : i32
    return %c0_i32, %arg0 : i32, i32
  }
  func.func @transform_2(%arg0: i32) -> (i32, i32) {
    %c0_i32 = arith.constant 0 : i32
    %c0_i32_0 = arith.constant 0 : i32
    return %c0_i32, %arg0 : i32, i32
  }
  func.func @transform_3(%arg0: i32) -> (i32, i32) {
    %c0_i32 = arith.constant 0 : i32
    %c0_i32_0 = arith.constant 0 : i32
    %c0_i32_1 = arith.constant 0 : i32
    return %c0_i32, %c0_i32_0 : i32, i32
  }
  func.func @transform_4(%arg0: i32) -> (i32, i32) {
    %c0_i32 = arith.constant 0 : i32
    %c0_i32_0 = arith.constant 0 : i32
    return %c0_i32, %arg0 : i32, i32
  }
}

</mosaic_0001>

<bundles_post_ra>
// kernel: ffc_forward.4
= control target key start
LH: loop header
LB: loop body
LE: loop exit
PB: predicated region body
PF: predicated region fallthrough
CT: control target
= control target key end

     0   :  { %v247_v0 = vmov 0   ;;  %v248_v2 = vmov 2   ;;  %v249_v3 = vmov 1   ;;  %v250_v4 = vmov 3   ;;  %s313_s1 = inlined_call_operand.vmem [shape: f32[4,4], index: 1, kind: input, shape index: {}]   ;;  %s314_s0 = inlined_call_operand.vmem [shape: f32[4,512], index: 0, kind: input, shape index: {}]   ;;  %s315_s2 = inlined_call_operand.vmem [shape: f32[4,512], index: 2, kind: output, shape index: {}]  }
   0x1   :  { %226 = vset.pattern.permute.xlu0 %v247_v0  ;;  %v11_v1 = vld [vmem:[%s313_s1] sm:$0xf]  ;;  %228 = vset.pattern.permute.xlu1 %v248_v2  ;;  %v13_v6 = vld [vmem:[%s314_s0 + $0x8] sm:$0xff]  ;;  %vm211_vm4 = vcmask 1043456  }
   0x2   :  { %16 = vperm.xlu0 %226, %v11_v1   ;;  %62 = vperm.xlu1 %228, %v11_v1   ;;  %v12_v5 = vld [vmem:[%s314_s0] sm:$0xff]  ;;  %v23_v10 = vperm.slane %v13_v6, 0  ;;  %v24_v11 = vperm.slane %v13_v6, 4  ;;  %v67_v15 = vperm.slane %v13_v6, 2  ;;  %v68_v16 = vperm.slane %v13_v6, 6 }
   0x3   :  { %v21_v8 = vperm.slane %v12_v5, 0  ;;  %v22_v9 = vperm.slane %v12_v5, 4  ;;  %v65_v13 = vperm.slane %v12_v5, 2  ;;  %v66_v14 = vperm.slane %v12_v5, 6 }
   0x4   :  { %v41_v17 = vperm.slane %v12_v5, 1  ;;  %v42_v18 = vperm.slane %v12_v5, 5  ;;  %v43_v19 = vperm.slane %v13_v6, 1  ;;  %v44_v20 = vperm.slane %v13_v6, 5 }
   0x5   :  { %v89_v21 = vperm.slane %v12_v5, 3  ;;  %v90_v22 = vperm.slane %v12_v5, 7  ;;  %v91_v23 = vperm.slane %v13_v6, 3  ;;  %v92_v24 = vperm.slane %v13_v6, 7 }
   0x6   :  { %v29_v25 = vperm.slane %v21_v8, 0  ;;  %v30_v26 = vperm.slane %v22_v9, 0  ;;  %v31_v27 = vperm.slane %v23_v10, 0  ;;  %v32_v28 = vperm.slane %v24_v11, 0 }
   0x7   :  { %v73_v29 = vperm.slane %v65_v13, 2  ;;  %v74_v30 = vperm.slane %v66_v14, 2  ;;  %v75_v31 = vperm.slane %v67_v15, 2  ;;  %v76_v32 = vperm.slane %v68_v16, 2 }
   0x8   :  { %v49_v33 = vperm.slane %v41_v17, 1  ;;  %v50_v34 = vperm.slane %v42_v18, 1  ;;  %v51_v35 = vperm.slane %v43_v19, 1  ;;  %v52_v36 = vperm.slane %v44_v20, 1 }
   0x9   :  { %v97_v37 = vperm.slane %v89_v21, 3  ;;  %v98_v38 = vperm.slane %v90_v22, 3  ;;  %v99_v39 = vperm.slane %v91_v23, 3  ;;  %v100_v40 = vperm.slane %v92_v24, 3 }
   0xa   :  { %227 = vset.pattern.permute.xlu0 %v249_v3  ;;  %229 = vset.pattern.permute.xlu1 %v250_v4 }
   0xb   :  { %38 = vperm.xlu0 %227, %v11_v1   ;;  %86 = vperm.xlu1 %229, %v11_v1  }
  0x13   :  { %230 = vset.pattern.permute.xlu0 %v250_v4 }
  0x74   :  { %v17_v7 = vpop.permute.xlu0 %16  ;;  %v63_v12 = vpop.permute.xlu1 %62 }
  0x75   :  { %v33_v41 = vmul.f32 %v29_v25, %v17_v7  ;;  %v34_v42 = vmul.f32 %v30_v26, %v17_v7  ;;  %v35_v43 = vmul.f32 %v31_v27, %v17_v7  ;;  %v36_v44 = vmul.f32 %v32_v28, %v17_v7 }
  0x76   :  { %v77_v45 = vmul.f32 %v73_v29, %v63_v12  ;;  %v78_v46 = vmul.f32 %v74_v30, %v63_v12  ;;  %v79_v47 = vmul.f32 %v75_v31, %v63_v12  ;;  %v80_v48 = vmul.f32 %v76_v32, %v63_v12 }
  0x7d   :  { %v39_v49 = vpop.permute.xlu0 %38  ;;  %v87_v50 = vpop.permute.xlu1 %86 }
  0x7e   :  { %v53_v51 = vmul.f32 %v49_v33, %v39_v49  ;;  %v54_v52 = vmul.f32 %v50_v34, %v39_v49  ;;  %v55_v53 = vmul.f32 %v51_v35, %v39_v49  ;;  %v56_v54 = vmul.f32 %v52_v36, %v39_v49 }
  0x7f   :  { %v101_v55 = vmul.f32 %v97_v37, %v87_v50  ;;  %v102_v56 = vmul.f32 %v98_v38, %v87_v50  ;;  %v103_v57 = vmul.f32 %v99_v39, %v87_v50  ;;  %v104_v58 = vmul.f32 %v100_v40, %v87_v50 }
  0x80   :  { %v57_v59 = vadd.f32 %v53_v51, %v33_v41  ;;  %v58_v60 = vadd.f32 %v54_v52, %v34_v42  ;;  %v59_v61 = vadd.f32 %v55_v53, %v35_v43  ;;  %v60_v62 = vadd.f32 %v56_v54, %v36_v44 }
  0x82   :  { %v81_v63 = vadd.f32 %v77_v45, %v57_v59  ;;  %v82_v0 = vadd.f32 %v78_v46, %v58_v60  ;;  %v83_v1 = vadd.f32 %v79_v47, %v59_v61  ;;  %v84_v2 = vadd.f32 %v80_v48, %v60_v62 }
  0x84   :  { %v275_v3 = vadd.f32 %v101_v55, %v81_v63  ;;  %v277_v4 = vadd.f32 %v102_v56, %v82_v0  ;;  %v279_v5 = vadd.f32 %v103_v57, %v83_v1  ;;  %v281_v6 = vadd.f32 %v104_v58, %v84_v2 }
  0x86   :  { %v284_v7 = vmul.f32 0.70710677, %v275_v3  ;;  %v287_v8 = vmul.f32 0.70710677, %v277_v4  ;;  %v290_v9 = vmul.f32 0.70710677, %v279_v5 }
  0x87   :  { %v293_v10 = vmul.f32 0.70710677, %v281_v6 }
  0x88   :  { %v113_v11 = vand.u32 2147483647, %v284_v7  ;;  %v114_v12 = vand.u32 2147483647, %v287_v8  ;;  %v115_v13 = vand.u32 2147483647, %v290_v9 }
  0x89   :  { %v116_v14 = vand.u32 2147483647, %v293_v10  ;;  %vm189_vm0 = vcmp.ge.f32.partialorder %v284_v7, 0.0  ;;  %vm190_vm1 = vcmp.ge.f32.partialorder %v287_v8, 0.0  ;;  %vm191_vm2 = vcmp.ge.f32.partialorder %v290_v9, 0.0 }
  0x8a   :  { %v117_v15 = vmul.f32 0.3275911, %v113_v11  ;;  %v118_v16 = vmul.f32 0.3275911, %v114_v12  ;;  %v119_v17 = vmul.f32 0.3275911, %v115_v13 }
  0x8b   :  { %v120_v18 = vmul.f32 0.3275911, %v116_v14  ;;  %v165_v24 = vsub.f32 0.0, %v113_v11  ;;  %v166_v27 = vsub.f32 0.0, %v114_v12  ;;  %v167_v30 = vsub.f32 0.0, %v115_v13 }
  0x8c   :  { %v121_v19 = vadd.f32 1.0, %v117_v15  ;;  %v122_v20 = vadd.f32 1.0, %v118_v16  ;;  %v123_v21 = vadd.f32 1.0, %v119_v17  ;;  %v168_v34 = vsub.f32 0.0, %v116_v14 }
  0x8d   :  { %v124_v22 = vadd.f32 1.0, %v120_v18  ;;  %v169_v37 = vmul.f32 %v165_v24, %v113_v11  ;;  %v170_v40 = vmul.f32 %v166_v27, %v114_v12  ;;  %v171_v43 = vmul.f32 %v167_v30, %v115_v13 }
  0x8e   :  { %231 = vrcp.f32 %v121_v19  ;;  %v172_v46 = vmul.f32 %v168_v34, %v116_v14  ;;  %vm192_vm3 = vcmp.ge.f32.partialorder %v293_v10, 0.0  ;;  %v187_v7 = vmul.f32 0.5, %v279_v5 }
  0x8f   :  { %233 = vrcp.f32 %v122_v20  ;;  %v173_v49 = vmul.f32 1.442695, %v169_v37  ;;  %v175_v52 = vmul.f32 1.442695, %v170_v40  ;;  %v177_v55 = vmul.f32 1.442695, %v171_v43 }
  0x90   :  { %235 = vrcp.f32 %v123_v21  ;;  %v179_v58 = vmul.f32 1.442695, %v172_v46 }
  0x91   :  { %237 = vrcp.f32 %v124_v22 }
  0x92   :  { %239 = vpow2.f32 %v173_v49 }
  0x93   :  { %241 = vpow2.f32 %v175_v52 }
  0x94   :  { %v232_v23 = vpop.eup %231  ;;  %243 = vpow2.f32 %v177_v55 }
  0x95   :  { %v234_v25 = vpop.eup %233  ;;  %v129_v26 = vmul.f32 1.0614054, %v232_v23  ;;  %245 = vpow2.f32 %v179_v58 }
  0x96   :  { %v236_v28 = vpop.eup %235  ;;  %v130_v29 = vmul.f32 1.0614054, %v234_v25 }
  0x97   :  { %v238_v31 = vpop.eup %237  ;;  %v131_v32 = vmul.f32 1.0614054, %v236_v28  ;;  %v133_v33 = vadd.f32 -1.4531521, %v129_v26 }
  0x98   :  { %v132_v35 = vmul.f32 1.0614054, %v238_v31  ;;  %v134_v36 = vadd.f32 -1.4531521, %v130_v29  ;;  %v240_v15 = vpop.eup %239 }
  0x99   :  { %v135_v38 = vadd.f32 -1.4531521, %v131_v32  ;;  %v137_v39 = vmul.f32 %v232_v23, %v133_v33  ;;  %v242_v18 = vpop.eup %241  ;;  %v186_v33 = vmul.f32 0.5, %v277_v4 }
  0x9a   :  { %v136_v41 = vadd.f32 -1.4531521, %v132_v35  ;;  %v138_v42 = vmul.f32 %v234_v25, %v134_v36  ;;  %v244_v21 = vpop.eup %243 }
  0x9b   :  { %v139_v44 = vmul.f32 %v236_v28, %v135_v38  ;;  %v141_v45 = vadd.f32 1.4214138, %v137_v39  ;;  %v246_v26 = vpop.eup %245 }
  0x9c   :  { %v140_v47 = vmul.f32 %v238_v31, %v136_v41  ;;  %v142_v48 = vadd.f32 1.4214138, %v138_v42 }
  0x9d   :  { %v143_v50 = vadd.f32 1.4214138, %v139_v44  ;;  %v145_v51 = vmul.f32 %v232_v23, %v141_v45 }
  0x9e   :  { %v144_v53 = vadd.f32 1.4214138, %v140_v47  ;;  %v146_v54 = vmul.f32 %v234_v25, %v142_v48 }
  0x9f   :  { %v147_v56 = vmul.f32 %v236_v28, %v143_v50  ;;  %v149_v57 = vadd.f32 -0.28449672, %v145_v51 }
  0xa0   :  { %v148_v59 = vmul.f32 %v238_v31, %v144_v53  ;;  %v150_v60 = vadd.f32 -0.28449672, %v146_v54 }
  0xa1   :  { %v151_v61 = vadd.f32 -0.28449672, %v147_v56  ;;  %v153_v62 = vmul.f32 %v232_v23, %v149_v57 }
  0xa2   :  { %v152_v63 = vadd.f32 -0.28449672, %v148_v59  ;;  %v154_v0 = vmul.f32 %v234_v25, %v150_v60 }
  0xa3   :  { %v155_v1 = vmul.f32 %v236_v28, %v151_v61  ;;  %v157_v2 = vadd.f32 0.2548296, %v153_v62 }
  0xa4   :  { %v156_v11 = vmul.f32 %v238_v31, %v152_v63  ;;  %v158_v12 = vadd.f32 0.2548296, %v154_v0 }
  0xa5   :  { %v159_v13 = vadd.f32 0.2548296, %v155_v1  ;;  %v161_v14 = vmul.f32 %v232_v23, %v157_v2 }
  0xa6   :  { %v160_v16 = vadd.f32 0.2548296, %v156_v11  ;;  %v162_v17 = vmul.f32 %v234_v25, %v158_v12  ;;  %v185_v25 = vmul.f32 0.5, %v275_v3 }
  0xa7   :  { %v163_v19 = vmul.f32 %v236_v28, %v159_v13  ;;  %v181_v20 = vmul.f32 %v240_v15, %v161_v14 }
  0xa8   :  { %v164_v22 = vmul.f32 %v238_v31, %v160_v16  ;;  %v182_v24 = vmul.f32 %v242_v18, %v162_v17  ;;  %v188_v31 = vmul.f32 0.5, %v281_v6 }
  0xa9   :  { %v183_v27 = vmul.f32 %v244_v21, %v163_v19  ;;  %v193_v29 = vsub.f32 2.0, %v181_v20 }
  0xaa   :  { %v184_v30 = vmul.f32 %v246_v26, %v164_v22  ;;  %v194_v32 = vsub.f32 2.0, %v182_v24 }
  0xab   :  { %v195_v23 = vsub.f32 2.0, %v183_v27  ;;  %v197_v28 = vsel %vm189_vm0, %v193_v29, %v181_v20 }
  0xac   :  { %v196_v34 = vsub.f32 2.0, %v184_v30  ;;  %v198_v35 = vsel %vm190_vm1, %v194_v32, %v182_v24  ;;  %v201_v38 = vmul.f32 %v197_v28, %v185_v25 }
  0xad   :  { %v202_v36 = vmul.f32 %v198_v35, %v186_v33  ;;  %v199_v37 = vsel %vm191_vm2, %v195_v23, %v183_v27 }
  0xae   :  { %v200_v4 = vsel %vm192_vm3, %v196_v34, %v184_v30  ;;  %v203_v40 = vmul.f32 %v199_v37, %v187_v7 }
  0xaf   :  { %v204_v8 = vmul.f32 %v200_v4, %v188_v31  ;;  %v209_v39 = vrot.slane %v202_v36, 4 }
  0xb1   :  { %v210_v3 = vrot.slane %v204_v8, 4  ;;  %v212_v41 = vsel %vm211_vm4, %v201_v38, %v209_v39 }
  0xb2   :  { %216 = vst [vmem:[%s315_s2] sm:$0xff] %v212_v41 }
  0xb3   :  { %v213_v6 = vsel %vm211_vm4, %v203_v40, %v210_v3 }
  0xb4   :  { %217 = vst [vmem:[%s315_s2 + $0x8] sm:$0xff] %v213_v6 }

// kernel: reverse.0
= control target key start
LH: loop header
LB: loop body
LE: loop exit
PB: predicated region body
PF: predicated region fallthrough
CT: control target
= control target key end

     0   :  { %v72_v3 = vlaneseq  ;;  %v65_v6 = vld [vmem:[#allocation0 + $0x7] ss:$-1 sm:$0xff]  ;;  %v79_v8 = vld [vmem:[#allocation0 + $0x17] ss:$-1 sm:$0xff]  ;;  %s331_s0 = inlined_call_operand.vmem [shape: f32[4,2,16,7], index: 0, kind: input, shape index: {}]   ;;  %s332_s1 = inlined_call_operand.vmem [shape: f32[4,2,16,7], index: 1, kind: output, shape index: {}]  }
   0x1   :  { %v45_v0 = vld [vmem:[%s331_s0] sm:$0xff]  ;;  %v47_v1 = vld [vmem:[%s331_s0 + $0x8] sm:$0xff]  ;;  %v49_v2 = vld [vmem:[%s331_s0 + $0x10] sm:$0xff]  ;;  %v66_v12 = vrot.slane %v65_v6, 1  ;;  %v80_v13 = vrot.slane %v79_v8, 1 }
   0x2   :  { %46 = vst [vmem:[#allocation0 + $0x8] sm:$0xff] %v45_v0  ;;  %v51_v4 = vld [vmem:[%s331_s0 + $0x18] sm:$0xff]  ;;  %v53_v5 = vld [vmem:[%s331_s0 + $0x20] sm:$0xff]  ;;  %v55_v7 = vld [vmem:[%s331_s0 + $0x28] sm:$0xff]  ;;  %v73_v10 = vshrl.u32 %v72_v3, 7 }
   0x3   :  { %48 = vst [vmem:[#allocation0 + $0x18] sm:$0xff] %v47_v1  ;;  %v57_v9 = vld [vmem:[%s331_s0 + $0x30] sm:$0xff]  ;;  %v59_v11 = vld [vmem:[%s331_s0 + $0x38] sm:$0xff]  ;;  %v93_v14 = vld [vmem:[#allocation0 + $0x27] ss:$-1 sm:$0xff] }
   0x4   :  { %50 = vst [vmem:[#allocation0 + $0x28] sm:$0xff] %v49_v2  ;;  %vm74_vm0 = vcmp.lt.s32.totalorder %v73_v10, 7  ;;  %v107_v16 = vld [vmem:[#allocation0 + $0x37] ss:$-1 sm:$0xff]  ;;  %v94_v19 = vrot.slane %v93_v14, 1 }
   0x5   :  { %52 = vst [vmem:[#allocation0 + $0x38] sm:$0xff] %v51_v4  ;;  %v121_v22 = vld [vmem:[#allocation0 + $0x47] ss:$-1 sm:$0xff]  ;;  %v108_v24 = vrot.slane %v107_v16, 1  ;;  %v135_v28 = vld [vmem:[#allocation0 + $0x57] ss:$-1 sm:$0xff] }
   0x6   :  { %54 = vst [vmem:[#allocation0 + $0x48] sm:$0xff] %v53_v5  ;;  %v122_v29 = vrot.slane %v121_v22, 1  ;;  %v149_v32 = vld [vmem:[#allocation0 + $0x67] ss:$-1 sm:$0xff]  ;;  %v136_v33 = vrot.slane %v135_v28, 1 }
   0x7   :  { %56 = vst [vmem:[#allocation0 + $0x58] sm:$0xff] %v55_v7  ;;  %v163_v36 = vld [vmem:[#allocation0 + $0x77] ss:$-1 sm:$0xff]  ;;  %v150_v37 = vrot.slane %v149_v32, 1 }
   0x8   :  { %58 = vst [vmem:[#allocation0 + $0x68] sm:$0xff] %v57_v9  ;;  %v164_v40 = vrot.slane %v163_v36, 1 }
   0x9   :  { %60 = vst [vmem:[#allocation0 + $0x78] sm:$0xff] %v59_v11  ;;  %v70_v15 = vld [vmem:[#allocation0 + $0xf] ss:$-1 sm:$0xff] }
   0xa   :  { %67 = vst [vmem:[#allocation1] sm:$0xff] %v66_v12  ;;  %v71_v17 = vrot.slane %v70_v15, 1  ;;  %v84_v18 = vld [vmem:[#allocation0 + $0x1f] ss:$-1 sm:$0xff] }
   0xb   :  { %81 = vst [vmem:[#allocation1 + $0x8] sm:$0xff] %v80_v13  ;;  %v85_v20 = vrot.slane %v84_v18, 1  ;;  %v98_v21 = vld [vmem:[#allocation0 + $0x2f] ss:$-1 sm:$0xff] }
   0xc   :  { %75 = vst.msk [vmem:[#allocation1] sm:$0xff] %vm74_vm0, %v71_v17  ;;  %v99_v23 = vrot.slane %v98_v21, 1  ;;  %v112_v25 = vld [vmem:[#allocation0 + $0x3f] ss:$-1 sm:$0xff] }
   0xd   :  { %89 = vst.msk [vmem:[#allocation1 + $0x8] sm:$0xff] %vm74_vm0, %v85_v20  ;;  %v113_v26 = vrot.slane %v112_v25, 1  ;;  %v126_v27 = vld [vmem:[#allocation0 + $0x4f] ss:$-1 sm:$0xff] }
   0xe   :  { %95 = vst [vmem:[#allocation1 + $0x10] sm:$0xff] %v94_v19  ;;  %v140_v30 = vld [vmem:[#allocation0 + $0x5f] ss:$-1 sm:$0xff]  ;;  %v127_v31 = vrot.slane %v126_v27, 1 }
   0xf   :  { %103 = vst.msk [vmem:[#allocation1 + $0x10] sm:$0xff] %vm74_vm0, %v99_v23  ;;  %v154_v34 = vld [vmem:[#allocation0 + $0x6f] ss:$-1 sm:$0xff]  ;;  %v141_v35 = vrot.slane %v140_v30, 1 }
  0x10   :  { %109 = vst [vmem:[#allocation1 + $0x18] sm:$0xff] %v108_v24  ;;  %v168_v38 = vld [vmem:[#allocation0 + $0x7f] ss:$-1 sm:$0xff]  ;;  %v155_v39 = vrot.slane %v154_v34, 1 }
  0x11   :  { %117 = vst.msk [vmem:[#allocation1 + $0x18] sm:$0xff] %vm74_vm0, %v113_v26  ;;  %v169_v41 = vrot.slane %v168_v38, 1 }
  0x12   :  { %123 = vst [vmem:[#allocation1 + $0x20] sm:$0xff] %v122_v29 }
  0x13   :  { %131 = vst.msk [vmem:[#allocation1 + $0x20] sm:$0xff] %vm74_vm0, %v127_v31  ;;  %v216_v42 = vld [vmem:[#allocation1] sm:$0xff] }
  0x14   :  { %137 = vst [vmem:[#allocation1 + $0x28] sm:$0xff] %v136_v33  ;;  %v218_v43 = vld [vmem:[#allocation1 + $0x8] sm:$0xff] }
  0x15   :  { %145 = vst.msk [vmem:[#allocation1 + $0x28] sm:$0xff] %vm74_vm0, %v141_v35 }
  0x16   :  { %151 = vst [vmem:[#allocation1 + $0x30] sm:$0xff] %v150_v37  ;;  %v220_v44 = vld [vmem:[#allocation1 + $0x10] sm:$0xff] }
  0x17   :  { %159 = vst.msk [vmem:[#allocation1 + $0x30] sm:$0xff] %vm74_vm0, %v155_v39 }
  0x18   :  { %165 = vst [vmem:[#allocation1 + $0x38] sm:$0xff] %v164_v40  ;;  %v222_v45 = vld [vmem:[#allocation1 + $0x18] sm:$0xff] }
  0x19   :  { %173 = vst.msk [vmem:[#allocation1 + $0x38] sm:$0xff] %vm74_vm0, %v169_v41 }
  0x1a   :  { %217 = vst [vmem:[%s332_s1] sm:$0xff] %v216_v42  ;;  %v224_v46 = vld [vmem:[#allocation1 + $0x20] sm:$0xff] }
  0x1b   :  { %219 = vst [vmem:[%s332_s1 + $0x8] sm:$0xff] %v218_v43 }
  0x1c   :  { %221 = vst [vmem:[%s332_s1 + $0x10] sm:$0xff] %v220_v44  ;;  %v226_v47 = vld [vmem:[#allocation1 + $0x28] sm:$0xff] }
  0x1d   :  { %223 = vst [vmem:[%s332_s1 + $0x18] sm:$0xff] %v222_v45 }
  0x1e   :  { %225 = vst [vmem:[%s332_s1 + $0x20] sm:$0xff] %v224_v46  ;;  %v228_v48 = vld [vmem:[#allocation1 + $0x30] sm:$0xff] }
  0x1f   :  { %227 = vst [vmem:[%s332_s1 + $0x28] sm:$0xff] %v226_v47 }
  0x20   :  { %229 = vst [vmem:[%s332_s1 + $0x30] sm:$0xff] %v228_v48  ;;  %v230_v49 = vld [vmem:[#allocation1 + $0x38] sm:$0xff] }
  0x21   :  { %231 = vst [vmem:[%s332_s1 + $0x38] sm:$0xff] %v230_v49 }

// kernel: ffc_forward.5
= control target key start
LH: loop header
LB: loop body
LE: loop exit
PB: predicated region body
PF: predicated region fallthrough
CT: control target
= control target key end

     0   :  { %v367_v0 = vmov 4   ;;  %v368_v1 = vmov 0   ;;  %v369_v3 = vmov 2   ;;  %v370_v4 = vmov 5   ;;  %s540_s2 = inlined_call_operand.vmem [shape: f32[8,8], index: 2, kind: input, shape index: {}]   ;;  %s541_s0 = inlined_call_operand.vmem [shape: f32[4,288], index: 0, kind: input, shape index: {}]   ;;  %s542_s1 = inlined_call_operand.vmem [shape: f32[4,288], index: 1, kind: input, shape index: {}]   ;;  %s543_s5 = inlined_call_operand.vmem [shape: f32[4,1], index: 5, kind: input, shape index: {}]   ;;  %s544_s3 = inlined_call_operand.vmem [shape: f32[4,1], index: 3, kind: input, shape index: {}]   ;;  %s545_s6 = inlined_call_operand.vmem [shape: f32[4,1], index: 6, kind: input, shape index: {}]   ;;  %s546_s4 = inlined_call_operand.vmem [shape: f32[4,1], index: 4, kind: input, shape index: {}]   ;;  %s547_s7 = inlined_call_operand.vmem [shape: f32[4,288], index: 7, kind: output, shape index: {0}]   ;;  %s548_s8 = inlined_call_operand.vmem [shape: f32[4,288], index: 8, kind: output, shape index: {1}]  }
   0x1   :  { %354 = vset.pattern.permute.xlu1 %v367_v0  ;;  %352 = vset.pattern.permute.xlu0 %v368_v1  ;;  %v28_v2 = vld [vmem:[%s540_s2] sm:$0xff]  ;;  %v371_v5 = vmov 1   ;;  %v372_v6 = vmov 6   ;;  %v373_v7 = vmov 3   ;;  %v374_v8 = vmov 7  }
   0x2   :  { %110 = vperm.xlu1 %354, %v28_v2   ;;  %35 = vperm.xlu0 %352, %v28_v2   ;;  %v426_v9 = vld [vmem:[%s541_s0] sm:$0xff]  ;;  %v433_v11 = vld [vmem:[%s541_s0 + $0x8] sm:$0xf]  ;;  %vm253_vm0 = vcmask 1047556   ;;  %vm187_vm1 = vcmask 1043456   ;;  %vm257_vm2 = vcmask 261124  }
   0x3   :  { %356 = vset.pattern.permute.xlu2 %v369_v3  ;;  %v31_v12 = vld [vmem:[%s542_s1] sm:$0xff]  ;;  %v75_v13 = vperm.slane %v426_v9, 2  ;;  %v76_v14 = vperm.slane %v426_v9, 6  ;;  %v77_v15 = vperm.slane %v433_v11, 2  ;;  %v444_v17 = vld [vmem:[%s542_s1 + $0x8] sm:$0xf] }
   0x4   :  { %72 = vperm.xlu2 %356, %v28_v2   ;;  %v115_v16 = vperm.slane %v31_v12, 0  ;;  %v116_v20 = vperm.slane %v31_v12, 4  ;;  %v117_v23 = vperm.slane %v444_v17, 0  ;;  %v40_v26 = vperm.slane %v426_v9, 0 }
   0x5   :  { %v81_v18 = vperm.slane %v75_v13, 2  ;;  %v82_v19 = vperm.slane %v76_v14, 2  ;;  %v446_v21 = vperm.slane %v77_v15, 2  ;;  %v41_v27 = vperm.slane %v426_v9, 4 }
   0x6   :  { %v121_v24 = vperm.slane %v115_v16, 0  ;;  %v42_v28 = vperm.slane %v433_v11, 0  ;;  %v150_v29 = vperm.slane %v31_v12, 2  ;;  %v151_v30 = vperm.slane %v31_v12, 6 }
   0x7   :  { %v131_v31 = vperm.slane %v31_v12, 1  ;;  %v132_v32 = vperm.slane %v31_v12, 5  ;;  %v133_v33 = vperm.slane %v444_v17, 1  ;;  %v56_v34 = vperm.slane %v426_v9, 1 }
   0x8   :  { %v122_v35 = vperm.slane %v116_v20, 0  ;;  %v152_v37 = vperm.slane %v444_v17, 2  ;;  %v57_v38 = vperm.slane %v426_v9, 5  ;;  %v58_v39 = vperm.slane %v433_v11, 1 }
   0x9   :  { %v123_v40 = vperm.slane %v117_v23, 0  ;;  %v46_v41 = vperm.slane %v40_v26, 0  ;;  %v169_v42 = vperm.slane %v31_v12, 3  ;;  %v170_v43 = vperm.slane %v31_v12, 7 }
   0xa   :  { %355 = vset.pattern.permute.xlu1 %v370_v4  ;;  %353 = vset.pattern.permute.xlu0 %v371_v5  ;;  %v47_v44 = vperm.slane %v41_v27, 0  ;;  %v48_v45 = vperm.slane %v42_v28, 0  ;;  %v156_v46 = vperm.slane %v150_v29, 2  ;;  %v157_v47 = vperm.slane %v151_v30, 2 }
   0xb   :  { %128 = vperm.xlu1 %355, %v28_v2   ;;  %53 = vperm.xlu0 %353, %v28_v2   ;;  %v137_v48 = vperm.slane %v131_v31, 1  ;;  %v138_v49 = vperm.slane %v132_v32, 1  ;;  %v139_v50 = vperm.slane %v133_v33, 1  ;;  %v62_v51 = vperm.slane %v56_v34, 1 }
   0xc   :  { %357 = vset.pattern.permute.xlu2 %v372_v6  ;;  %v158_v53 = vperm.slane %v152_v37, 2  ;;  %v63_v54 = vperm.slane %v57_v38, 1  ;;  %v64_v55 = vperm.slane %v58_v39, 1  ;;  %v171_v57 = vperm.slane %v444_v17, 3 }
   0xd   :  { %147 = vperm.xlu2 %357, %v28_v2   ;;  %v175_v58 = vperm.slane %v169_v42, 3  ;;  %v176_v59 = vperm.slane %v170_v43, 3  ;;  %v94_v0 = vperm.slane %v426_v9, 3  ;;  %v96_v12 = vperm.slane %v433_v11, 3 }
   0xe   :  { %v177_v20 = vperm.slane %v171_v57, 3  ;;  %vm191_vm3 = vcmask 257024  }
   0xf   :  { %v100_v23 = vperm.slane %v94_v0, 3  ;;  %v102_v30 = vperm.slane %v96_v12, 3 }
  0x13   :  { %358 = vset.pattern.permute.xlu1 %v373_v7  ;;  %360 = vset.pattern.permute.xlu0 %v368_v1 }
  0x14   :  { %91 = vperm.xlu1 %358, %v28_v2  }
  0x15   :  { %359 = vset.pattern.permute.xlu2 %v374_v8 }
  0x16   :  { %166 = vperm.xlu2 %359, %v28_v2  }
  0x1c   :  { %361 = vset.pattern.permute.xlu1 %v368_v1 }
  0x1e   :  { %362 = vset.pattern.permute.xlu2 %v368_v1  ;;  %v95_v1 = vperm.slane %v426_v9, 7 }
  0x5e   :  { %v428_v10 = vpop.permute.xlu2 %72 }
  0x5f   :  { %v84_v52 = vmul.f32 %v81_v18, %v428_v10  ;;  %v85_v56 = vmul.f32 %v82_v19, %v428_v10  ;;  %v86_v34 = vmul.f32 %v446_v21, %v428_v10 }
  0x67   :  { %v148_v36 = vpop.permute.xlu2 %147 }
  0x68   :  { %v160_v9 = vmul.f32 %v157_v47, %v148_v36  ;;  %v161_v28 = vmul.f32 %v158_v53, %v148_v36 }
  0x70   :  { %v167_v19 = vpop.permute.xlu2 %166 }
  0x71   :  { %v178_v11 = vmul.f32 %v175_v58, %v167_v19  ;;  %v179_v33 = vmul.f32 %v176_v59, %v167_v19 }
  0x74   :  { %v111_v22 = vpop.permute.xlu1 %110  ;;  %v36_v25 = vpop.permute.xlu0 %35 }
  0x75   :  { %v124_v60 = vmul.f32 %v121_v24, %v111_v22  ;;  %v125_v61 = vmul.f32 %v122_v35, %v111_v22  ;;  %v126_v6 = vmul.f32 %v123_v40, %v111_v22  ;;  %v49_v13 = vmul.f32 %v46_v41, %v36_v25 }
  0x76   :  { %v50_v14 = vmul.f32 %v47_v44, %v36_v25  ;;  %v51_v17 = vmul.f32 %v48_v45, %v36_v25  ;;  %v159_v24 = vmul.f32 %v156_v46, %v148_v36  ;;  %v101_v22 = vperm.slane %v95_v1, 3 }
  0x77   :  { %v180_v35 = vmul.f32 %v177_v20, %v167_v19 }
  0x7d   :  { %v129_v62 = vpop.permute.xlu1 %128  ;;  %v54_v63 = vpop.permute.xlu0 %53 }
  0x7e   :  { %v140_v2 = vmul.f32 %v137_v48, %v129_v62  ;;  %v141_v3 = vmul.f32 %v138_v49, %v129_v62  ;;  %v142_v4 = vmul.f32 %v139_v50, %v129_v62  ;;  %v65_v5 = vmul.f32 %v62_v51, %v54_v63 }
  0x7f   :  { %v66_v7 = vmul.f32 %v63_v54, %v54_v63  ;;  %v67_v8 = vmul.f32 %v64_v55, %v54_v63 }
  0x80   :  { %v143_v15 = vadd.f32 %v140_v2, %v124_v60  ;;  %v144_v16 = vadd.f32 %v141_v3, %v125_v61  ;;  %v145_v18 = vadd.f32 %v142_v4, %v126_v6  ;;  %v68_v26 = vadd.f32 %v65_v5, %v49_v13 }
  0x81   :  { %v69_v27 = vadd.f32 %v66_v7, %v50_v14  ;;  %v70_v29 = vadd.f32 %v67_v8, %v51_v17 }
  0x82   :  { %v162_v31 = vadd.f32 %v159_v24, %v143_v15  ;;  %v163_v32 = vadd.f32 %v160_v9, %v144_v16  ;;  %v164_v25 = vadd.f32 %v161_v28, %v145_v18  ;;  %v87_v38 = vadd.f32 %v84_v52, %v68_v26 }
  0x83   :  { %v88_v39 = vadd.f32 %v85_v56, %v69_v27  ;;  %v89_v40 = vadd.f32 %v86_v34, %v70_v29 }
  0x84   :  { %v181_v36 = vadd.f32 %v178_v11, %v162_v31  ;;  %v182_v44 = vadd.f32 %v179_v33, %v163_v32  ;;  %v183_v45 = vadd.f32 %v180_v35, %v164_v25 }
  0x86   :  { %v92_v37 = vpop.permute.xlu1 %91 }
  0x87   :  { %v103_v41 = vmul.f32 %v100_v23, %v92_v37  ;;  %v104_v42 = vmul.f32 %v101_v22, %v92_v37  ;;  %v105_v43 = vmul.f32 %v102_v30, %v92_v37 }
  0x89   :  { %v106_v46 = vadd.f32 %v103_v41, %v87_v38  ;;  %v107_v47 = vadd.f32 %v104_v42, %v88_v39  ;;  %v108_v48 = vadd.f32 %v105_v43, %v89_v40  ;;  %v277_v40 = vld [vmem:[%s543_s5] sm:$0xf] }
  0x8b   :  { %v465_v49 = vadd.f32 %v181_v36, %v106_v46  ;;  %v467_v10 = vadd.f32 %v182_v44, %v107_v47  ;;  %v469_v21 = vadd.f32 %v183_v45, %v108_v48  ;;  %v211_v46 = vld [vmem:[%s544_s3] sm:$0xf] }
  0x8d   :  { %v254_v50 = vsel %vm253_vm0, %v465_v49, 0.0  ;;  %v255_v51 = vsel %vm253_vm0, %v467_v10, 0.0  ;;  %v188_v52 = vsel %vm187_vm1, %v465_v49, 0.0  ;;  %v189_v54 = vsel %vm187_vm1, %v467_v10, 0.0 }
  0x8e   :  { %v256_v53 = vadd.f32 %v255_v51, %v254_v50  ;;  %v258_v55 = vsel %vm257_vm2, %v469_v21, 0.0  ;;  %v190_v56 = vadd.f32 %v189_v54, %v188_v52  ;;  %v192_v58 = vsel %vm191_vm3, %v469_v21, 0.0  ;;  %v293_v51 = vld [vmem:[%s545_s6] sm:$0xf] }
  0x90   :  { %v259_v57 = vadd.f32 %v258_v55, %v256_v53  ;;  %v193_v59 = vadd.f32 %v192_v58, %v190_v56  ;;  %v224_v56 = vld [vmem:[%s546_s4] sm:$0xf] }
  0x92   :  { %260 = vadd.xlane.f32.xlu0 %v259_v57  ;;  %194 = vadd.xlane.f32.xlu1 %v193_v59 }
 0x105   :  { %v261_v60 = vpop.xlane.xlu0 %260  ;;  %v195_v62 = vpop.xlane.xlu1 %194 }
 0x106   :  { %v483_v61 = vmul.f32 0.0034722222, %v261_v60  ;;  %v485_v63 = vmul.f32 0.0034722222, %v195_v62 }
 0x108   :  { %v263_v0 = vsub.f32 %v465_v49, %v483_v61  ;;  %v264_v1 = vsub.f32 %v467_v10, %v483_v61  ;;  %v265_v2 = vsub.f32 %v469_v21, %v483_v61  ;;  %v197_v3 = vsub.f32 %v465_v49, %v485_v63 }
 0x109   :  { %v198_v4 = vsub.f32 %v467_v10, %v485_v63  ;;  %v199_v17 = vsub.f32 %v469_v21, %v485_v63 }
 0x10a   :  { %v266_v5 = vmul.f32 %v263_v0, %v263_v0  ;;  %v267_v6 = vmul.f32 %v264_v1, %v264_v1  ;;  %v268_v7 = vmul.f32 %v265_v2, %v265_v2  ;;  %v200_v13 = vmul.f32 %v197_v3, %v197_v3 }
 0x10b   :  { %v201_v14 = vmul.f32 %v198_v4, %v198_v4  ;;  %v202_v23 = vmul.f32 %v199_v17, %v199_v17 }
 0x10c   :  { %v269_v8 = vsel %vm253_vm0, %v266_v5, 0.0  ;;  %v270_v12 = vsel %vm253_vm0, %v267_v6, 0.0  ;;  %v272_v16 = vsel %vm257_vm2, %v268_v7, 0.0  ;;  %v203_v19 = vsel %vm187_vm1, %v200_v13, 0.0 }
 0x10d   :  { %v271_v15 = vadd.f32 %v270_v12, %v269_v8  ;;  %v204_v20 = vsel %vm187_vm1, %v201_v14, 0.0  ;;  %v206_v9 = vsel %vm191_vm3, %v202_v23, 0.0 }
 0x10e   :  { %v205_v24 = vadd.f32 %v204_v20, %v203_v19 }
 0x10f   :  { %v273_v18 = vadd.f32 %v272_v16, %v271_v15 }
 0x110   :  { %v207_v26 = vadd.f32 %v206_v9, %v205_v24 }
 0x111   :  { %274 = vadd.xlane.f32.xlu2 %v273_v18 }
 0x119   :  { %208 = vadd.xlane.f32.xlu2 %v207_v26 }
 0x184   :  { %v275_v27 = vpop.xlane.xlu2 %274 }
 0x185   :  { %v276_v28 = vmul.f32 0.0034722222, %v275_v27 }
 0x187   :  { %v278_v29 = vadd.f32 1e-05, %v276_v28 }
 0x189   :  { %363 = vrsqrt.f32 %v278_v29  ;;  %vm285_vm5 = vweird.f32 %v278_v29 }
 0x18c   :  { %v209_v22 = vpop.xlane.xlu2 %208 }
 0x18d   :  { %v210_v30 = vmul.f32 0.0034722222, %v209_v22 }
 0x18f   :  { %v364_v31 = vpop.eup %363  ;;  %v212_v32 = vadd.f32 1e-05, %v210_v30 }
 0x190   :  { %v280_v11 = vmul.f32 %v364_v31, %v278_v29  ;;  %vm286_vm4 = vweird.f32 %v364_v31 }
 0x191   :  { %365 = vrsqrt.f32 %v212_v32  ;;  %vm287_vm6 = vmor %vm285_vm5, %vm286_vm4  ;;  %vm219_vm8 = vweird.f32 %v212_v32 }
 0x192   :  { %v281_v33 = vmul.f32 %v364_v31, %v280_v11 }
 0x194   :  { %v282_v34 = vmul.f32 0.5, %v281_v33 }
 0x196   :  { %v283_v25 = vsub.f32 1.5, %v282_v34 }
 0x197   :  { %v366_v35 = vpop.eup %365 }
 0x198   :  { %v284_v37 = vmul.f32 %v364_v31, %v283_v25  ;;  %v214_v38 = vmul.f32 %v366_v35, %v212_v32  ;;  %vm220_vm7 = vweird.f32 %v366_v35 }
 0x199   :  { %vm221_vm9 = vmor %vm219_vm8, %vm220_vm7 }
 0x19a   :  { %v215_v39 = vmul.f32 %v366_v35, %v214_v38  ;;  %v288_v41 = vsel %vm287_vm6, %v364_v31, %v284_v37 }
 0x19b   :  { %v290_v42 = vrot.slane %v288_v41, 4 }
 0x19c   :  { %v216_v43 = vmul.f32 0.5, %v215_v39 }
 0x19d   :  { %v292_v36 = vmul.f32 %v290_v42, %v277_v40 }
 0x19e   :  { %v217_v44 = vsub.f32 1.5, %v216_v43 }
 0x19f   :  { %303 = vperm.xlu0 %360, %v292_v36   ;;  %v295_v45 = vrot.slane %v292_v36, 4 }
 0x1a0   :  { %v218_v47 = vmul.f32 %v366_v35, %v217_v44 }
 0x1a1   :  { %v297_v48 = vmul.f32 %v295_v45, %v483_v61 }
 0x1a2   :  { %v222_v50 = vsel %vm221_vm9, %v366_v35, %v218_v47 }
 0x1a3   :  { %v223_v52 = vmul.f32 %v222_v50, %v211_v46  ;;  %v299_v53 = vrot.slane %v297_v48, 4 }
 0x1a5   :  { %229 = vperm.xlu2 %362, %v223_v52   ;;  %v301_v54 = vsub.f32 %v293_v51, %v299_v53  ;;  %v225_v55 = vmul.f32 %v223_v52, %v485_v63 }
 0x1a7   :  { %312 = vperm.xlu1 %361, %v301_v54   ;;  %v226_v57 = vsub.f32 %v224_v56, %v225_v55 }
 0x1af   :  { %237 = vperm.xlu1 %361, %v226_v57  }
 0x1ff   :  { %v230_v63 = vpop.permute.xlu2 %229 }
 0x200   :  { %v232_v8 = vmul.f32 %v230_v63, %v465_v49  ;;  %v233_v12 = vmul.f32 %v230_v63, %v467_v10  ;;  %v234_v13 = vmul.f32 %v230_v63, %v469_v21 }
 0x211   :  { %v304_v58 = vpop.permute.xlu0 %303 }
 0x212   :  { %v305_v59 = vrot.slane %v304_v58, 4 }
 0x214   :  { %v307_v61 = vmul.f32 %v305_v59, %v465_v49  ;;  %v308_v62 = vmul.f32 %v305_v59, %v467_v10  ;;  %v309_v0 = vmul.f32 %v305_v59, %v469_v21 }
 0x219   :  { %v313_v60 = vpop.permute.xlu1 %312 }
 0x21a   :  { %v314_v1 = vrot.slane %v313_v60, 4 }
 0x21c   :  { %v316_v2 = vadd.f32 %v314_v1, %v307_v61  ;;  %v317_v3 = vadd.f32 %v314_v1, %v308_v62  ;;  %v318_v4 = vadd.f32 %v314_v1, %v309_v0 }
 0x21e   :  { %v319_v5 = vmax.f32 %v316_v2, 0.0  ;;  %v320_v6 = vmax.f32 %v317_v3, 0.0  ;;  %v321_v7 = vmax.f32 %v318_v4, 0.0 }
 0x220   :  { %325 = vst.sshfl [vmem:[#allocation1] sm:$0xff pattern:$0x75316420] %v319_v5 }
 0x221   :  { %326 = vst.sshfl [vmem:[#allocation1 + $0x8] sm:$0xff pattern:$0x75316420] %v320_v6  ;;  %v238_v14 = vpop.permute.xlu1 %237 }
 0x222   :  { %327 = vst.sshfl [vmem:[#allocation1 + $0x10] sm:$0xff pattern:$0x75316420] %v321_v7  ;;  %v240_v15 = vadd.f32 %v238_v14, %v232_v8  ;;  %v241_v16 = vadd.f32 %v238_v14, %v233_v12  ;;  %v242_v17 = vadd.f32 %v238_v14, %v234_v13 }
 0x224   :  { %v244_v18 = vmax.f32 %v241_v16, 0.0  ;;  %v245_v19 = vmax.f32 %v242_v17, 0.0  ;;  %v243_v20 = vmax.f32 %v240_v15, 0.0 }
 0x226   :  { %v248_v23 = vrot.slane %v244_v18, 4  ;;  %252 = vst.msk [vmem:[%s547_s7 + $0x8] sm:$0xf] %vm191_vm3, %v245_v19 }
 0x228   :  { %v329_v49 = vld [vmem:[#allocation1 + $0x1] ss:$2 sm:$0xff]  ;;  %v249_v10 = vsel %vm187_vm1, %v243_v20, %v248_v23 }
 0x229   :  { %v331_v21 = vld [vmem:[#allocation1 + $0x11] ss:$2 sm:$0xff]  ;;  %334 = vst [vmem:[%s548_s8] sm:$0xff] %v329_v49 }
 0x22a   :  { %335 = vst.msk [vmem:[%s548_s8 + $0x8] sm:$0xf] %vm191_vm3, %v331_v21 }
 0x22b   :  { %251 = vst [vmem:[%s547_s7] sm:$0xff] %v249_v10 }

// kernel: reverse.1
= control target key start
LH: loop header
LB: loop body
LE: loop exit
PB: predicated region body
PF: predicated region fallthrough
CT: control target
= control target key end

     0   :  { %v79_v8 = vld [vmem:[#allocation1 + $0x38] sm:$0xf]  ;;  %v87_v9 = vld [vmem:[#allocation1 + $0x30] sm:$0xf]  ;;  %v95_v10 = vld [vmem:[#allocation1 + $0x28] sm:$0xf]  ;;  %v144_v16 = vlaneseq  ;;  %s447_s0 = inlined_call_operand.vmem [shape: f32[4,2,8,3], index: 0, kind: input, shape index: {}]   ;;  %s448_s1 = inlined_call_operand.vmem [shape: f32[4,2,8,3], index: 1, kind: output, shape index: {}]  }
   0x1   :  { %v19_v0 = vld [vmem:[%s447_s0] sm:$0xf]  ;;  %v21_v1 = vld [vmem:[%s447_s0 + $0x4] sm:$0xf]  ;;  %v23_v2 = vld [vmem:[%s447_s0 + $0x8] sm:$0xf] }
   0x2   :  { %20 = vst [vmem:[#allocation1 + $0x4] sm:$0xf] %v19_v0  ;;  %v25_v3 = vld [vmem:[%s447_s0 + $0xc] sm:$0xf]  ;;  %v27_v4 = vld [vmem:[%s447_s0 + $0x10] sm:$0xf] }
   0x3   :  { %22 = vst [vmem:[#allocation1 + $0xc] sm:$0xf] %v21_v1  ;;  %v29_v5 = vld [vmem:[%s447_s0 + $0x14] sm:$0xf]  ;;  %v31_v6 = vld [vmem:[%s447_s0 + $0x18] sm:$0xf] }
   0x4   :  { %24 = vst [vmem:[#allocation1 + $0x14] sm:$0xf] %v23_v2  ;;  %v33_v7 = vld [vmem:[%s447_s0 + $0x1c] sm:$0xf]  ;;  %v103_v11 = vld [vmem:[#allocation1 + $0x20] sm:$0xf] }
   0x5   :  { %26 = vst [vmem:[#allocation1 + $0x1c] sm:$0xf] %v25_v3  ;;  %v111_v18 = vld [vmem:[#allocation1 + $0x18] sm:$0xf]  ;;  %v119_v20 = vld [vmem:[#allocation1 + $0x10] sm:$0xf] }
   0x6   :  { %28 = vst [vmem:[#allocation1 + $0x24] sm:$0xf] %v27_v4  ;;  %v127_v21 = vld [vmem:[#allocation1 + $0x8] sm:$0xf]  ;;  %v145_v23 = vshrl.u32 %v144_v16, 7 }
   0x7   :  { %30 = vst [vmem:[#allocation1 + $0x2c] sm:$0xf] %v29_v5  ;;  %v134_v28 = vld [vmem:[#allocation1] sm:$0xf] }
   0x8   :  { %32 = vst [vmem:[#allocation1 + $0x34] sm:$0xf] %v31_v6  ;;  %vm146_vm0 = vcmp.lt.s32.totalorder %v145_v23, 3 }
   0x9   :  { %34 = vst [vmem:[#allocation1 + $0x3c] sm:$0xf] %v33_v7  ;;  %v131_v24 = vld [vmem:[#allocation1 + $0x4] sm:$0xf] }
   0xa   :  { %81 = vst [vmem:[#allocation0 + $0x70] sm:$0xf] %v79_v8  ;;  %v123_v22 = vld [vmem:[#allocation1 + $0xc] sm:$0xf] }
   0xb   :  { %89 = vst [vmem:[#allocation0 + $0x60] sm:$0xf] %v87_v9  ;;  %v115_v19 = vld [vmem:[#allocation1 + $0x14] sm:$0xf] }
   0xc   :  { %97 = vst [vmem:[#allocation0 + $0x50] sm:$0xf] %v95_v10  ;;  %v107_v15 = vld [vmem:[#allocation1 + $0x1c] sm:$0xf] }
   0xd   :  { %v99_v12 = vld [vmem:[#allocation1 + $0x24] sm:$0xf]  ;;  %105 = vst [vmem:[#allocation0 + $0x40] sm:$0xf] %v103_v11 }
   0xe   :  { %v91_v13 = vld [vmem:[#allocation1 + $0x2c] sm:$0xf]  ;;  %101 = vst [vmem:[#allocation0 + $0x48] sm:$0xf] %v99_v12 }
   0xf   :  { %v83_v14 = vld [vmem:[#allocation1 + $0x34] sm:$0xf]  ;;  %93 = vst [vmem:[#allocation0 + $0x58] sm:$0xf] %v91_v13 }
  0x10   :  { %v75_v17 = vld [vmem:[#allocation1 + $0x3c] sm:$0xf]  ;;  %85 = vst [vmem:[#allocation0 + $0x68] sm:$0xf] %v83_v14 }
  0x11   :  { %77 = vst [vmem:[#allocation0 + $0x78] sm:$0xf] %v75_v17  ;;  %v235_v52 = vld [vmem:[#allocation0 + $0x77] ss:$-1 sm:$0xff] }
  0x12   :  { %109 = vst [vmem:[#allocation0 + $0x38] sm:$0xf] %v107_v15  ;;  %v221_v46 = vld [vmem:[#allocation0 + $0x67] ss:$-1 sm:$0xff]  ;;  %v236_v56 = vrot.slane %v235_v52, 5 }
  0x13   :  { %113 = vst [vmem:[#allocation0 + $0x30] sm:$0xf] %v111_v18  ;;  %v207_v27 = vld [vmem:[#allocation0 + $0x57] ss:$-1 sm:$0xff]  ;;  %v222_v53 = vrot.slane %v221_v46, 5 }
  0x14   :  { %117 = vst [vmem:[#allocation0 + $0x28] sm:$0xf] %v115_v19  ;;  %v193_v25 = vld [vmem:[#allocation0 + $0x47] ss:$-1 sm:$0xff]  ;;  %v208_v31 = vrot.slane %v207_v27, 5 }
  0x15   :  { %121 = vst [vmem:[#allocation0 + $0x20] sm:$0xf] %v119_v20  ;;  %v198_v26 = vld [vmem:[#allocation0 + $0x4f] ss:$-1 sm:$0xff]  ;;  %v194_v29 = vrot.slane %v193_v25, 5 }
  0x16   :  { %125 = vst [vmem:[#allocation0 + $0x18] sm:$0xf] %v123_v22  ;;  %v199_v30 = vrot.slane %v198_v26, 5  ;;  %v212_v43 = vld [vmem:[#allocation0 + $0x5f] ss:$-1 sm:$0xff] }
  0x17   :  { %129 = vst [vmem:[#allocation0 + $0x10] sm:$0xf] %v127_v21  ;;  %v226_v49 = vld [vmem:[#allocation0 + $0x6f] ss:$-1 sm:$0xff]  ;;  %v213_v51 = vrot.slane %v212_v43, 5 }
  0x18   :  { %133 = vst [vmem:[#allocation0 + $0x8] sm:$0xf] %v131_v24  ;;  %v240_v54 = vld [vmem:[#allocation0 + $0x7f] ss:$-1 sm:$0xff]  ;;  %v227_v55 = vrot.slane %v226_v49, 5 }
  0x19   :  { %135 = vst [vmem:[#allocation0] sm:$0xf] %v134_v28  ;;  %v184_v32 = vld [vmem:[#allocation0 + $0x3f] ss:$-1 sm:$0xff]  ;;  %v241_v57 = vrot.slane %v240_v54, 5 }
  0x1a   :  { %v179_v33 = vld [vmem:[#allocation0 + $0x37] ss:$-1 sm:$0xff]  ;;  %v185_v34 = vrot.slane %v184_v32, 5  ;;  %195 = vst [vmem:[#allocation2 + $0x20] sm:$0xff] %v194_v29 }
  0x1b   :  { %v170_v35 = vld [vmem:[#allocation0 + $0x2f] ss:$-1 sm:$0xff]  ;;  %v180_v36 = vrot.slane %v179_v33, 5  ;;  %203 = vst.msk [vmem:[#allocation2 + $0x20] sm:$0xff] %vm146_vm0, %v199_v30 }
  0x1c   :  { %v165_v37 = vld [vmem:[#allocation0 + $0x27] ss:$-1 sm:$0xff]  ;;  %v171_v38 = vrot.slane %v170_v35, 5  ;;  %209 = vst [vmem:[#allocation2 + $0x28] sm:$0xff] %v208_v31 }
  0x1d   :  { %v156_v39 = vld [vmem:[#allocation0 + $0x1f] ss:$-1 sm:$0xff]  ;;  %v166_v40 = vrot.slane %v165_v37, 5  ;;  %181 = vst [vmem:[#allocation2 + $0x18] sm:$0xff] %v180_v36 }
  0x1e   :  { %v151_v41 = vld [vmem:[#allocation0 + $0x17] ss:$-1 sm:$0xff]  ;;  %v157_v42 = vrot.slane %v156_v39, 5  ;;  %189 = vst.msk [vmem:[#allocation2 + $0x18] sm:$0xff] %vm146_vm0, %v185_v34 }
  0x1f   :  { %v142_v44 = vld [vmem:[#allocation0 + $0xf] ss:$-1 sm:$0xff]  ;;  %v152_v45 = vrot.slane %v151_v41, 5  ;;  %167 = vst [vmem:[#allocation2 + $0x10] sm:$0xff] %v166_v40 }
  0x20   :  { %v137_v47 = vld [vmem:[#allocation0 + $0x7] ss:$-1 sm:$0xff]  ;;  %v143_v48 = vrot.slane %v142_v44, 5  ;;  %175 = vst.msk [vmem:[#allocation2 + $0x10] sm:$0xff] %vm146_vm0, %v171_v38 }
  0x21   :  { %v138_v50 = vrot.slane %v137_v47, 5  ;;  %153 = vst [vmem:[#allocation2 + $0x8] sm:$0xff] %v152_v45 }
  0x22   :  { %161 = vst.msk [vmem:[#allocation2 + $0x8] sm:$0xff] %vm146_vm0, %v157_v42  ;;  %v271_v62 = vld [vmem:[#allocation2 + $0x20] sm:$0xf] }
  0x23   :  { %139 = vst [vmem:[#allocation2] sm:$0xff] %v138_v50 }
  0x24   :  { %147 = vst.msk [vmem:[#allocation2] sm:$0xff] %vm146_vm0, %v143_v48 }
  0x25   :  { %217 = vst.msk [vmem:[#allocation2 + $0x28] sm:$0xff] %vm146_vm0, %v213_v51  ;;  %v265_v60 = vld [vmem:[#allocation2 + $0x18] sm:$0xf] }
  0x26   :  { %223 = vst [vmem:[#allocation2 + $0x30] sm:$0xff] %v222_v53 }
  0x27   :  { %231 = vst.msk [vmem:[#allocation2 + $0x30] sm:$0xff] %vm146_vm0, %v227_v55  ;;  %v259_v58 = vld [vmem:[#allocation2 + $0x10] sm:$0xf] }
  0x28   :  { %237 = vst [vmem:[#allocation2 + $0x38] sm:$0xff] %v236_v56 }
  0x29   :  { %245 = vst.msk [vmem:[#allocation2 + $0x38] sm:$0xff] %vm146_vm0, %v241_v57  ;;  %v253_v59 = vld [vmem:[#allocation2 + $0x8] sm:$0xf] }
  0x2a   :  { %257 = vst [vmem:[#allocation3 + $0x4] sm:$0xf] %v253_v59 }
  0x2b   :  { %v248_v61 = vld [vmem:[#allocation2] sm:$0xf]  ;;  %263 = vst [vmem:[#allocation3 + $0x8] sm:$0xf] %v259_v58 }
  0x2c   :  { %251 = vst [vmem:[#allocation3] sm:$0xf] %v248_v61  ;;  %v277_v63 = vld [vmem:[#allocation2 + $0x28] sm:$0xf] }
  0x2d   :  { %269 = vst [vmem:[#allocation3 + $0xc] sm:$0xf] %v265_v60 }
  0x2e   :  { %275 = vst [vmem:[#allocation3 + $0x10] sm:$0xf] %v271_v62  ;;  %v283_v0 = vld [vmem:[#allocation2 + $0x30] sm:$0xf] }
  0x2f   :  { %281 = vst [vmem:[#allocation3 + $0x14] sm:$0xf] %v277_v63 }
  0x30   :  { %287 = vst [vmem:[#allocation3 + $0x18] sm:$0xf] %v283_v0  ;;  %v289_v1 = vld [vmem:[#allocation2 + $0x38] sm:$0xf] }
  0x31   :  { %293 = vst [vmem:[#allocation3 + $0x1c] sm:$0xf] %v289_v1 }
  0x33   :  { %v310_v2 = vld [vmem:[#allocation3] sm:$0xff]  }
  0x34   :  { %311 = vst [vmem:[%s448_s1] sm:$0xff] %v310_v2   ;;  %v314_v3 = vld [vmem:[#allocation3 + $0x8] sm:$0xff]  }
  0x35   :  { %315 = vst [vmem:[%s448_s1 + $0x8] sm:$0xff] %v314_v3  }
  0x36   :  { %v318_v4 = vld [vmem:[#allocation3 + $0x10] sm:$0xff]  }
  0x37   :  { %319 = vst [vmem:[%s448_s1 + $0x10] sm:$0xff] %v318_v4  }
  0x38   :  { %v322_v5 = vld [vmem:[#allocation3 + $0x18] sm:$0xff]  }
  0x39   :  { %323 = vst [vmem:[%s448_s1 + $0x18] sm:$0xff] %v322_v5  }

// kernel: ffc_forward.6
= control target key start
LH: loop header
LB: loop body
LE: loop exit
PB: predicated region body
PF: predicated region fallthrough
CT: control target
= control target key end

     0   :  { %v210_v0 = vmov 4   ;;  %v211_v1 = vmov 0   ;;  %v212_v3 = vmov 2   ;;  %v213_v4 = vmov 5   ;;  %s304_s2 = inlined_call_operand.vmem [shape: f32[8,8], index: 2, kind: input, shape index: {}]   ;;  %s305_s1 = inlined_call_operand.vmem [shape: f32[4,80], index: 1, kind: input, shape index: {}]   ;;  %s306_s0 = inlined_call_operand.vmem [shape: f32[4,80], index: 0, kind: input, shape index: {}]   ;;  %s307_s5 = inlined_call_operand.vmem [shape: f32[4,1], index: 5, kind: input, shape index: {}]   ;;  %s308_s3 = inlined_call_operand.vmem [shape: f32[4,1], index: 3, kind: input, shape index: {}]   ;;  %s309_s6 = inlined_call_operand.vmem [shape: f32[4,1], index: 6, kind: input, shape index: {}]   ;;  %s310_s4 = inlined_call_operand.vmem [shape: f32[4,1], index: 4, kind: input, shape index: {}]   ;;  %s311_s8 = inlined_call_operand.vmem [shape: f32[4,80], index: 8, kind: output, shape index: {1}]   ;;  %s312_s7 = inlined_call_operand.vmem [shape: f32[4,80], index: 7, kind: output, shape index: {0}]  }
   0x1   :  { %197 = vset.pattern.permute.xlu1 %v210_v0  ;;  %195 = vset.pattern.permute.xlu0 %v211_v1  ;;  %v28_v2 = vld [vmem:[%s304_s2] sm:$0xff]  ;;  %v214_v5 = vmov 1   ;;  %v215_v6 = vmov 6   ;;  %v216_v7 = vmov 3   ;;  %v217_v8 = vmov 7  }
   0x2   :  { %60 = vperm.xlu1 %197, %v28_v2   ;;  %33 = vperm.xlu0 %195, %v28_v2   ;;  %v30_v12 = vld [vmem:[%s305_s1] sm:$0xf]  ;;  %vm128_vm0 = vcmask 654340   ;;  %vm87_vm1 = vcmask 650240  }
   0x3   :  { %199 = vset.pattern.permute.xlu2 %v212_v3  ;;  %v29_v14 = vld [vmem:[%s306_s0] sm:$0xf]  ;;  %v69_v15 = vperm.slane %v30_v12, 1  ;;  %v63_v16 = vperm.slane %v30_v12, 0  ;;  %v76_v23 = vperm.slane %v30_v12, 2  ;;  %v83_v28 = vperm.slane %v30_v12, 3 }
   0x4   :  { %46 = vperm.xlu2 %199, %v28_v2   ;;  %v42_v17 = vperm.slane %v29_v14, 1  ;;  %v36_v18 = vperm.slane %v29_v14, 0  ;;  %v49_v25 = vperm.slane %v29_v14, 2  ;;  %v56_v32 = vperm.slane %v29_v14, 3  ;;  %v98_v12 = vld [vmem:[%s308_s3] sm:$0xf] }
   0xa   :  { %198 = vset.pattern.permute.xlu1 %v213_v4  ;;  %196 = vset.pattern.permute.xlu0 %v214_v5  ;;  %v139_v5 = vld [vmem:[%s307_s5] sm:$0xf] }
   0xb   :  { %66 = vperm.xlu1 %198, %v28_v2   ;;  %39 = vperm.xlu0 %196, %v28_v2  }
   0xc   :  { %200 = vset.pattern.permute.xlu2 %v215_v6 }
   0xd   :  { %73 = vperm.xlu2 %200, %v28_v2  }
  0x13   :  { %201 = vset.pattern.permute.xlu1 %v216_v7  ;;  %203 = vset.pattern.permute.xlu0 %v211_v1 }
  0x14   :  { %53 = vperm.xlu1 %201, %v28_v2  }
  0x15   :  { %202 = vset.pattern.permute.xlu2 %v217_v8 }
  0x16   :  { %80 = vperm.xlu2 %202, %v28_v2  }
  0x1c   :  { %204 = vset.pattern.permute.xlu1 %v211_v1 }
  0x1e   :  { %205 = vset.pattern.permute.xlu2 %v211_v1 }
  0x5e   :  { %v47_v9 = vpop.permute.xlu2 %46 }
  0x5f   :  { %v50_v33 = vmul.f32 %v49_v25, %v47_v9 }
  0x67   :  { %v74_v13 = vpop.permute.xlu2 %73 }
  0x68   :  { %v77_v30 = vmul.f32 %v76_v23, %v74_v13 }
  0x70   :  { %v81_v29 = vpop.permute.xlu2 %80 }
  0x71   :  { %v84_v35 = vmul.f32 %v83_v28, %v81_v29 }
  0x74   :  { %v61_v10 = vpop.permute.xlu1 %60  ;;  %v34_v11 = vpop.permute.xlu0 %33 }
  0x75   :  { %v64_v22 = vmul.f32 %v63_v16, %v61_v10  ;;  %v37_v26 = vmul.f32 %v36_v18, %v34_v11  ;;  %v155_v16 = vld [vmem:[%s309_s6] sm:$0xf] }
  0x7d   :  { %v67_v19 = vpop.permute.xlu1 %66  ;;  %v40_v20 = vpop.permute.xlu0 %39 }
  0x7e   :  { %v70_v21 = vmul.f32 %v69_v15, %v67_v19  ;;  %v43_v24 = vmul.f32 %v42_v17, %v40_v20  ;;  %v111_v19 = vld [vmem:[%s310_s4] sm:$0xf] }
  0x80   :  { %v71_v27 = vadd.f32 %v70_v21, %v64_v22  ;;  %v44_v31 = vadd.f32 %v43_v24, %v37_v26 }
  0x82   :  { %v78_v34 = vadd.f32 %v77_v30, %v71_v27  ;;  %v51_v37 = vadd.f32 %v50_v33, %v44_v31 }
  0x84   :  { %v85_v39 = vadd.f32 %v84_v35, %v78_v34 }
  0x86   :  { %v54_v36 = vpop.permute.xlu1 %53 }
  0x87   :  { %v57_v38 = vmul.f32 %v56_v32, %v54_v36 }
  0x89   :  { %v58_v40 = vadd.f32 %v57_v38, %v51_v37 }
  0x8b   :  { %v272_v41 = vadd.f32 %v85_v39, %v58_v40 }
  0x8d   :  { %v129_v42 = vsel %vm128_vm0, %v272_v41, 0.0  ;;  %v88_v43 = vsel %vm87_vm1, %v272_v41, 0.0 }
  0x8e   :  { %130 = vadd.xlane.f32.xlu0 %v129_v42  ;;  %89 = vadd.xlane.f32.xlu1 %v88_v43 }
 0x101   :  { %v131_v44 = vpop.xlane.xlu0 %130  ;;  %v90_v45 = vpop.xlane.xlu1 %89 }
 0x102   :  { %v132_v46 = vmul.f32 0.0125, %v131_v44  ;;  %v91_v48 = vmul.f32 0.0125, %v90_v45 }
 0x104   :  { %v133_v47 = vsub.f32 %v272_v41, %v132_v46  ;;  %v92_v50 = vsub.f32 %v272_v41, %v91_v48 }
 0x106   :  { %v134_v49 = vmul.f32 %v133_v47, %v133_v47  ;;  %v93_v52 = vmul.f32 %v92_v50, %v92_v50 }
 0x108   :  { %v135_v51 = vsel %vm128_vm0, %v134_v49, 0.0  ;;  %v94_v53 = vsel %vm87_vm1, %v93_v52, 0.0 }
 0x109   :  { %136 = vadd.xlane.f32.xlu2 %v135_v51 }
 0x111   :  { %95 = vadd.xlane.f32.xlu2 %v94_v53 }
 0x17c   :  { %v137_v54 = vpop.xlane.xlu2 %136 }
 0x17d   :  { %v138_v55 = vmul.f32 0.0125, %v137_v54 }
 0x17f   :  { %v140_v56 = vadd.f32 1e-05, %v138_v55 }
 0x181   :  { %206 = vrsqrt.f32 %v140_v56  ;;  %vm147_vm3 = vweird.f32 %v140_v56 }
 0x184   :  { %v96_v57 = vpop.xlane.xlu2 %95 }
 0x185   :  { %v97_v58 = vmul.f32 0.0125, %v96_v57 }
 0x187   :  { %v207_v59 = vpop.eup %206  ;;  %v99_v60 = vadd.f32 1e-05, %v97_v58 }
 0x188   :  { %v142_v61 = vmul.f32 %v207_v59, %v140_v56  ;;  %vm148_vm2 = vweird.f32 %v207_v59 }
 0x189   :  { %208 = vrsqrt.f32 %v99_v60  ;;  %vm149_vm4 = vmor %vm147_vm3, %vm148_vm2  ;;  %vm106_vm6 = vweird.f32 %v99_v60 }
 0x18a   :  { %v143_v62 = vmul.f32 %v207_v59, %v142_v61 }
 0x18c   :  { %v144_v63 = vmul.f32 0.5, %v143_v62 }
 0x18e   :  { %v145_v0 = vsub.f32 1.5, %v144_v63 }
 0x18f   :  { %v209_v1 = vpop.eup %208 }
 0x190   :  { %v146_v2 = vmul.f32 %v207_v59, %v145_v0  ;;  %v101_v3 = vmul.f32 %v209_v1, %v99_v60  ;;  %vm107_vm5 = vweird.f32 %v209_v1 }
 0x191   :  { %vm108_vm7 = vmor %vm106_vm6, %vm107_vm5 }
 0x192   :  { %v102_v4 = vmul.f32 %v209_v1, %v101_v3  ;;  %v150_v6 = vsel %vm149_vm4, %v207_v59, %v146_v2 }
 0x193   :  { %v152_v7 = vrot.slane %v150_v6, 4 }
 0x194   :  { %v103_v8 = vmul.f32 0.5, %v102_v4 }
 0x195   :  { %v154_v9 = vmul.f32 %v152_v7, %v139_v5 }
 0x196   :  { %v104_v10 = vsub.f32 1.5, %v103_v8 }
 0x197   :  { %v157_v11 = vrot.slane %v154_v9, 4  ;;  %165 = vperm.xlu1 %204, %v154_v9  }
 0x198   :  { %v105_v13 = vmul.f32 %v209_v1, %v104_v10 }
 0x199   :  { %v159_v14 = vmul.f32 %v157_v11, %v132_v46 }
 0x19a   :  { %v109_v15 = vsel %vm108_vm7, %v209_v1, %v105_v13 }
 0x19b   :  { %v110_v17 = vmul.f32 %v109_v15, %v98_v12  ;;  %v161_v18 = vrot.slane %v159_v14, 4 }
 0x19d   :  { %116 = vperm.xlu0 %203, %v110_v17   ;;  %v163_v20 = vsub.f32 %v155_v16, %v161_v18  ;;  %v112_v21 = vmul.f32 %v110_v17, %v91_v48 }
 0x19f   :  { %172 = vperm.xlu2 %205, %v163_v20   ;;  %v113_v22 = vsub.f32 %v111_v19, %v112_v21 }
 0x1a1   :  { %122 = vperm.xlu1 %204, %v113_v22  }
 0x1f9   :  { %v173_v23 = vpop.permute.xlu2 %172 }
 0x1fa   :  { %v174_v26 = vrot.slane %v173_v23, 4 }
 0x209   :  { %v166_v24 = vpop.permute.xlu1 %165 }
 0x20a   :  { %v167_v25 = vrot.slane %v166_v24, 4 }
 0x20c   :  { %v169_v27 = vmul.f32 %v167_v25, %v272_v41 }
 0x20e   :  { %v176_v28 = vadd.f32 %v174_v26, %v169_v27 }
 0x20f   :  { %v117_v29 = vpop.permute.xlu0 %116 }
 0x210   :  { %v177_v30 = vmax.f32 %v176_v28, 0.0  ;;  %v119_v31 = vmul.f32 %v117_v29, %v272_v41 }
 0x212   :  { %178 = vst.msk [vmem:[%s311_s8 - $0x4] sm:$0xf0] %vm128_vm0, %v177_v30 }
 0x213   :  { %v123_v32 = vpop.permute.xlu1 %122 }
 0x214   :  { %v125_v33 = vadd.f32 %v123_v32, %v119_v31 }
 0x216   :  { %v126_v34 = vmax.f32 %v125_v33, 0.0 }
 0x218   :  { %127 = vst.msk [vmem:[%s312_s7] sm:$0xf] %vm87_vm1, %v126_v34 }

// kernel: tile.7
= control target key start
LH: loop header
LB: loop body
LE: loop exit
PB: predicated region body
PF: predicated region fallthrough
CT: control target
= control target key end

     0   :  { %vm517_vm0 = vcmask 1041409   ;;  %vm521_vm1 = vcmask 1042434   ;;  %vm525_vm2 = vcmask 1043459   ;;  %vm529_vm3 = vcmask 1044484   ;;  %s1846_s17 = smov 120   ;;  %s1847_s18 = smov 112   ;;  %s2569_s0 = inlined_call_operand.vmem [shape: f32[4,2,2,8,2,8], index: 0, kind: input, shape index: {}]   ;;  %s2570_s1 = inlined_call_operand.vmem [shape: f32[4,512], index: 1, kind: output, shape index: {}]  }
   0x1   :  { %v1717_v0 = vld [vmem:[%s2569_s0 + $0xde] sm:$0x3]  ;;  %v1725_v1 = vld [vmem:[%s2569_s0 + $0xce] sm:$0x3]  ;;  %vm533_vm4 = vcmask 1045509   ;;  %vm537_vm5 = vcmask 1046534  }
   0x2   :  { %v1749_v2 = vld [vmem:[%s2569_s0 + $0x9e] sm:$0x3]  ;;  %71 = vst [vmem:[#allocation1 + $0x378] sm:$0x3] %v1717_v0  ;;  %v1757_v3 = vld [vmem:[%s2569_s0 + $0x8e] sm:$0x3] }
   0x3   :  { %103 = vst [vmem:[#allocation1 + $0x338] sm:$0x3] %v1725_v1  ;;  %v1781_v4 = vld [vmem:[%s2569_s0 + $0x5e] sm:$0x3]  ;;  %v1789_v5 = vld [vmem:[%s2569_s0 + $0x4e] sm:$0x3] }
   0x4   :  { %199 = vst [vmem:[#allocation1 + $0x278] sm:$0x3] %v1749_v2  ;;  %v1813_v6 = vld [vmem:[%s2569_s0 + $0x1e] sm:$0x3]  ;;  %v1821_v7 = vld [vmem:[%s2569_s0 + $0xe] sm:$0x3] }
   0x5   :  { %231 = vst [vmem:[#allocation1 + $0x238] sm:$0x3] %v1757_v3  ;;  %v1701_v8 = vld [vmem:[%s2569_s0 + $0xfe] sm:$0x3]  ;;  %v1709_v9 = vld [vmem:[%s2569_s0 + $0xee] sm:$0x3] }
   0x6   :  { %327 = vst [vmem:[#allocation1 + $0x178] sm:$0x3] %v1781_v4  ;;  %v1733_v10 = vld [vmem:[%s2569_s0 + $0xbe] sm:$0x3]  ;;  %v1741_v11 = vld [vmem:[%s2569_s0 + $0xae] sm:$0x3] }
   0x7   :  { %359 = vst [vmem:[#allocation1 + $0x138] sm:$0x3] %v1789_v5  ;;  %v1765_v18 = vld [vmem:[%s2569_s0 + $0x7e] sm:$0x3]  ;;  %v1773_v23 = vld [vmem:[%s2569_s0 + $0x6e] sm:$0x3] }
   0x8   :  { %455 = vst [vmem:[#allocation1 + $0x78] sm:$0x3] %v1813_v6  ;;  %v1797_v26 = vld [vmem:[%s2569_s0 + $0x3e] sm:$0x3]  ;;  %v1805_v27 = vld [vmem:[%s2569_s0 + $0x2e] sm:$0x3] }
   0x9   :  { %487 = vst [vmem:[#allocation1 + $0x38] sm:$0x3] %v1821_v7  ;;  %vm541_vm6 = vcmask 1047559   ;;  %v609_v37 = vld [vmem:[#allocation1 + $0x372] sm:$0x80]   ;;  %s1848_s30 = smov 96  }
   0xa   :  { %7 = vst [vmem:[#allocation1 + $0x3f8] sm:$0x3] %v1701_v8  ;;  %v593_v15 = vld [vmem:[#allocation1 + $0x336] sm:$0x8]   ;;  %v666_v17 = vld [vmem:[#allocation1 + $0x335] sm:$0x8]  }
   0xb   :  { %39 = vst [vmem:[#allocation1 + $0x3b8] sm:$0x3] %v1709_v9  ;;  %v605_v33 = vld [vmem:[#allocation1 + $0x273] sm:$0x40]   ;;  %v678_v35 = vld [vmem:[#allocation1 + $0x272] sm:$0x40]  }
   0xc   :  { %135 = vst [vmem:[#allocation1 + $0x2f8] sm:$0x3] %v1733_v10  ;;  %v589_v12 = vld [vmem:[#allocation1 + $0x237] sm:$0x4]   ;;  %v662_v13 = vld [vmem:[#allocation1 + $0x236] sm:$0x4]  }
   0xd   :  { %167 = vst [vmem:[#allocation1 + $0x2b8] sm:$0x3] %v1741_v11  ;;  %v601_v29 = vld [vmem:[#allocation1 + $0x174] sm:$0x20]   ;;  %v674_v31 = vld [vmem:[#allocation1 + $0x173] sm:$0x20]  }
   0xe   :  { %v585_v14 = vld [vmem:[#allocation1 + $0x138] sm:$0x2]   ;;  %v658_v16 = vld [vmem:[#allocation1 + $0x137] sm:$0x2]   ;;  %263 = vst [vmem:[#allocation1 + $0x1f8] sm:$0x3] %v1765_v18 }
   0xf   :  { %v597_v19 = vld [vmem:[#allocation1 + $0x75] sm:$0x10]   ;;  %v670_v20 = vld [vmem:[#allocation1 + $0x74] sm:$0x10]   ;;  %295 = vst [vmem:[#allocation1 + $0x1b8] sm:$0x3] %v1773_v23 }
  0x10   :  { %v583_v21 = vld [vmem:[#allocation1 + $0x39] sm:$0x1]   ;;  %v656_v22 = vld [vmem:[#allocation1 + $0x38] sm:$0x1]   ;;  %391 = vst [vmem:[#allocation1 + $0xf8] sm:$0x3] %v1797_v26 }
  0x11   :  { %v587_v24 = vsel %vm517_vm0, %v585_v14, %v583_v21  ;;  %v660_v25 = vsel %vm517_vm0, %v658_v16, %v656_v22  ;;  %423 = vst [vmem:[#allocation1 + $0xb8] sm:$0x3] %v1805_v27  ;;  %v682_v39 = vld [vmem:[#allocation1 + $0x371] sm:$0x80]   ;;  %v1718_v42 = vld [vmem:[%s2569_s0 + $0xdc] sm:$0x3] }
  0x12   :  { %v591_v28 = vsel %vm521_vm1, %v589_v12, %v587_v24  ;;  %v664_v30 = vsel %vm521_vm1, %v662_v13, %v660_v25  ;;  %v1726_v43 = vld [vmem:[%s2569_s0 + $0xcc] sm:$0x3]  ;;  %75 = vst [vmem:[#allocation1 + $0x370] sm:$0x3] %v1718_v42  ;;  %v1750_v50 = vld [vmem:[%s2569_s0 + $0x9c] sm:$0x3] }
  0x13   :  { %v595_v32 = vsel %vm525_vm2, %v593_v15, %v591_v28  ;;  %v668_v34 = vsel %vm525_vm2, %v666_v17, %v664_v30  ;;  %107 = vst [vmem:[#allocation1 + $0x330] sm:$0x3] %v1726_v43  ;;  %v1758_v51 = vld [vmem:[%s2569_s0 + $0x8c] sm:$0x3]  ;;  %v629_v53 = vld [vmem:[#allocation1 + $0x3b6] sm:$0x8]  }
  0x14   :  { %v599_v36 = vsel %vm529_vm3, %v597_v19, %v595_v32  ;;  %v672_v38 = vsel %vm529_vm3, %v670_v20, %v668_v34  ;;  %v625_v48 = vld [vmem:[#allocation1 + $0x2b7] sm:$0x4]   ;;  %v698_v49 = vld [vmem:[#allocation1 + $0x2b6] sm:$0x4]   ;;  %203 = vst [vmem:[#allocation1 + $0x270] sm:$0x3] %v1750_v50 }
  0x15   :  { %v603_v40 = vsel %vm533_vm4, %v601_v29, %v599_v36  ;;  %v676_v41 = vsel %vm533_vm4, %v674_v31, %v672_v38  ;;  %v702_v55 = vld [vmem:[#allocation1 + $0x3b5] sm:$0x8]   ;;  %235 = vst [vmem:[#allocation1 + $0x230] sm:$0x3] %v1758_v51  ;;  %v637_v59 = vld [vmem:[#allocation1 + $0x1f4] sm:$0x20]  }
  0x16   :  { %v607_v44 = vsel %vm537_vm5, %v605_v33, %v603_v40  ;;  %v680_v45 = vsel %vm537_vm5, %v678_v35, %v676_v41  ;;  %v621_v52 = vld [vmem:[#allocation1 + $0x1b8] sm:$0x2]   ;;  %v694_v54 = vld [vmem:[#allocation1 + $0x1b7] sm:$0x2]   ;;  %v1782_v61 = vld [vmem:[%s2569_s0 + $0x5c] sm:$0x3] }
  0x17   :  { %v611_v46 = vsel %vm541_vm6, %v609_v37, %v607_v44  ;;  %v684_v47 = vsel %vm541_vm6, %v682_v39, %v680_v45  ;;  %v633_v56 = vld [vmem:[#allocation1 + $0xf5] sm:$0x10]   ;;  %v706_v57 = vld [vmem:[#allocation1 + $0xf4] sm:$0x10]   ;;  %331 = vst [vmem:[#allocation1 + $0x170] sm:$0x3] %v1782_v61 }
  0x18   :  { %612 = vrot.lane.b32.xlu0 %v611_v46, %s1846_s17  ;;  %685 = vrot.lane.b32.xlu1 %v684_v47, %s1847_s18  ;;  %v619_v58 = vld [vmem:[#allocation1 + $0xb9] sm:$0x1]   ;;  %v692_v60 = vld [vmem:[#allocation1 + $0xb8] sm:$0x1]   ;;  %v1790_v1 = vld [vmem:[%s2569_s0 + $0x4c] sm:$0x3] }
  0x19   :  { %v623_v62 = vsel %vm517_vm0, %v621_v52, %v619_v58  ;;  %v641_v63 = vld [vmem:[#allocation1 + $0x2f3] sm:$0x40]   ;;  %v696_v0 = vsel %vm517_vm0, %v694_v54, %v692_v60  ;;  %v1814_v2 = vld [vmem:[%s2569_s0 + $0x1c] sm:$0x3]  ;;  %v710_v6 = vld [vmem:[#allocation1 + $0x1f3] sm:$0x20]  }
  0x1a   :  { %v627_v3 = vsel %vm521_vm1, %v625_v48, %v623_v62  ;;  %v645_v4 = vld [vmem:[#allocation1 + $0x3f2] sm:$0x80]   ;;  %v700_v5 = vsel %vm521_vm1, %v698_v49, %v696_v0  ;;  %363 = vst [vmem:[#allocation1 + $0x130] sm:$0x3] %v1790_v1  ;;  %v1822_v7 = vld [vmem:[%s2569_s0 + $0xc] sm:$0x3] }
  0x1b   :  { %v631_v8 = vsel %vm525_vm2, %v629_v53, %v627_v3  ;;  %v704_v9 = vsel %vm525_vm2, %v702_v55, %v700_v5  ;;  %v714_v10 = vld [vmem:[#allocation1 + $0x2f2] sm:$0x40]   ;;  %459 = vst [vmem:[#allocation1 + $0x70] sm:$0x3] %v1814_v2  ;;  %v1702_v11 = vld [vmem:[%s2569_s0 + $0xfc] sm:$0x3] }
  0x1c   :  { %v635_v12 = vsel %vm529_vm3, %v633_v56, %v631_v8  ;;  %v708_v13 = vsel %vm529_vm3, %v706_v57, %v704_v9  ;;  %v718_v14 = vld [vmem:[#allocation1 + $0x3f1] sm:$0x80]   ;;  %491 = vst [vmem:[#allocation1 + $0x30] sm:$0x3] %v1822_v7  ;;  %v1710_v15 = vld [vmem:[%s2569_s0 + $0xec] sm:$0x3] }
  0x1d   :  { %v639_v16 = vsel %vm533_vm4, %v637_v59, %v635_v12  ;;  %v712_v17 = vsel %vm533_vm4, %v710_v6, %v708_v13  ;;  %11 = vst [vmem:[#allocation1 + $0x3f0] sm:$0x3] %v1702_v11  ;;  %v1734_v18 = vld [vmem:[%s2569_s0 + $0xbc] sm:$0x3]  ;;  %v1742_v21 = vld [vmem:[%s2569_s0 + $0xac] sm:$0x3] }
  0x1e   :  { %v643_v19 = vsel %vm537_vm5, %v641_v63, %v639_v16  ;;  %v716_v20 = vsel %vm537_vm5, %v714_v10, %v712_v17  ;;  %43 = vst [vmem:[#allocation1 + $0x3b0] sm:$0x3] %v1710_v15  ;;  %v1766_v24 = vld [vmem:[%s2569_s0 + $0x7c] sm:$0x3]  ;;  %v1774_v25 = vld [vmem:[%s2569_s0 + $0x6c] sm:$0x3] }
  0x1f   :  { %v647_v22 = vsel %vm541_vm6, %v645_v4, %v643_v19  ;;  %v720_v23 = vsel %vm541_vm6, %v718_v14, %v716_v20  ;;  %139 = vst [vmem:[#allocation1 + $0x2f0] sm:$0x3] %v1734_v18  ;;  %v1798_v26 = vld [vmem:[%s2569_s0 + $0x3c] sm:$0x3]  ;;  %v812_v28 = vld [vmem:[#allocation1 + $0x32d] sm:$0x8]  }
  0x20   :  { %648 = vrot.lane.b32.xlu0 %v647_v22, %s1846_s17  ;;  %721 = vrot.lane.b32.xlu1 %v720_v23, %s1847_s18  ;;  %171 = vst [vmem:[#allocation1 + $0x2b0] sm:$0x3] %v1742_v21  ;;  %v1806_v29 = vld [vmem:[%s2569_s0 + $0x2c] sm:$0x3]  ;;  %v808_v30 = vld [vmem:[#allocation1 + $0x22e] sm:$0x4]  }
  0x21   :  { %v804_v27 = vld [vmem:[#allocation1 + $0x12f] sm:$0x2]   ;;  %267 = vst [vmem:[#allocation1 + $0x1f0] sm:$0x3] %v1766_v24  ;;  %v1703_v31 = vld [vmem:[%s2569_s0 + $0xfa] sm:$0x3] }
  0x22   :  { %299 = vst [vmem:[#allocation1 + $0x1b0] sm:$0x3] %v1774_v25  ;;  %v1711_v33 = vld [vmem:[%s2569_s0 + $0xea] sm:$0x3]  ;;  %v816_v35 = vld [vmem:[#allocation1 + $0x6c] sm:$0x10]  }
  0x23   :  { %v802_v32 = vld [vmem:[#allocation1 + $0x30] sm:$0x1]   ;;  %395 = vst [vmem:[#allocation1 + $0xf0] sm:$0x3] %v1798_v26  ;;  %v1735_v36 = vld [vmem:[%s2569_s0 + $0xba] sm:$0x3] }
  0x24   :  { %v806_v34 = vsel %vm517_vm0, %v804_v27, %v802_v32  ;;  %427 = vst [vmem:[#allocation1 + $0xb0] sm:$0x3] %v1806_v29  ;;  %v820_v38 = vld [vmem:[#allocation1 + $0x16b] sm:$0x20]   ;;  %v1743_v39 = vld [vmem:[%s2569_s0 + $0xaa] sm:$0x3] }
  0x25   :  { %v810_v37 = vsel %vm521_vm1, %v808_v30, %v806_v34  ;;  %15 = vst [vmem:[#allocation1 + $0x3e8] sm:$0x3] %v1703_v31  ;;  %v824_v41 = vld [vmem:[#allocation1 + $0x26a] sm:$0x40]   ;;  %v1767_v42 = vld [vmem:[%s2569_s0 + $0x7a] sm:$0x3] }
  0x26   :  { %v814_v40 = vsel %vm525_vm2, %v812_v28, %v810_v37  ;;  %47 = vst [vmem:[#allocation1 + $0x3a8] sm:$0x3] %v1711_v33  ;;  %v828_v44 = vld [vmem:[#allocation1 + $0x369] sm:$0x80]   ;;  %v1775_v45 = vld [vmem:[%s2569_s0 + $0x6a] sm:$0x3] }
  0x27   :  { %v818_v43 = vsel %vm529_vm3, %v816_v35, %v814_v40  ;;  %143 = vst [vmem:[#allocation1 + $0x2e8] sm:$0x3] %v1735_v36  ;;  %v1799_v47 = vld [vmem:[%s2569_s0 + $0x3a] sm:$0x3]  ;;  %v848_v50 = vld [vmem:[#allocation1 + $0x3ad] sm:$0x8]  }
  0x28   :  { %v822_v46 = vsel %vm533_vm4, %v820_v38, %v818_v43  ;;  %175 = vst [vmem:[#allocation1 + $0x2a8] sm:$0x3] %v1743_v39  ;;  %v1807_v51 = vld [vmem:[%s2569_s0 + $0x2a] sm:$0x3]  ;;  %v844_v53 = vld [vmem:[#allocation1 + $0x2ae] sm:$0x4]  }
  0x29   :  { %v826_v48 = vsel %vm537_vm5, %v824_v41, %v822_v46  ;;  %v840_v49 = vld [vmem:[#allocation1 + $0x1af] sm:$0x2]   ;;  %271 = vst [vmem:[#allocation1 + $0x1e8] sm:$0x3] %v1767_v42  ;;  %v729_v54 = vld [vmem:[#allocation1 + $0x31] sm:$0x1]  }
  0x2a   :  { %v830_v52 = vsel %vm541_vm6, %v828_v44, %v826_v48  ;;  %303 = vst [vmem:[#allocation1 + $0x1a8] sm:$0x3] %v1775_v45  ;;  %v731_v56 = vld [vmem:[#allocation1 + $0x130] sm:$0x2]   ;;  %v852_v58 = vld [vmem:[#allocation1 + $0xec] sm:$0x10]  }
  0x2b   :  { %831 = vrot.lane.b32.xlu0 %v830_v52, %s1848_s30  ;;  %v838_v55 = vld [vmem:[#allocation1 + $0xb0] sm:$0x1]   ;;  %399 = vst [vmem:[#allocation1 + $0xe8] sm:$0x3] %v1799_v47  ;;  %v733_v59 = vsel %vm517_vm0, %v731_v56, %v729_v54  ;;  %v735_v60 = vld [vmem:[#allocation1 + $0x22f] sm:$0x4]  }
  0x2c   :  { %v842_v57 = vsel %vm517_vm0, %v840_v49, %v838_v55  ;;  %431 = vst [vmem:[#allocation1 + $0xa8] sm:$0x3] %v1807_v51  ;;  %v856_v62 = vld [vmem:[#allocation1 + $0x1eb] sm:$0x20]   ;;  %v737_v63 = vsel %vm521_vm1, %v735_v60, %v733_v59  ;;  %v739_v0 = vld [vmem:[#allocation1 + $0x32e] sm:$0x8]  }
  0x2d   :  { %v846_v61 = vsel %vm521_vm1, %v844_v53, %v842_v57  ;;  %v743_v1 = vld [vmem:[#allocation1 + $0x6d] sm:$0x10]   ;;  %v860_v3 = vld [vmem:[#allocation1 + $0x2ea] sm:$0x40]   ;;  %v741_v4 = vsel %vm525_vm2, %v739_v0, %v737_v63  ;;  %v1719_v14 = vld [vmem:[%s2569_s0 + $0xda] sm:$0x3] }
  0x2e   :  { %v850_v2 = vsel %vm525_vm2, %v848_v50, %v846_v61  ;;  %v747_v5 = vld [vmem:[#allocation1 + $0x16c] sm:$0x20]   ;;  %v864_v8 = vld [vmem:[#allocation1 + $0x3e9] sm:$0x80]   ;;  %v745_v9 = vsel %vm529_vm3, %v743_v1, %v741_v4  ;;  %v1727_v15 = vld [vmem:[%s2569_s0 + $0xca] sm:$0x3] }
  0x2f   :  { %v751_v6 = vld [vmem:[#allocation1 + $0x26b] sm:$0x40]   ;;  %v854_v7 = vsel %vm529_vm3, %v852_v58, %v850_v2  ;;  %v917_v12 = vld [vmem:[#allocation1 + $0x2a7] sm:$0x4]   ;;  %v749_v13 = vsel %vm533_vm4, %v747_v5, %v745_v9  ;;  %79 = vst [vmem:[#allocation1 + $0x368] sm:$0x3] %v1719_v14 }
  0x30   :  { %v755_v10 = vld [vmem:[#allocation1 + $0x36a] sm:$0x80]   ;;  %v858_v11 = vsel %vm533_vm4, %v856_v62, %v854_v7  ;;  %v921_v18 = vld [vmem:[#allocation1 + $0x3a6] sm:$0x8]   ;;  %v753_v19 = vsel %vm537_vm5, %v751_v6, %v749_v13  ;;  %v1751_v20 = vld [vmem:[%s2569_s0 + $0x9a] sm:$0x3] }
  0x31   :  { %v862_v16 = vsel %vm537_vm5, %v860_v3, %v858_v11  ;;  %v913_v17 = vld [vmem:[#allocation1 + $0x1a8] sm:$0x2]   ;;  %v757_v23 = vsel %vm541_vm6, %v755_v10, %v753_v19  ;;  %111 = vst [vmem:[#allocation1 + $0x328] sm:$0x3] %v1727_v15  ;;  %v1759_v24 = vld [vmem:[%s2569_s0 + $0x8a] sm:$0x3] }
  0x32   :  { %v866_v21 = vsel %vm541_vm6, %v864_v8, %v862_v16  ;;  %v925_v22 = vld [vmem:[#allocation1 + $0xe5] sm:$0x10]   ;;  %s1849_s10 = smov 104   ;;  %207 = vst [vmem:[#allocation1 + $0x268] sm:$0x3] %v1751_v20  ;;  %s1850_s29 = smov 88  }
  0x33   :  { %867 = vrot.lane.b32.xlu1 %v866_v21, %s1848_s30  ;;  %v911_v25 = vld [vmem:[#allocation1 + $0xa9] sm:$0x1]   ;;  %758 = vrot.lane.b32.xlu2 %v757_v23, %s1849_s10  ;;  %v1783_v26 = vld [vmem:[%s2569_s0 + $0x5a] sm:$0x3]  ;;  %239 = vst [vmem:[#allocation1 + $0x228] sm:$0x3] %v1759_v24 }
  0x34   :  { %v915_v27 = vsel %vm517_vm0, %v913_v17, %v911_v25  ;;  %v1791_v28 = vld [vmem:[%s2569_s0 + $0x4a] sm:$0x3]  ;;  %v1815_v29 = vld [vmem:[%s2569_s0 + $0x1a] sm:$0x3]  ;;  %v929_v31 = vld [vmem:[#allocation1 + $0x1e4] sm:$0x20]  }
  0x35   :  { %v919_v30 = vsel %vm521_vm1, %v917_v12, %v915_v27  ;;  %335 = vst [vmem:[#allocation1 + $0x168] sm:$0x3] %v1783_v26  ;;  %v1823_v32 = vld [vmem:[%s2569_s0 + $0xa] sm:$0x3]  ;;  %v933_v34 = vld [vmem:[#allocation1 + $0x2e3] sm:$0x40]  }
  0x36   :  { %v923_v33 = vsel %vm525_vm2, %v921_v18, %v919_v30  ;;  %367 = vst [vmem:[#allocation1 + $0x128] sm:$0x3] %v1791_v28  ;;  %v1720_v35 = vld [vmem:[%s2569_s0 + $0xd8] sm:$0x3]  ;;  %v937_v37 = vld [vmem:[#allocation1 + $0x3e2] sm:$0x80]  }
  0x37   :  { %v927_v36 = vsel %vm529_vm3, %v925_v22, %v923_v33  ;;  %463 = vst [vmem:[#allocation1 + $0x68] sm:$0x3] %v1815_v29  ;;  %v1728_v38 = vld [vmem:[%s2569_s0 + $0xc8] sm:$0x3]  ;;  %v1752_v40 = vld [vmem:[%s2569_s0 + $0x98] sm:$0x3] }
  0x38   :  { %v931_v39 = vsel %vm533_vm4, %v929_v31, %v927_v36  ;;  %495 = vst [vmem:[#allocation1 + $0x28] sm:$0x3] %v1823_v32  ;;  %v1760_v42 = vld [vmem:[%s2569_s0 + $0x88] sm:$0x3]  ;;  %v1784_v44 = vld [vmem:[%s2569_s0 + $0x58] sm:$0x3] }
  0x39   :  { %v935_v41 = vsel %vm537_vm5, %v933_v34, %v931_v39  ;;  %83 = vst [vmem:[#allocation1 + $0x360] sm:$0x3] %v1720_v35  ;;  %v1792_v45 = vld [vmem:[%s2569_s0 + $0x48] sm:$0x3]  ;;  %v1816_v46 = vld [vmem:[%s2569_s0 + $0x18] sm:$0x3] }
  0x3a   :  { %v939_v43 = vsel %vm541_vm6, %v937_v37, %v935_v41  ;;  %115 = vst [vmem:[#allocation1 + $0x320] sm:$0x3] %v1728_v38  ;;  %v1824_v47 = vld [vmem:[%s2569_s0 + $0x8] sm:$0x3]  ;;  %v765_v48 = vld [vmem:[#allocation1 + $0xb1] sm:$0x1]  }
  0x3b   :  { %940 = vrot.lane.b32.xlu0 %v939_v43, %s1850_s29  ;;  %211 = vst [vmem:[#allocation1 + $0x260] sm:$0x3] %v1752_v40  ;;  %v958_v50 = vld [vmem:[#allocation1 + $0x325] sm:$0x8]   ;;  %v767_v51 = vld [vmem:[#allocation1 + $0x1b0] sm:$0x2]  }
  0x3c   :  { %243 = vst [vmem:[#allocation1 + $0x220] sm:$0x3] %v1760_v42  ;;  %v954_v52 = vld [vmem:[#allocation1 + $0x226] sm:$0x4]   ;;  %v769_v53 = vsel %vm517_vm0, %v767_v51, %v765_v48  ;;  %v771_v54 = vld [vmem:[#allocation1 + $0x2af] sm:$0x4]  }
  0x3d   :  { %v950_v49 = vld [vmem:[#allocation1 + $0x127] sm:$0x2]   ;;  %339 = vst [vmem:[#allocation1 + $0x160] sm:$0x3] %v1784_v44  ;;  %v773_v56 = vsel %vm521_vm1, %v771_v54, %v769_v53  ;;  %v775_v57 = vld [vmem:[#allocation1 + $0x3ae] sm:$0x8]  }
  0x3e   :  { %371 = vst [vmem:[#allocation1 + $0x120] sm:$0x3] %v1792_v45  ;;  %v962_v59 = vld [vmem:[#allocation1 + $0x64] sm:$0x10]   ;;  %v777_v60 = vsel %vm525_vm2, %v775_v57, %v773_v56  ;;  %v779_v61 = vld [vmem:[#allocation1 + $0xed] sm:$0x10]  }
  0x3f   :  { %v948_v55 = vld [vmem:[#allocation1 + $0x28] sm:$0x1]   ;;  %467 = vst [vmem:[#allocation1 + $0x60] sm:$0x3] %v1816_v46  ;;  %v781_v0 = vsel %vm529_vm3, %v779_v61, %v777_v60  ;;  %v783_v1 = vld [vmem:[#allocation1 + $0x1ec] sm:$0x20]  }
  0x40   :  { %v952_v58 = vsel %vm517_vm0, %v950_v49, %v948_v55  ;;  %499 = vst [vmem:[#allocation1 + $0x20] sm:$0x3] %v1824_v47  ;;  %v966_v63 = vld [vmem:[#allocation1 + $0x163] sm:$0x20]   ;;  %v787_v2 = vld [vmem:[#allocation1 + $0x2eb] sm:$0x40]   ;;  %v785_v5 = vsel %vm533_vm4, %v783_v1, %v781_v0 }
  0x41   :  { %v956_v62 = vsel %vm521_vm1, %v954_v52, %v952_v58  ;;  %v970_v4 = vld [vmem:[#allocation1 + $0x262] sm:$0x40]   ;;  %v791_v6 = vld [vmem:[#allocation1 + $0x3ea] sm:$0x80]   ;;  %v1704_v7 = vld [vmem:[%s2569_s0 + $0xf8] sm:$0x3]  ;;  %v789_v10 = vsel %vm537_vm5, %v787_v2, %v785_v5 }
  0x42   :  { %v960_v3 = vsel %vm525_vm2, %v958_v50, %v956_v62  ;;  %v974_v9 = vld [vmem:[#allocation1 + $0x361] sm:$0x80]   ;;  %19 = vst [vmem:[#allocation1 + $0x3e0] sm:$0x3] %v1704_v7  ;;  %v793_v14 = vsel %vm541_vm6, %v791_v6, %v789_v10  ;;  %v1736_v15 = vld [vmem:[%s2569_s0 + $0xb8] sm:$0x3] }
  0x43   :  { %v964_v8 = vsel %vm529_vm3, %v962_v59, %v960_v3  ;;  %v1712_v11 = vld [vmem:[%s2569_s0 + $0xe8] sm:$0x3]  ;;  %v1027_v13 = vld [vmem:[#allocation1 + $0x21f] sm:$0x4]   ;;  %794 = vrot.lane.b32.xlu2 %v793_v14, %s1849_s10  ;;  %147 = vst [vmem:[#allocation1 + $0x2e0] sm:$0x3] %v1736_v15 }
  0x44   :  { %v968_v12 = vsel %vm533_vm4, %v966_v63, %v964_v8  ;;  %51 = vst [vmem:[#allocation1 + $0x3a0] sm:$0x3] %v1712_v11  ;;  %v1031_v18 = vld [vmem:[#allocation1 + $0x31e] sm:$0x8]   ;;  %v1744_v19 = vld [vmem:[%s2569_s0 + $0xa8] sm:$0x3] }
  0x45   :  { %v972_v16 = vsel %vm537_vm5, %v970_v4, %v968_v12  ;;  %v1023_v17 = vld [vmem:[#allocation1 + $0x120] sm:$0x2]   ;;  %179 = vst [vmem:[#allocation1 + $0x2a0] sm:$0x3] %v1744_v19  ;;  %v1768_v22 = vld [vmem:[%s2569_s0 + $0x78] sm:$0x3] }
  0x46   :  { %v976_v20 = vsel %vm541_vm6, %v974_v9, %v972_v16  ;;  %v1035_v21 = vld [vmem:[#allocation1 + $0x5d] sm:$0x10]   ;;  %s1851_s17 = smov 80   ;;  %275 = vst [vmem:[#allocation1 + $0x1e0] sm:$0x3] %v1768_v22  ;;  %s1852_s24 = smov 72  }
  0x47   :  { %977 = vrot.lane.b32.xlu1 %v976_v20, %s1851_s17  ;;  %v1021_v23 = vld [vmem:[#allocation1 + $0x21] sm:$0x1]   ;;  %v1776_v25 = vld [vmem:[%s2569_s0 + $0x68] sm:$0x3]  ;;  %v1800_v27 = vld [vmem:[%s2569_s0 + $0x38] sm:$0x3] }
  0x48   :  { %v1039_v24 = vld [vmem:[#allocation1 + $0x15c] sm:$0x20]   ;;  %v1025_v26 = vsel %vm517_vm0, %v1023_v17, %v1021_v23  ;;  %307 = vst [vmem:[#allocation1 + $0x1a0] sm:$0x3] %v1776_v25  ;;  %v1808_v28 = vld [vmem:[%s2569_s0 + $0x28] sm:$0x3] }
  0x49   :  { %v1029_v29 = vsel %vm521_vm1, %v1027_v13, %v1025_v26  ;;  %403 = vst [vmem:[#allocation1 + $0xe0] sm:$0x3] %v1800_v27  ;;  %v875_v30 = vld [vmem:[#allocation1 + $0x29] sm:$0x1]   ;;  %v1043_v33 = vld [vmem:[#allocation1 + $0x25b] sm:$0x40]  }
  0x4a   :  { %v877_v31 = vld [vmem:[#allocation1 + $0x128] sm:$0x2]   ;;  %v1033_v32 = vsel %vm525_vm2, %v1031_v18, %v1029_v29  ;;  %435 = vst [vmem:[#allocation1 + $0xa0] sm:$0x3] %v1808_v28  ;;  %v1047_v36 = vld [vmem:[#allocation1 + $0x35a] sm:$0x80]  }
  0x4b   :  { %v879_v34 = vsel %vm517_vm0, %v877_v31, %v875_v30  ;;  %v1037_v35 = vsel %vm529_vm3, %v1035_v21, %v1033_v32  ;;  %v881_v37 = vld [vmem:[#allocation1 + $0x227] sm:$0x4]   ;;  %v1067_v50 = vld [vmem:[#allocation1 + $0x39e] sm:$0x8]   ;;  %v1140_v52 = vld [vmem:[#allocation1 + $0x39d] sm:$0x8]  }
  0x4c   :  { %v1041_v38 = vsel %vm533_vm4, %v1039_v24, %v1037_v35  ;;  %v883_v39 = vsel %vm521_vm1, %v881_v37, %v879_v34  ;;  %v885_v40 = vld [vmem:[#allocation1 + $0x326] sm:$0x8]   ;;  %v1063_v45 = vld [vmem:[#allocation1 + $0x29f] sm:$0x4]   ;;  %v1136_v46 = vld [vmem:[#allocation1 + $0x29e] sm:$0x4]  }
  0x4d   :  { %v1045_v41 = vsel %vm537_vm5, %v1043_v33, %v1041_v38  ;;  %v887_v42 = vsel %vm525_vm2, %v885_v40, %v883_v39  ;;  %v889_v43 = vld [vmem:[#allocation1 + $0x65] sm:$0x10]   ;;  %v1075_v60 = vld [vmem:[#allocation1 + $0x1dc] sm:$0x20]   ;;  %v1148_v62 = vld [vmem:[#allocation1 + $0x1db] sm:$0x20]  }
  0x4e   :  { %v1049_v44 = vsel %vm541_vm6, %v1047_v36, %v1045_v41  ;;  %v891_v47 = vsel %vm529_vm3, %v889_v43, %v887_v42  ;;  %v893_v48 = vld [vmem:[#allocation1 + $0x164] sm:$0x20]   ;;  %v1721_v0 = vld [vmem:[%s2569_s0 + $0xd6] sm:$0x3]  ;;  %v1079_v2 = vld [vmem:[#allocation1 + $0x2db] sm:$0x40]  }
  0x4f   :  { %1050 = vrot.lane.b32.xlu0 %v1049_v44, %s1852_s24  ;;  %v1059_v49 = vld [vmem:[#allocation1 + $0x1a0] sm:$0x2]   ;;  %v1132_v51 = vld [vmem:[#allocation1 + $0x19f] sm:$0x2]   ;;  %v895_v53 = vsel %vm533_vm4, %v893_v48, %v891_v47  ;;  %v897_v54 = vld [vmem:[#allocation1 + $0x263] sm:$0x40]  }
  0x50   :  { %v1071_v55 = vld [vmem:[#allocation1 + $0xdd] sm:$0x10]   ;;  %v1144_v56 = vld [vmem:[#allocation1 + $0xdc] sm:$0x10]   ;;  %v899_v57 = vsel %vm537_vm5, %v897_v54, %v895_v53  ;;  %v901_v58 = vld [vmem:[#allocation1 + $0x362] sm:$0x80]  }
  0x51   :  { %v1057_v59 = vld [vmem:[#allocation1 + $0xa1] sm:$0x1]   ;;  %v1130_v61 = vld [vmem:[#allocation1 + $0xa0] sm:$0x1]   ;;  %v903_v63 = vsel %vm541_vm6, %v901_v58, %v899_v57  ;;  %87 = vst [vmem:[#allocation1 + $0x358] sm:$0x3] %v1721_v0 }
  0x52   :  { %v1061_v1 = vsel %vm517_vm0, %v1059_v49, %v1057_v59  ;;  %v1134_v3 = vsel %vm517_vm0, %v1132_v51, %v1130_v61  ;;  %904 = vrot.lane.b32.xlu2 %v903_v63, %s1850_s29  ;;  %v1729_v4 = vld [vmem:[%s2569_s0 + $0xc6] sm:$0x3]  ;;  %v1753_v5 = vld [vmem:[%s2569_s0 + $0x96] sm:$0x3]  ;;  %v1083_v7 = vld [vmem:[#allocation1 + $0x3da] sm:$0x80]  }
  0x53   :  { %v1065_v6 = vsel %vm521_vm1, %v1063_v45, %v1061_v1  ;;  %v1138_v8 = vsel %vm521_vm1, %v1136_v46, %v1134_v3  ;;  %v1156_v9 = vld [vmem:[#allocation1 + $0x3d9] sm:$0x80]   ;;  %119 = vst [vmem:[#allocation1 + $0x318] sm:$0x3] %v1729_v4  ;;  %v1761_v10 = vld [vmem:[%s2569_s0 + $0x86] sm:$0x3] }
  0x54   :  { %v1785_v11 = vld [vmem:[%s2569_s0 + $0x56] sm:$0x3]  ;;  %v1069_v12 = vsel %vm525_vm2, %v1067_v50, %v1065_v6  ;;  %v1142_v13 = vsel %vm525_vm2, %v1140_v52, %v1138_v8  ;;  %v1152_v14 = vld [vmem:[#allocation1 + $0x2da] sm:$0x40]   ;;  %215 = vst [vmem:[#allocation1 + $0x258] sm:$0x3] %v1753_v5 }
  0x55   :  { %v1793_v15 = vld [vmem:[%s2569_s0 + $0x46] sm:$0x3]  ;;  %v1073_v16 = vsel %vm529_vm3, %v1071_v55, %v1069_v12  ;;  %v1146_v17 = vsel %vm529_vm3, %v1144_v56, %v1142_v13  ;;  %247 = vst [vmem:[#allocation1 + $0x218] sm:$0x3] %v1761_v10  ;;  %v1817_v18 = vld [vmem:[%s2569_s0 + $0x16] sm:$0x3] }
  0x56   :  { %v1825_v19 = vld [vmem:[%s2569_s0 + $0x6] sm:$0x3]  ;;  %v1077_v20 = vsel %vm533_vm4, %v1075_v60, %v1073_v16  ;;  %v1150_v21 = vsel %vm533_vm4, %v1148_v62, %v1146_v17  ;;  %343 = vst [vmem:[#allocation1 + $0x158] sm:$0x3] %v1785_v11  ;;  %v984_v22 = vld [vmem:[#allocation1 + $0xa8] sm:$0x1]  }
  0x57   :  { %v986_v23 = vld [vmem:[#allocation1 + $0x1a7] sm:$0x2]   ;;  %v1081_v24 = vsel %vm537_vm5, %v1079_v2, %v1077_v20  ;;  %v1154_v25 = vsel %vm537_vm5, %v1152_v14, %v1150_v21  ;;  %375 = vst [vmem:[#allocation1 + $0x118] sm:$0x3] %v1793_v15  ;;  %s1853_s13 = smov 64   ;;  %s1854_s8 = smov 56  }
  0x58   :  { %v988_v26 = vsel %vm517_vm0, %v986_v23, %v984_v22  ;;  %v990_v27 = vld [vmem:[#allocation1 + $0x2a6] sm:$0x4]   ;;  %v1085_v29 = vsel %vm541_vm6, %v1083_v7, %v1081_v24  ;;  %v1158_v30 = vsel %vm541_vm6, %v1156_v9, %v1154_v25  ;;  %471 = vst [vmem:[#allocation1 + $0x58] sm:$0x3] %v1817_v18  ;;  %v1705_v40 = vld [vmem:[%s2569_s0 + $0xf6] sm:$0x3] }
  0x59   :  { %v994_v28 = vld [vmem:[#allocation1 + $0x3a5] sm:$0x8]   ;;  %v992_v31 = vsel %vm521_vm1, %v990_v27, %v988_v26  ;;  %1086 = vrot.lane.b32.xlu1 %v1085_v29, %s1852_s24  ;;  %1159 = vrot.lane.b32.xlu0 %v1158_v30, %s1853_s13  ;;  %503 = vst [vmem:[#allocation1 + $0x18] sm:$0x3] %v1825_v19  ;;  %v1713_v48 = vld [vmem:[%s2569_s0 + $0xe6] sm:$0x3] }
  0x5a   :  { %v998_v32 = vld [vmem:[#allocation1 + $0xe4] sm:$0x10]   ;;  %v996_v34 = vsel %vm525_vm2, %v994_v28, %v992_v31  ;;  %23 = vst [vmem:[#allocation1 + $0x3d8] sm:$0x3] %v1705_v40  ;;  %v1177_v45 = vld [vmem:[#allocation1 + $0x316] sm:$0x8]  }
  0x5b   :  { %v1002_v33 = vld [vmem:[#allocation1 + $0x1e3] sm:$0x20]   ;;  %v1000_v35 = vsel %vm529_vm3, %v998_v32, %v996_v34  ;;  %v1250_v47 = vld [vmem:[#allocation1 + $0x315] sm:$0x8]   ;;  %55 = vst [vmem:[#allocation1 + $0x398] sm:$0x3] %v1713_v48 }
  0x5c   :  { %v1006_v36 = vld [vmem:[#allocation1 + $0x2e2] sm:$0x40]   ;;  %v1004_v37 = vsel %vm533_vm4, %v1002_v33, %v1000_v35  ;;  %v1173_v41 = vld [vmem:[#allocation1 + $0x217] sm:$0x4]   ;;  %v1246_v42 = vld [vmem:[#allocation1 + $0x216] sm:$0x4]  }
  0x5d   :  { %v1010_v38 = vld [vmem:[#allocation1 + $0x3e1] sm:$0x80]   ;;  %v1008_v39 = vsel %vm537_vm5, %v1006_v36, %v1004_v37  ;;  %v1185_v52 = vld [vmem:[#allocation1 + $0x154] sm:$0x20]   ;;  %v1258_v54 = vld [vmem:[#allocation1 + $0x153] sm:$0x20]  }
  0x5e   :  { %v1012_v43 = vsel %vm541_vm6, %v1010_v38, %v1008_v39  ;;  %v1169_v44 = vld [vmem:[#allocation1 + $0x118] sm:$0x2]   ;;  %v1242_v46 = vld [vmem:[#allocation1 + $0x117] sm:$0x2]   ;;  %v1737_v55 = vld [vmem:[%s2569_s0 + $0xb6] sm:$0x3] }
  0x5f   :  { %1013 = vrot.lane.b32.xlu2 %v1012_v43, %s1851_s17  ;;  %v1181_v49 = vld [vmem:[#allocation1 + $0x55] sm:$0x10]   ;;  %v1254_v50 = vld [vmem:[#allocation1 + $0x54] sm:$0x10]   ;;  %151 = vst [vmem:[#allocation1 + $0x2d8] sm:$0x3] %v1737_v55 }
  0x60   :  { %v1167_v51 = vld [vmem:[#allocation1 + $0x19] sm:$0x1]   ;;  %v1240_v53 = vld [vmem:[#allocation1 + $0x18] sm:$0x1]   ;;  %v1745_v59 = vld [vmem:[%s2569_s0 + $0xa6] sm:$0x3] }
  0x61   :  { %v1171_v56 = vsel %vm517_vm0, %v1169_v44, %v1167_v51  ;;  %v1189_v57 = vld [vmem:[#allocation1 + $0x253] sm:$0x40]   ;;  %v1244_v58 = vsel %vm517_vm0, %v1242_v46, %v1240_v53  ;;  %v1769_v60 = vld [vmem:[%s2569_s0 + $0x76] sm:$0x3]  ;;  %183 = vst [vmem:[#allocation1 + $0x298] sm:$0x3] %v1745_v59 }
  0x62   :  { %v1175_v61 = vsel %vm521_vm1, %v1173_v41, %v1171_v56  ;;  %v1193_v62 = vld [vmem:[#allocation1 + $0x352] sm:$0x80]   ;;  %v1248_v63 = vsel %vm521_vm1, %v1246_v42, %v1244_v58  ;;  %v1777_v0 = vld [vmem:[%s2569_s0 + $0x66] sm:$0x3]  ;;  %v1801_v1 = vld [vmem:[%s2569_s0 + $0x36] sm:$0x3] }
  0x63   :  { %v1179_v2 = vsel %vm525_vm2, %v1177_v45, %v1175_v61  ;;  %v1252_v3 = vsel %vm525_vm2, %v1250_v47, %v1248_v63  ;;  %v1262_v4 = vld [vmem:[#allocation1 + $0x252] sm:$0x40]   ;;  %279 = vst [vmem:[#allocation1 + $0x1d8] sm:$0x3] %v1769_v60  ;;  %v1809_v5 = vld [vmem:[%s2569_s0 + $0x26] sm:$0x3] }
  0x64   :  { %v1183_v6 = vsel %vm529_vm3, %v1181_v49, %v1179_v2  ;;  %v1256_v7 = vsel %vm529_vm3, %v1254_v50, %v1252_v3  ;;  %v1266_v8 = vld [vmem:[#allocation1 + $0x351] sm:$0x80]   ;;  %311 = vst [vmem:[#allocation1 + $0x198] sm:$0x3] %v1777_v0  ;;  %v1706_v9 = vld [vmem:[%s2569_s0 + $0xf4] sm:$0x3] }
  0x65   :  { %v1187_v10 = vsel %vm533_vm4, %v1185_v52, %v1183_v6  ;;  %v1260_v11 = vsel %vm533_vm4, %v1258_v54, %v1256_v7  ;;  %407 = vst [vmem:[#allocation1 + $0xd8] sm:$0x3] %v1801_v1  ;;  %v1714_v12 = vld [vmem:[%s2569_s0 + $0xe4] sm:$0x3]  ;;  %v1738_v15 = vld [vmem:[%s2569_s0 + $0xb4] sm:$0x3] }
  0x66   :  { %v1191_v13 = vsel %vm537_vm5, %v1189_v57, %v1187_v10  ;;  %v1264_v14 = vsel %vm537_vm5, %v1262_v4, %v1260_v11  ;;  %439 = vst [vmem:[#allocation1 + $0x98] sm:$0x3] %v1809_v5  ;;  %v1746_v18 = vld [vmem:[%s2569_s0 + $0xa4] sm:$0x3]  ;;  %s1855_s9 = smov 48   ;;  %s1856_s21 = smov 40  }
  0x67   :  { %v1195_v16 = vsel %vm541_vm6, %v1193_v62, %v1191_v13  ;;  %v1268_v17 = vsel %vm541_vm6, %v1266_v8, %v1264_v14  ;;  %27 = vst [vmem:[#allocation1 + $0x3d0] sm:$0x3] %v1706_v9  ;;  %v1770_v19 = vld [vmem:[%s2569_s0 + $0x74] sm:$0x3]  ;;  %v1778_v20 = vld [vmem:[%s2569_s0 + $0x64] sm:$0x3] }
  0x68   :  { %1196 = vrot.lane.b32.xlu1 %v1195_v16, %s1854_s8  ;;  %1269 = vrot.lane.b32.xlu0 %v1268_v17, %s1855_s9  ;;  %59 = vst [vmem:[#allocation1 + $0x390] sm:$0x3] %v1714_v12  ;;  %v1802_v21 = vld [vmem:[%s2569_s0 + $0x34] sm:$0x3]  ;;  %v1810_v22 = vld [vmem:[%s2569_s0 + $0x24] sm:$0x3] }
  0x69   :  { %155 = vst [vmem:[#allocation1 + $0x2d0] sm:$0x3] %v1738_v15  ;;  %v1094_v23 = vld [vmem:[#allocation1 + $0x20] sm:$0x1]   ;;  %v1286_v25 = vld [vmem:[#allocation1 + $0x395] sm:$0x8]  }
  0x6a   :  { %187 = vst [vmem:[#allocation1 + $0x290] sm:$0x3] %v1746_v18  ;;  %v1096_v26 = vld [vmem:[#allocation1 + $0x11f] sm:$0x2]   ;;  %v1282_v27 = vld [vmem:[#allocation1 + $0x296] sm:$0x4]  }
  0x6b   :  { %v1278_v24 = vld [vmem:[#allocation1 + $0x197] sm:$0x2]   ;;  %283 = vst [vmem:[#allocation1 + $0x1d0] sm:$0x3] %v1770_v19  ;;  %v1098_v28 = vsel %vm517_vm0, %v1096_v26, %v1094_v23  ;;  %v1100_v29 = vld [vmem:[#allocation1 + $0x21e] sm:$0x4]  }
  0x6c   :  { %315 = vst [vmem:[#allocation1 + $0x190] sm:$0x3] %v1778_v20  ;;  %v1102_v31 = vsel %vm521_vm1, %v1100_v29, %v1098_v28  ;;  %v1104_v32 = vld [vmem:[#allocation1 + $0x31d] sm:$0x8]   ;;  %v1290_v34 = vld [vmem:[#allocation1 + $0xd4] sm:$0x10]  }
  0x6d   :  { %v1276_v30 = vld [vmem:[#allocation1 + $0x98] sm:$0x1]   ;;  %411 = vst [vmem:[#allocation1 + $0xd0] sm:$0x3] %v1802_v21  ;;  %v1106_v35 = vsel %vm525_vm2, %v1104_v32, %v1102_v31  ;;  %v1108_v36 = vld [vmem:[#allocation1 + $0x5c] sm:$0x10]  }
  0x6e   :  { %v1280_v33 = vsel %vm517_vm0, %v1278_v24, %v1276_v30  ;;  %443 = vst [vmem:[#allocation1 + $0x90] sm:$0x3] %v1810_v22  ;;  %v1294_v38 = vld [vmem:[#allocation1 + $0x1d3] sm:$0x20]   ;;  %v1110_v39 = vsel %vm529_vm3, %v1108_v36, %v1106_v35  ;;  %v1112_v40 = vld [vmem:[#allocation1 + $0x15b] sm:$0x20]  }
  0x6f   :  { %v1284_v37 = vsel %vm521_vm1, %v1282_v27, %v1280_v33  ;;  %v1116_v41 = vld [vmem:[#allocation1 + $0x25a] sm:$0x40]   ;;  %v1298_v43 = vld [vmem:[#allocation1 + $0x2d2] sm:$0x40]   ;;  %v1114_v44 = vsel %vm533_vm4, %v1112_v40, %v1110_v39  ;;  %v1722_v46 = vld [vmem:[%s2569_s0 + $0xd4] sm:$0x3] }
  0x70   :  { %v1288_v42 = vsel %vm525_vm2, %v1286_v25, %v1284_v37  ;;  %v1120_v45 = vld [vmem:[#allocation1 + $0x359] sm:$0x80]   ;;  %v1302_v48 = vld [vmem:[#allocation1 + $0x3d1] sm:$0x80]   ;;  %v1118_v49 = vsel %vm537_vm5, %v1116_v41, %v1114_v44  ;;  %91 = vst [vmem:[#allocation1 + $0x350] sm:$0x3] %v1722_v46 }
  0x71   :  { %v1292_v47 = vsel %vm529_vm3, %v1290_v34, %v1288_v42  ;;  %v1730_v50 = vld [vmem:[%s2569_s0 + $0xc4] sm:$0x3]  ;;  %v1355_v52 = vld [vmem:[#allocation1 + $0x28f] sm:$0x4]   ;;  %v1122_v53 = vsel %vm541_vm6, %v1120_v45, %v1118_v49  ;;  %v1754_v54 = vld [vmem:[%s2569_s0 + $0x94] sm:$0x3] }
  0x72   :  { %v1296_v51 = vsel %vm533_vm4, %v1294_v38, %v1292_v47  ;;  %123 = vst [vmem:[#allocation1 + $0x310] sm:$0x3] %v1730_v50  ;;  %v1359_v57 = vld [vmem:[#allocation1 + $0x38e] sm:$0x8]   ;;  %1123 = vrot.lane.b32.xlu2 %v1122_v53, %s1853_s13  ;;  %v1762_v58 = vld [vmem:[%s2569_s0 + $0x84] sm:$0x3] }
  0x73   :  { %v1300_v55 = vsel %vm537_vm5, %v1298_v43, %v1296_v51  ;;  %v1351_v56 = vld [vmem:[#allocation1 + $0x190] sm:$0x2]   ;;  %219 = vst [vmem:[#allocation1 + $0x250] sm:$0x3] %v1754_v54  ;;  %v1786_v61 = vld [vmem:[%s2569_s0 + $0x54] sm:$0x3] }
  0x74   :  { %v1304_v59 = vsel %vm541_vm6, %v1302_v48, %v1300_v55  ;;  %v1363_v60 = vld [vmem:[#allocation1 + $0xcd] sm:$0x10]   ;;  %251 = vst [vmem:[#allocation1 + $0x210] sm:$0x3] %v1762_v58  ;;  %v1794_v0 = vld [vmem:[%s2569_s0 + $0x44] sm:$0x3] }
  0x75   :  { %1305 = vrot.lane.b32.xlu1 %v1304_v59, %s1855_s9  ;;  %v1349_v62 = vld [vmem:[#allocation1 + $0x91] sm:$0x1]   ;;  %347 = vst [vmem:[#allocation1 + $0x150] sm:$0x3] %v1786_v61  ;;  %v1818_v2 = vld [vmem:[%s2569_s0 + $0x14] sm:$0x3] }
  0x76   :  { %v1367_v63 = vld [vmem:[#allocation1 + $0x1cc] sm:$0x20]   ;;  %v1353_v1 = vsel %vm517_vm0, %v1351_v56, %v1349_v62  ;;  %379 = vst [vmem:[#allocation1 + $0x110] sm:$0x3] %v1794_v0  ;;  %v1826_v3 = vld [vmem:[%s2569_s0 + $0x4] sm:$0x3] }
  0x77   :  { %v1357_v4 = vsel %vm521_vm1, %v1355_v52, %v1353_v1  ;;  %475 = vst [vmem:[#allocation1 + $0x50] sm:$0x3] %v1818_v2  ;;  %v1723_v5 = vld [vmem:[%s2569_s0 + $0xd2] sm:$0x3]  ;;  %v1731_v6 = vld [vmem:[%s2569_s0 + $0xc2] sm:$0x3] }
  0x78   :  { %v1361_v7 = vsel %vm525_vm2, %v1359_v57, %v1357_v4  ;;  %v1371_v8 = vld [vmem:[#allocation1 + $0x2cb] sm:$0x40]   ;;  %507 = vst [vmem:[#allocation1 + $0x10] sm:$0x3] %v1826_v3  ;;  %v1755_v9 = vld [vmem:[%s2569_s0 + $0x92] sm:$0x3] }
  0x79   :  { %v1365_v10 = vsel %vm529_vm3, %v1363_v60, %v1361_v7  ;;  %v1375_v11 = vld [vmem:[#allocation1 + $0x3ca] sm:$0x80]   ;;  %95 = vst [vmem:[#allocation1 + $0x348] sm:$0x3] %v1723_v5  ;;  %v1763_v12 = vld [vmem:[%s2569_s0 + $0x82] sm:$0x3] }
  0x7a   :  { %v1369_v13 = vsel %vm533_vm4, %v1367_v63, %v1365_v10  ;;  %127 = vst [vmem:[#allocation1 + $0x308] sm:$0x3] %v1731_v6  ;;  %v1787_v14 = vld [vmem:[%s2569_s0 + $0x52] sm:$0x3]  ;;  %v1795_v16 = vld [vmem:[%s2569_s0 + $0x42] sm:$0x3] }
  0x7b   :  { %v1373_v15 = vsel %vm537_vm5, %v1371_v8, %v1369_v13  ;;  %223 = vst [vmem:[#allocation1 + $0x248] sm:$0x3] %v1755_v9  ;;  %v1819_v18 = vld [vmem:[%s2569_s0 + $0x12] sm:$0x3]  ;;  %v1827_v20 = vld [vmem:[%s2569_s0 + $0x2] sm:$0x3] }
  0x7c   :  { %v1377_v17 = vsel %vm541_vm6, %v1375_v11, %v1373_v15  ;;  %255 = vst [vmem:[#allocation1 + $0x208] sm:$0x3] %v1763_v12  ;;  %v1392_v21 = vld [vmem:[#allocation1 + $0x20e] sm:$0x4]   ;;  %v1203_v24 = vld [vmem:[#allocation1 + $0x99] sm:$0x1]  }
  0x7d   :  { %1378 = vrot.lane.b32.xlu0 %v1377_v17, %s1856_s21  ;;  %v1388_v19 = vld [vmem:[#allocation1 + $0x10f] sm:$0x2]   ;;  %351 = vst [vmem:[#allocation1 + $0x148] sm:$0x3] %v1787_v14  ;;  %v1205_v27 = vld [vmem:[#allocation1 + $0x198] sm:$0x2]  }
  0x7e   :  { %v1396_v22 = vld [vmem:[#allocation1 + $0x30d] sm:$0x8]   ;;  %383 = vst [vmem:[#allocation1 + $0x108] sm:$0x3] %v1795_v16  ;;  %v1207_v30 = vsel %vm517_vm0, %v1205_v27, %v1203_v24  ;;  %v1209_v31 = vld [vmem:[#allocation1 + $0x297] sm:$0x4]  }
  0x7f   :  { %v1386_v23 = vld [vmem:[#allocation1 + $0x10] sm:$0x1]   ;;  %479 = vst [vmem:[#allocation1 + $0x48] sm:$0x3] %v1819_v18  ;;  %v1213_v32 = vld [vmem:[#allocation1 + $0x396] sm:$0x8]   ;;  %v1211_v35 = vsel %vm521_vm1, %v1209_v31, %v1207_v30 }
  0x80   :  { %v1390_v25 = vsel %vm517_vm0, %v1388_v19, %v1386_v23  ;;  %v1400_v26 = vld [vmem:[#allocation1 + $0x4c] sm:$0x10]   ;;  %511 = vst [vmem:[#allocation1 + $0x8] sm:$0x3] %v1827_v20  ;;  %v1217_v36 = vld [vmem:[#allocation1 + $0xd5] sm:$0x10]   ;;  %v1215_v40 = vsel %vm525_vm2, %v1213_v32, %v1211_v35 }
  0x81   :  { %v1394_v28 = vsel %vm521_vm1, %v1392_v21, %v1390_v25  ;;  %v1404_v29 = vld [vmem:[#allocation1 + $0x14b] sm:$0x20]   ;;  %v1221_v37 = vld [vmem:[#allocation1 + $0x1d4] sm:$0x20]   ;;  %v1219_v44 = vsel %vm529_vm3, %v1217_v36, %v1215_v40  ;;  %v1707_v46 = vld [vmem:[%s2569_s0 + $0xf2] sm:$0x3] }
  0x82   :  { %v1398_v33 = vsel %vm525_vm2, %v1396_v22, %v1394_v28  ;;  %v1408_v34 = vld [vmem:[#allocation1 + $0x24a] sm:$0x40]   ;;  %v1225_v41 = vld [vmem:[#allocation1 + $0x2d3] sm:$0x40]   ;;  %v1715_v47 = vld [vmem:[%s2569_s0 + $0xe2] sm:$0x3]  ;;  %v1223_v51 = vsel %vm533_vm4, %v1221_v37, %v1219_v44 }
  0x83   :  { %v1402_v38 = vsel %vm529_vm3, %v1400_v26, %v1398_v33  ;;  %v1412_v39 = vld [vmem:[#allocation1 + $0x349] sm:$0x80]   ;;  %v1465_v43 = vld [vmem:[#allocation1 + $0x207] sm:$0x4]   ;;  %v1229_v45 = vld [vmem:[#allocation1 + $0x3d2] sm:$0x80]   ;;  %v1227_v55 = vsel %vm537_vm5, %v1225_v41, %v1223_v51 }
  0x84   :  { %v1406_v42 = vsel %vm533_vm4, %v1404_v29, %v1402_v38  ;;  %v1469_v50 = vld [vmem:[#allocation1 + $0x306] sm:$0x8]   ;;  %31 = vst [vmem:[#allocation1 + $0x3c8] sm:$0x3] %v1707_v46  ;;  %v1739_v52 = vld [vmem:[%s2569_s0 + $0xb2] sm:$0x3]  ;;  %v1231_v59 = vsel %vm541_vm6, %v1229_v45, %v1227_v55 }
  0x85   :  { %v1410_v48 = vsel %vm537_vm5, %v1408_v34, %v1406_v42  ;;  %v1461_v49 = vld [vmem:[#allocation1 + $0x108] sm:$0x2]   ;;  %63 = vst [vmem:[#allocation1 + $0x388] sm:$0x3] %v1715_v47  ;;  %v1747_v56 = vld [vmem:[%s2569_s0 + $0xa2] sm:$0x3]  ;;  %1232 = vrot.lane.b32.xlu2 %v1231_v59, %s1854_s8 }
  0x86   :  { %v1414_v53 = vsel %vm541_vm6, %v1412_v39, %v1410_v48  ;;  %v1473_v54 = vld [vmem:[#allocation1 + $0x45] sm:$0x10]   ;;  %s1857_s2 = smov 32   ;;  %159 = vst [vmem:[#allocation1 + $0x2c8] sm:$0x3] %v1739_v52  ;;  %s1858_s12 = smov 24  }
  0x87   :  { %1415 = vrot.lane.b32.xlu1 %v1414_v53, %s1857_s2  ;;  %v1459_v57 = vld [vmem:[#allocation1 + $0x9] sm:$0x1]   ;;  %v1771_v60 = vld [vmem:[%s2569_s0 + $0x72] sm:$0x3]  ;;  %191 = vst [vmem:[#allocation1 + $0x288] sm:$0x3] %v1747_v56 }
  0x88   :  { %v1477_v58 = vld [vmem:[#allocation1 + $0x144] sm:$0x20]   ;;  %v1463_v61 = vsel %vm517_vm0, %v1461_v49, %v1459_v57  ;;  %v1779_v63 = vld [vmem:[%s2569_s0 + $0x62] sm:$0x3]  ;;  %v1803_v0 = vld [vmem:[%s2569_s0 + $0x32] sm:$0x3] }
  0x89   :  { %v1481_v62 = vld [vmem:[#allocation1 + $0x243] sm:$0x40]   ;;  %v1467_v1 = vsel %vm521_vm1, %v1465_v43, %v1463_v61  ;;  %287 = vst [vmem:[#allocation1 + $0x1c8] sm:$0x3] %v1771_v60  ;;  %v1811_v3 = vld [vmem:[%s2569_s0 + $0x22] sm:$0x3] }
  0x8a   :  { %v1485_v2 = vld [vmem:[#allocation1 + $0x342] sm:$0x80]   ;;  %v1313_v4 = vld [vmem:[#allocation1 + $0x11] sm:$0x1]   ;;  %v1471_v5 = vsel %vm525_vm2, %v1469_v50, %v1467_v1  ;;  %319 = vst [vmem:[#allocation1 + $0x188] sm:$0x3] %v1779_v63 }
  0x8b   :  { %v1315_v6 = vld [vmem:[#allocation1 + $0x110] sm:$0x2]   ;;  %v1475_v8 = vsel %vm529_vm3, %v1473_v54, %v1471_v5  ;;  %415 = vst [vmem:[#allocation1 + $0xc8] sm:$0x3] %v1803_v0  ;;  %v1732_v33 = vld [vmem:[%s2569_s0 + $0xc0] sm:$0x3] }
  0x8c   :  { %v1319_v7 = vld [vmem:[#allocation1 + $0x20f] sm:$0x4]   ;;  %v1317_v9 = vsel %vm517_vm0, %v1315_v6, %v1313_v4  ;;  %v1479_v12 = vsel %vm533_vm4, %v1477_v58, %v1475_v8  ;;  %447 = vst [vmem:[#allocation1 + $0x88] sm:$0x3] %v1811_v3  ;;  %v1505_v27 = vld [vmem:[#allocation1 + $0x386] sm:$0x8]   ;;  %v2455_v6 = vpop.permute.xlu1 %685  }
  0x8d   :  { %v1323_v10 = vld [vmem:[#allocation1 + $0x30e] sm:$0x8]   ;;  %v1321_v13 = vsel %vm521_vm1, %v1319_v7, %v1317_v9  ;;  %v1483_v14 = vsel %vm537_vm5, %v1481_v62, %v1479_v12  ;;  %v1578_v29 = vld [vmem:[#allocation1 + $0x385] sm:$0x8]   ;;  %131 = vst [vmem:[#allocation1 + $0x300] sm:$0x3] %v1732_v33  ;;  %v2451_v3 = vpop.permute.xlu2 %758  }
  0x8e   :  { %v1327_v11 = vld [vmem:[#allocation1 + $0x4d] sm:$0x10]   ;;  %v1325_v15 = vsel %vm525_vm2, %v1323_v10, %v1321_v13  ;;  %v1487_v17 = vsel %vm541_vm6, %v1485_v2, %v1483_v14  ;;  %v1501_v22 = vld [vmem:[#allocation1 + $0x287] sm:$0x4]   ;;  %v1574_v23 = vld [vmem:[#allocation1 + $0x286] sm:$0x4]   ;;  %v2449_v2 = vpop.permute.xlu0 %612  }
  0x8f   :  { %v1331_v16 = vld [vmem:[#allocation1 + $0x14c] sm:$0x20]   ;;  %v1329_v18 = vsel %vm529_vm3, %v1327_v11, %v1325_v15  ;;  %1488 = vrot.lane.b32.xlu0 %v1487_v17, %s1858_s12  ;;  %v1517_v38 = vld [vmem:[#allocation1 + $0x2c3] sm:$0x40]   ;;  %v1748_v41 = vld [vmem:[%s2569_s0 + $0xa0] sm:$0x3] }
  0x90   :  { %v1335_v19 = vld [vmem:[#allocation1 + $0x24b] sm:$0x40]   ;;  %v1333_v20 = vsel %vm533_vm4, %v1331_v16, %v1329_v18  ;;  %v1513_v35 = vld [vmem:[#allocation1 + $0x1c4] sm:$0x20]   ;;  %v1586_v46 = vld [vmem:[#allocation1 + $0x1c3] sm:$0x20]  }
  0x91   :  { %v1339_v21 = vld [vmem:[#allocation1 + $0x34a] sm:$0x80]   ;;  %v1337_v24 = vsel %vm537_vm5, %v1335_v19, %v1333_v20  ;;  %v1497_v26 = vld [vmem:[#allocation1 + $0x188] sm:$0x2]   ;;  %v1570_v28 = vld [vmem:[#allocation1 + $0x187] sm:$0x2]  }
  0x92   :  { %v1724_v25 = vld [vmem:[%s2569_s0 + $0xd0] sm:$0x3]  ;;  %v1341_v30 = vsel %vm541_vm6, %v1339_v21, %v1337_v24  ;;  %v1509_v31 = vld [vmem:[#allocation1 + $0xc5] sm:$0x10]   ;;  %v1582_v32 = vld [vmem:[#allocation1 + $0xc4] sm:$0x10]  }
  0x93   :  { %99 = vst [vmem:[#allocation1 + $0x340] sm:$0x3] %v1724_v25  ;;  %1342 = vrot.lane.b32.xlu2 %v1341_v30, %s1856_s21  ;;  %v1495_v34 = vld [vmem:[#allocation1 + $0x89] sm:$0x1]   ;;  %v1568_v36 = vld [vmem:[#allocation1 + $0x88] sm:$0x1]  }
  0x94   :  { %v1499_v37 = vsel %vm517_vm0, %v1497_v26, %v1495_v34  ;;  %v1572_v39 = vsel %vm517_vm0, %v1570_v28, %v1568_v36  ;;  %v1740_v40 = vld [vmem:[%s2569_s0 + $0xb0] sm:$0x3]  ;;  %v1521_v44 = vld [vmem:[#allocation1 + $0x3c2] sm:$0x80]   ;;  %v1764_v47 = vld [vmem:[%s2569_s0 + $0x80] sm:$0x3]  ;;  %v2469_v34 = vpop.permute.xlu1 %721  }
  0x95   :  { %v1756_v42 = vld [vmem:[%s2569_s0 + $0x90] sm:$0x3]  ;;  %v1503_v43 = vsel %vm521_vm1, %v1501_v22, %v1499_v37  ;;  %v1576_v45 = vsel %vm521_vm1, %v1574_v23, %v1572_v39  ;;  %163 = vst [vmem:[#allocation1 + $0x2c0] sm:$0x3] %v1740_v40  ;;  %v1590_v50 = vld [vmem:[#allocation1 + $0x2c2] sm:$0x40]  }
  0x96   :  { %v1507_v48 = vsel %vm525_vm2, %v1505_v27, %v1503_v43  ;;  %v1580_v49 = vsel %vm525_vm2, %v1578_v29, %v1576_v45  ;;  %195 = vst [vmem:[#allocation1 + $0x280] sm:$0x3] %v1748_v41  ;;  %v1788_v51 = vld [vmem:[%s2569_s0 + $0x50] sm:$0x3]  ;;  %v1594_v54 = vld [vmem:[#allocation1 + $0x3c1] sm:$0x80]   ;;  %v2464_v26 = vpop.permute.xlu0 %648  }
  0x97   :  { %v1511_v52 = vsel %vm529_vm3, %v1509_v31, %v1507_v48  ;;  %v1584_v53 = vsel %vm529_vm3, %v1582_v32, %v1580_v49  ;;  %227 = vst [vmem:[#allocation1 + $0x240] sm:$0x3] %v1756_v42  ;;  %v1796_v55 = vld [vmem:[%s2569_s0 + $0x40] sm:$0x3]  ;;  %v1804_v58 = vld [vmem:[%s2569_s0 + $0x30] sm:$0x3] }
  0x98   :  { %v1515_v56 = vsel %vm533_vm4, %v1513_v35, %v1511_v52  ;;  %v1588_v57 = vsel %vm533_vm4, %v1586_v46, %v1584_v53  ;;  %259 = vst [vmem:[#allocation1 + $0x200] sm:$0x3] %v1764_v47  ;;  %v1812_v61 = vld [vmem:[%s2569_s0 + $0x20] sm:$0x3]  ;;  %v1820_v0 = vld [vmem:[%s2569_s0 + $0x10] sm:$0x3] }
  0x99   :  { %v1519_v59 = vsel %vm537_vm5, %v1517_v38, %v1515_v56  ;;  %v1592_v60 = vsel %vm537_vm5, %v1590_v50, %v1588_v57  ;;  %355 = vst [vmem:[#allocation1 + $0x140] sm:$0x3] %v1788_v51  ;;  %v512_v1 = vld [vmem:[%s2569_s0] sm:$0x3]  ;;  %s1859_s7 = smov 16   ;;  %vm543_vm7 = vcmask 64512  }
  0x9a   :  { %v1523_v62 = vsel %vm541_vm6, %v1521_v44, %v1519_v59  ;;  %v1596_v63 = vsel %vm541_vm6, %v1594_v54, %v1592_v60  ;;  %387 = vst [vmem:[#allocation1 + $0x100] sm:$0x3] %v1796_v55  ;;  %v1422_v4 = vld [vmem:[#allocation1 + $0x90] sm:$0x1]   ;;  %v1532_v25 = vld [vmem:[#allocation1 + $0x8] sm:$0x1]  }
  0x9b   :  { %1524 = vrot.lane.b32.xlu1 %v1523_v62, %s1858_s12  ;;  %1597 = vrot.lane.b32.xlu0 %v1596_v63, %s1859_s7  ;;  %419 = vst [vmem:[#allocation1 + $0xc0] sm:$0x3] %v1804_v58  ;;  %v1424_v5 = vld [vmem:[#allocation1 + $0x18f] sm:$0x2]   ;;  %v1615_v30 = vld [vmem:[#allocation1 + $0x2fe] sm:$0x8]  }
  0x9c   :  { %451 = vst [vmem:[#allocation1 + $0x80] sm:$0x3] %v1812_v61  ;;  %v1426_v7 = vsel %vm517_vm0, %v1424_v5, %v1422_v4  ;;  %v1428_v8 = vld [vmem:[#allocation1 + $0x28e] sm:$0x4]   ;;  %v558_v29 = vld [vmem:[#allocation1 + $0x2bd] sm:$0x8]  }
  0x9d   :  { %483 = vst [vmem:[#allocation1 + $0x40] sm:$0x3] %v1820_v0  ;;  %v1430_v9 = vsel %vm521_vm1, %v1428_v8, %v1426_v7  ;;  %v1432_v10 = vld [vmem:[#allocation1 + $0x38d] sm:$0x8]   ;;  %v554_v17 = vld [vmem:[#allocation1 + $0x27e] sm:$0x4]   ;;  %v2466_v27 = vpop.permute.xlu2 %794  }
  0x9e   :  { %513 = vst [vmem:[#allocation1] sm:$0x3] %v512_v1  ;;  %v1434_v11 = vsel %vm525_vm2, %v1432_v10, %v1430_v9  ;;  %v550_v13 = vld [vmem:[#allocation1 + $0x23f] sm:$0x2]   ;;  %v1436_v14 = vld [vmem:[#allocation1 + $0xcc] sm:$0x10]   ;;  %v2501_v10 = vpop.permute.xlu0 %831  }
  0x9f   :  { %v548_v12 = vld [vmem:[#allocation1 + $0x200] sm:$0x1]   ;;  %v1438_v15 = vsel %vm529_vm3, %v1436_v14, %v1434_v11  ;;  %v1440_v16 = vld [vmem:[#allocation1 + $0x1cb] sm:$0x20]   ;;  %v1611_v22 = vld [vmem:[#allocation1 + $0x1ff] sm:$0x4]  }
  0xa0   :  { %v1442_v18 = vsel %vm533_vm4, %v1440_v16, %v1438_v15  ;;  %v1444_v19 = vld [vmem:[#allocation1 + $0x2ca] sm:$0x40]   ;;  %v552_v20 = vsel %vm517_vm0, %v550_v13, %v548_v12  ;;  %v1534_v32 = vld [vmem:[#allocation1 + $0x107] sm:$0x2]   ;;  %v1623_v43 = vld [vmem:[#allocation1 + $0x13c] sm:$0x20]  }
  0xa1   :  { %v1607_v21 = vld [vmem:[#allocation1 + $0x100] sm:$0x2]   ;;  %v1446_v23 = vsel %vm537_vm5, %v1444_v19, %v1442_v18  ;;  %v1448_v24 = vld [vmem:[#allocation1 + $0x3c9] sm:$0x80]   ;;  %v1538_v33 = vld [vmem:[#allocation1 + $0x206] sm:$0x4]   ;;  %v1536_v37 = vsel %vm517_vm0, %v1534_v32, %v1532_v25  ;;  %v556_v41 = vsel %vm521_vm1, %v554_v17, %v552_v20 }
  0xa2   :  { %v1450_v31 = vsel %vm541_vm6, %v1448_v24, %v1446_v23  ;;  %v1542_v38 = vld [vmem:[#allocation1 + $0x305] sm:$0x8]   ;;  %v524_v40 = vld [vmem:[#allocation1 + $0xbd] sm:$0x8]   ;;  %v1540_v44 = vsel %vm521_vm1, %v1538_v33, %v1536_v37  ;;  %v1708_v56 = vld [vmem:[%s2569_s0 + $0xf0] sm:$0x3]  ;;  %v560_v59 = vsel %vm525_vm2, %v558_v29, %v556_v41 }
  0xa3   :  { %v520_v28 = vld [vmem:[#allocation1 + $0x7e] sm:$0x4]   ;;  %1451 = vrot.lane.b32.xlu2 %v1450_v31, %s1857_s2  ;;  %v1546_v45 = vld [vmem:[#allocation1 + $0x44] sm:$0x10]   ;;  %v1544_v49 = vsel %vm525_vm2, %v1542_v38, %v1540_v44  ;;  %v1772_v58 = vld [vmem:[%s2569_s0 + $0x70] sm:$0x3] }
  0xa4   :  { %v516_v35 = vld [vmem:[#allocation1 + $0x3f] sm:$0x2]   ;;  %v1619_v36 = vld [vmem:[#allocation1 + $0x3d] sm:$0x10]   ;;  %v1550_v50 = vld [vmem:[#allocation1 + $0x143] sm:$0x20]   ;;  %v1548_v55 = vsel %vm529_vm3, %v1546_v45, %v1544_v49 }
  0xa5   :  { %v514_v39 = vld [vmem:[#allocation1] sm:$0x1]   ;;  %v1605_v42 = vld [vmem:[#allocation1 + $0x1] sm:$0x1]   ;;  %v1554_v51 = vld [vmem:[#allocation1 + $0x242] sm:$0x40]   ;;  %v1552_v62 = vsel %vm533_vm4, %v1550_v50, %v1548_v55  ;;  %v2505_v14 = vpop.permute.xlu1 %867  }
  0xa6   :  { %v518_v46 = vsel %vm517_vm0, %v516_v35, %v514_v39  ;;  %v562_v47 = vld [vmem:[#allocation1 + $0x2fc] sm:$0x10]   ;;  %v1609_v48 = vsel %vm517_vm0, %v1607_v21, %v1605_v42  ;;  %v1558_v52 = vld [vmem:[#allocation1 + $0x341] sm:$0x80]   ;;  %v1627_v61 = vld [vmem:[#allocation1 + $0x23b] sm:$0x40]   ;;  %v1556_v4 = vsel %vm537_vm5, %v1554_v51, %v1552_v62 }
  0xa7   :  { %v522_v53 = vsel %vm521_vm1, %v520_v28, %v518_v46  ;;  %v1613_v54 = vsel %vm521_vm1, %v1611_v22, %v1609_v48  ;;  %v1716_v57 = vld [vmem:[%s2569_s0 + $0xe0] sm:$0x3]  ;;  %35 = vst [vmem:[#allocation1 + $0x3c0] sm:$0x3] %v1708_v56  ;;  %v1560_v9 = vsel %vm541_vm6, %v1558_v52, %v1556_v4  ;;  %v564_v11 = vsel %vm529_vm3, %v562_v47, %v560_v59 }
  0xa8   :  { %v1617_v60 = vsel %vm525_vm2, %v1615_v30, %v1613_v54  ;;  %v1780_v63 = vld [vmem:[%s2569_s0 + $0x60] sm:$0x3]  ;;  %67 = vst [vmem:[#allocation1 + $0x380] sm:$0x3] %v1716_v57  ;;  %v526_v5 = vsel %vm525_vm2, %v524_v40, %v522_v53  ;;  %s1860_s0 = smov 8   ;;  %vm614_vm8 = vcmask 1048512  }
  0xa9   :  { %v1621_v0 = vsel %vm529_vm3, %v1619_v36, %v1617_v60  ;;  %v1631_v1 = vld [vmem:[#allocation1 + $0x33a] sm:$0x80]   ;;  %v528_v7 = vld [vmem:[#allocation1 + $0xfc] sm:$0x10]   ;;  %291 = vst [vmem:[#allocation1 + $0x1c0] sm:$0x3] %v1772_v58 }
  0xaa   :  { %v1625_v8 = vsel %vm533_vm4, %v1623_v43, %v1621_v0  ;;  %v566_v12 = vld [vmem:[#allocation1 + $0x33b] sm:$0x20]   ;;  %323 = vst [vmem:[#allocation1 + $0x180] sm:$0x3] %v1780_v63  ;;  %v530_v17 = vsel %vm529_vm3, %v528_v7, %v526_v5  ;;  %v1641_v23 = vld [vmem:[#allocation1 + $0x81] sm:$0x1]  }
  0xab   :  { %v1629_v13 = vsel %vm537_vm5, %v1627_v61, %v1625_v8  ;;  %1561 = vrot.lane.b32.xlu2 %v1560_v9, %s1859_s7  ;;  %v532_v18 = vld [vmem:[#allocation1 + $0x13b] sm:$0x20]   ;;  %v568_v19 = vsel %vm533_vm4, %v566_v12, %v564_v11  ;;  %v1647_v28 = vld [vmem:[#allocation1 + $0x27f] sm:$0x4]   ;;  %vm687_vm9 = vcmask 982912   ;;  %vm760_vm10 = vcmask 917312  }
  0xac   :  { %v1633_v15 = vsel %vm541_vm6, %v1631_v1, %v1629_v13  ;;  %v905_v16 = vpop.permute.xlu2 %904   ;;  %v534_v21 = vsel %vm533_vm4, %v532_v18, %v530_v17  ;;  %v1655_v36 = vld [vmem:[#allocation1 + $0xbd] sm:$0x10]   ;;  %vm833_vm11 = vcmask 851712   ;;  %vm906_vm12 = vcmask 786112  }
  0xad   :  { %1634 = vrot.lane.b32.xlu1 %v1633_v15, %s1860_s0  ;;  %v941_v33 = vpop.permute.xlu0 %940   ;;  %v1663_v42 = vld [vmem:[#allocation1 + $0x2bb] sm:$0x40]   ;;  %vm979_vm13 = vcmask 720512   ;;  %vm1052_vm14 = vcmask 654912   ;;  %vm1125_vm15 = vcmask 589312  }
  0xae   :  { %v574_v20 = vld [vmem:[#allocation1 + $0x3b9] sm:$0x80]   ;;  %v1667_v44 = vld [vmem:[#allocation1 + $0x3ba] sm:$0x80]  }
  0xaf   :  { %v570_v22 = vld [vmem:[#allocation1 + $0x37a] sm:$0x40]   ;;  %v1651_v31 = vld [vmem:[#allocation1 + $0x37e] sm:$0x8]  }
  0xb0   :  { %v540_v24 = vld [vmem:[#allocation1 + $0x1b9] sm:$0x80]   ;;  %v572_v25 = vsel %vm537_vm5, %v570_v22, %v568_v19  ;;  %v1659_v39 = vld [vmem:[#allocation1 + $0x1bc] sm:$0x20]  }
  0xb1   :  { %v576_v29 = vsel %vm541_vm6, %v574_v20, %v572_v25  ;;  %v1643_v30 = vld [vmem:[#allocation1 + $0x180] sm:$0x2]   ;;  %v536_v32 = vld [vmem:[#allocation1 + $0x17a] sm:$0x40]  }
  0xb2   :  { %v1645_v35 = vsel %vm517_vm0, %v1643_v30, %v1641_v23  ;;  %v538_v37 = vsel %vm537_vm5, %v536_v32, %v534_v21  ;;  %579 = vst.msk [vmem:[#allocation0 + $0x2] ss:$8 sm:$0xf] %vm543_vm7, %v576_v29   ;;  %vm1198_vm0 = vcmask 523712  }
  0xb3   :  { %v1649_v38 = vsel %vm521_vm1, %v1647_v28, %v1645_v35  ;;  %v542_v40 = vsel %vm541_vm6, %v540_v24, %v538_v37  ;;  %581 = vst.msk [vmem:[#allocation0 - $0x1d] ss:$8 sm:$0xf0] %vm543_vm7, %v576_v29   ;;  %vm1271_vm1 = vcmask 458112  }
  0xb4   :  { %v1653_v41 = vsel %vm525_vm2, %v1651_v31, %v1649_v38  ;;  %544 = vst.msk [vmem:[#allocation0] ss:$8 sm:$0xf] %vm543_vm7, %v542_v40   ;;  %vm1344_vm2 = vcmask 392512  }
  0xb5   :  { %v1657_v43 = vsel %vm529_vm3, %v1655_v36, %v1653_v41  ;;  %546 = vst.msk [vmem:[#allocation0 - $0x1f] ss:$8 sm:$0xf0] %vm543_vm7, %v542_v40   ;;  %vm1417_vm3 = vcmask 326912  }
  0xb6   :  { %v1661_v45 = vsel %vm533_vm4, %v1659_v39, %v1657_v43  ;;  %615 = vst.msk [vmem:[#allocation0] sm:$0xf] %vm614_vm8, %v2449_v2   ;;  %vm1490_vm4 = vcmask 261312  }
  0xb7   :  { %v1665_v46 = vsel %vm537_vm5, %v1663_v42, %v1661_v45  ;;  %617 = vst.msk [vmem:[#allocation0 + $0x4] sm:$0xf0] %vm614_vm8, %v2449_v2   ;;  %vm1563_vm5 = vcmask 195712  }
  0xb8   :  { %v1669_v47 = vsel %vm541_vm6, %v1667_v44, %v1665_v46  ;;  %688 = vst.msk [vmem:[#allocation0] sm:$0xf] %vm687_vm9, %v2455_v6   ;;  %vm1636_vm6 = vcmask 130112  }
  0xb9   :  { %v1014_v2 = vpop.permute.xlu2 %1013   ;;  %v978_v48 = vpop.permute.xlu1 %977   ;;  %1670 = vrot.lane.b32.xlu2 %v1669_v47, %s1860_s0  ;;  %690 = vst.msk [vmem:[#allocation0 + $0x4] sm:$0xf0] %vm687_vm9, %v2455_v6  }
  0xba   :  { %761 = vst.msk [vmem:[#allocation0] sm:$0xf] %vm760_vm10, %v2451_v3  }
  0xbb   :  { %763 = vst.msk [vmem:[#allocation0 + $0x4] sm:$0xf0] %vm760_vm10, %v2451_v3  }
  0xbc   :  { %652 = vst.msk [vmem:[#allocation0 + $0x10] sm:$0xf] %vm614_vm8, %v2464_v26  }
  0xbd   :  { %654 = vst.msk [vmem:[#allocation0 + $0x14] sm:$0xf0] %vm614_vm8, %v2464_v26  }
  0xbe   :  { %725 = vst.msk [vmem:[#allocation0 + $0x10] sm:$0xf] %vm687_vm9, %v2469_v34  }
  0xbf   :  { %727 = vst.msk [vmem:[#allocation0 + $0x14] sm:$0xf0] %vm687_vm9, %v2469_v34  }
  0xc0   :  { %798 = vst.msk [vmem:[#allocation0 + $0x10] sm:$0xf] %vm760_vm10, %v2466_v27  }
  0xc1   :  { %v1051_v3 = vpop.permute.xlu0 %1050   ;;  %800 = vst.msk [vmem:[#allocation0 + $0x14] sm:$0xf0] %vm760_vm10, %v2466_v27  }
  0xc2   :  { %834 = vst.msk [vmem:[#allocation0] sm:$0xf] %vm833_vm11, %v2501_v10  }
  0xc3   :  { %836 = vst.msk [vmem:[#allocation0 + $0x4] sm:$0xf0] %vm833_vm11, %v2501_v10  }
  0xc4   :  { %907 = vst.msk [vmem:[#allocation0] sm:$0xf] %vm906_vm12, %v905_v16  }
  0xc5   :  { %909 = vst.msk [vmem:[#allocation0 + $0x4] sm:$0xf0] %vm906_vm12, %v905_v16  }
  0xc6   :  { %871 = vst.msk [vmem:[#allocation0 + $0x10] sm:$0xf] %vm833_vm11, %v2505_v14  }
  0xc7   :  { %873 = vst.msk [vmem:[#allocation0 + $0x14] sm:$0xf0] %vm833_vm11, %v2505_v14  }
  0xc8   :  { %944 = vst.msk [vmem:[#allocation0 + $0x10] sm:$0xf] %vm906_vm12, %v941_v33  }
  0xc9   :  { %946 = vst.msk [vmem:[#allocation0 + $0x14] sm:$0xf0] %vm906_vm12, %v941_v33  }
  0xca   :  { %1017 = vst.msk [vmem:[#allocation0 + $0x10] sm:$0xf] %vm979_vm13, %v1014_v2  }
  0xcb   :  { %v1087_v6 = vpop.permute.xlu1 %1086   ;;  %v1160_v26 = vpop.permute.xlu0 %1159   ;;  %1019 = vst.msk [vmem:[#allocation0 + $0x14] sm:$0xf0] %vm979_vm13, %v1014_v2  }
  0xcc   :  { %980 = vst.msk [vmem:[#allocation0] sm:$0xf] %vm979_vm13, %v978_v48   ;;  %v1124_v27 = vpop.permute.xlu2 %1123  }
  0xcd   :  { %982 = vst.msk [vmem:[#allocation0 + $0x4] sm:$0xf0] %vm979_vm13, %v978_v48  }
  0xce   :  { %1053 = vst.msk [vmem:[#allocation0] sm:$0xf] %vm1052_vm14, %v1051_v3  }
  0xcf   :  { %1055 = vst.msk [vmem:[#allocation0 + $0x4] sm:$0xf0] %vm1052_vm14, %v1051_v3  }
  0xd0   :  { %1126 = vst.msk [vmem:[#allocation0] sm:$0xf] %vm1125_vm15, %v1124_v27  }
  0xd1   :  { %1128 = vst.msk [vmem:[#allocation0 + $0x4] sm:$0xf0] %vm1125_vm15, %v1124_v27  }
  0xd2   :  { %1090 = vst.msk [vmem:[#allocation0 + $0x10] sm:$0xf] %vm1052_vm14, %v1087_v6  }
  0xd3   :  { %1092 = vst.msk [vmem:[#allocation0 + $0x14] sm:$0xf0] %vm1052_vm14, %v1087_v6  }
  0xd4   :  { %1163 = vst.msk [vmem:[#allocation0 + $0x10] sm:$0xf] %vm1125_vm15, %v1160_v26  }
  0xd5   :  { %1165 = vst.msk [vmem:[#allocation0 + $0x14] sm:$0xf0] %vm1125_vm15, %v1160_v26  }
  0xda   :  { %v1197_v34 = vpop.permute.xlu1 %1196   ;;  %v1270_v49 = vpop.permute.xlu0 %1269  }
  0xdb   :  { %1199 = vst.msk [vmem:[#allocation0] sm:$0xf] %vm1198_vm0, %v1197_v34  }
  0xdc   :  { %1201 = vst.msk [vmem:[#allocation0 + $0x4] sm:$0xf0] %vm1198_vm0, %v1197_v34  }
  0xdd   :  { %1272 = vst.msk [vmem:[#allocation0] sm:$0xf] %vm1271_vm1, %v1270_v49  }
  0xde   :  { %1274 = vst.msk [vmem:[#allocation0 + $0x4] sm:$0xf0] %vm1271_vm1, %v1270_v49  }
  0xdf   :  { %v1233_v50 = vpop.permute.xlu2 %1232  }
  0xe0   :  { %1236 = vst.msk [vmem:[#allocation0 + $0x10] sm:$0xf] %vm1198_vm0, %v1233_v50  }
  0xe1   :  { %1238 = vst.msk [vmem:[#allocation0 + $0x14] sm:$0xf0] %vm1198_vm0, %v1233_v50  }
  0xe7   :  { %v1306_v51 = vpop.permute.xlu1 %1305  }
  0xe8   :  { %1309 = vst.msk [vmem:[#allocation0 + $0x10] sm:$0xf] %vm1271_vm1, %v1306_v51  }
  0xe9   :  { %1311 = vst.msk [vmem:[#allocation0 + $0x14] sm:$0xf0] %vm1271_vm1, %v1306_v51  }
  0xed   :  { %v1343_v52 = vpop.permute.xlu2 %1342  }
  0xee   :  { %1345 = vst.msk [vmem:[#allocation0] sm:$0xf] %vm1344_vm2, %v1343_v52  }
  0xef   :  { %1347 = vst.msk [vmem:[#allocation0 + $0x4] sm:$0xf0] %vm1344_vm2, %v1343_v52   ;;  %v1379_v53 = vpop.permute.xlu0 %1378  }
  0xf0   :  { %1382 = vst.msk [vmem:[#allocation0 + $0x10] sm:$0xf] %vm1344_vm2, %v1379_v53  }
  0xf1   :  { %1384 = vst.msk [vmem:[#allocation0 + $0x14] sm:$0xf0] %vm1344_vm2, %v1379_v53  }
  0xf9   :  { %v1416_v54 = vpop.permute.xlu1 %1415  }
  0xfa   :  { %1418 = vst.msk [vmem:[#allocation0] sm:$0xf] %vm1417_vm3, %v1416_v54  }
  0xfb   :  { %1420 = vst.msk [vmem:[#allocation0 + $0x4] sm:$0xf0] %vm1417_vm3, %v1416_v54  }
  0xfd   :  { %v1452_v55 = vpop.permute.xlu2 %1451  }
  0xfe   :  { %1455 = vst.msk [vmem:[#allocation0 + $0x10] sm:$0xf] %vm1417_vm3, %v1452_v55  }
  0xff   :  { %1457 = vst.msk [vmem:[#allocation0 + $0x14] sm:$0xf0] %vm1417_vm3, %v1452_v55  }
 0x101   :  { %v1489_v56 = vpop.permute.xlu0 %1488  }
 0x102   :  { %1491 = vst.msk [vmem:[#allocation0] sm:$0xf] %vm1490_vm4, %v1489_v56  }
 0x103   :  { %1493 = vst.msk [vmem:[#allocation0 + $0x4] sm:$0xf0] %vm1490_vm4, %v1489_v56  }
 0x105   :  { %v1562_v57 = vpop.permute.xlu2 %1561  }
 0x106   :  { %1564 = vst.msk [vmem:[#allocation0] sm:$0xf] %vm1563_vm5, %v1562_v57  }
 0x107   :  { %1566 = vst.msk [vmem:[#allocation0 + $0x4] sm:$0xf0] %vm1563_vm5, %v1562_v57  }
 0x10d   :  { %v1525_v58 = vpop.permute.xlu1 %1524   ;;  %v1598_v59 = vpop.permute.xlu0 %1597  }
 0x10e   :  { %1528 = vst.msk [vmem:[#allocation0 + $0x10] sm:$0xf] %vm1490_vm4, %v1525_v58  }
 0x10f   :  { %1530 = vst.msk [vmem:[#allocation0 + $0x14] sm:$0xf0] %vm1490_vm4, %v1525_v58  }
 0x110   :  { %1601 = vst.msk [vmem:[#allocation0 + $0x10] sm:$0xf] %vm1563_vm5, %v1598_v59  }
 0x111   :  { %1603 = vst.msk [vmem:[#allocation0 + $0x14] sm:$0xf0] %vm1563_vm5, %v1598_v59  }
 0x113   :  { %v1671_v60 = vpop.permute.xlu2 %1670  }
 0x114   :  { %1674 = vst.msk [vmem:[#allocation0 + $0x10] sm:$0xf] %vm1636_vm6, %v1671_v60  }
 0x115   :  { %1676 = vst.msk [vmem:[#allocation0 + $0x14] sm:$0xf0] %vm1636_vm6, %v1671_v60  }
 0x11b   :  { %v1690_v61 = vld [vmem:[#allocation0 + $0x10] sm:$0xf] }
 0x11c   :  { %1829 = vst [vmem:[%s2570_s1 + $0x8] sm:$0xf] %v1690_v61  ;;  %v1696_v62 = vld [vmem:[#allocation0 + $0x18] sm:$0xf] }
 0x11d   :  { %1830 = vst [vmem:[%s2570_s1 + $0xc] sm:$0xf] %v1696_v62 }
 0x11f   :  { %v1635_v63 = vpop.permute.xlu1 %1634  }
 0x120   :  { %1637 = vst.msk [vmem:[#allocation0] sm:$0xf] %vm1636_vm6, %v1635_v63  }
 0x121   :  { %1639 = vst.msk [vmem:[#allocation0 + $0x4] sm:$0xf0] %vm1636_vm6, %v1635_v63  }
 0x127   :  { %v1679_v0 = vld [vmem:[#allocation0] sm:$0xf] }
 0x128   :  { %1682 = vst [vmem:[%s2570_s1] sm:$0xf] %v1679_v0  ;;  %v1684_v1 = vld [vmem:[#allocation0 + $0x8] sm:$0xf] }
 0x129   :  { %1828 = vst [vmem:[%s2570_s1 + $0x4] sm:$0xf] %v1684_v1 }

// kernel: ffc_forward.7
= control target key start
LH: loop header
LB: loop body
LE: loop exit
PB: predicated region body
PF: predicated region fallthrough
CT: control target
= control target key end

     0   :  { %v140_v0 = vmov 0   ;;  %v141_v2 = vmov 2   ;;  %v142_v3 = vmov 1   ;;  %v143_v4 = vmov 3   ;;  %s202_s3 = inlined_call_operand.vmem [shape: f32[8,4], index: 3, kind: input, shape index: {}]   ;;  %s203_s0 = inlined_call_operand.vmem [shape: f32[4,512], index: 0, kind: input, shape index: {}]   ;;  %s204_s1 = inlined_call_operand.vmem [shape: f32[4,512], index: 1, kind: input, shape index: {}]   ;;  %s205_s2 = inlined_call_operand.vmem [shape: f32[4,512], index: 2, kind: input, shape index: {}]   ;;  %s206_s4 = inlined_call_operand.vmem [shape: f32[8,512], index: 4, kind: output, shape index: {}]  }
   0x1   :  { %135 = vset.pattern.permute.xlu0 %v140_v0  ;;  %v17_v1 = vld [vmem:[%s202_s3] sm:$0xff]  ;;  %137 = vset.pattern.permute.xlu1 %v141_v2  ;;  %v19_v6 = vld [vmem:[%s203_s0 + $0x8] sm:$0xff] }
   0x2   :  { %30 = vperm.xlu0 %135, %v17_v1   ;;  %76 = vperm.xlu1 %137, %v17_v1   ;;  %v18_v5 = vld [vmem:[%s203_s0] sm:$0xff]  ;;  %v21_v8 = vld [vmem:[%s204_s1 + $0x8] sm:$0xff] }
   0x3   :  { %v20_v7 = vld [vmem:[%s204_s1] sm:$0xff]  ;;  %v23_v10 = vadd.f32 %v21_v8, %v19_v6  ;;  %v25_v12 = vld [vmem:[%s205_s2 + $0x8] sm:$0xff] }
   0x4   :  { %v22_v9 = vadd.f32 %v20_v7, %v18_v5  ;;  %v24_v11 = vld [vmem:[%s205_s2] sm:$0xff] }
   0x5   :  { %v27_v14 = vadd.f32 %v25_v12, %v23_v10 }
   0x6   :  { %v26_v13 = vadd.f32 %v24_v11, %v22_v9 }
   0x7   :  { %v37_v18 = vperm.slane %v27_v14, 0  ;;  %v38_v20 = vperm.slane %v27_v14, 4  ;;  %v81_v23 = vperm.slane %v27_v14, 2  ;;  %v57_v26 = vperm.slane %v27_v14, 1 }
   0x8   :  { %v35_v16 = vperm.slane %v26_v13, 0  ;;  %v36_v17 = vperm.slane %v26_v13, 4  ;;  %v79_v21 = vperm.slane %v26_v13, 2  ;;  %v80_v22 = vperm.slane %v26_v13, 6 }
   0x9   :  { %v55_v24 = vperm.slane %v26_v13, 1  ;;  %v56_v25 = vperm.slane %v26_v13, 5  ;;  %v58_v27 = vperm.slane %v27_v14, 5  ;;  %v82_v28 = vperm.slane %v27_v14, 6 }
   0xa   :  { %136 = vset.pattern.permute.xlu0 %v142_v3  ;;  %138 = vset.pattern.permute.xlu1 %v143_v4  ;;  %v103_v29 = vperm.slane %v26_v13, 3  ;;  %v104_v30 = vperm.slane %v26_v13, 7  ;;  %v105_v31 = vperm.slane %v27_v14, 3  ;;  %v43_v32 = vperm.slane %v35_v16, 0 }
   0xb   :  { %52 = vperm.xlu0 %136, %v17_v1   ;;  %100 = vperm.xlu1 %138, %v17_v1   ;;  %v44_v33 = vperm.slane %v36_v17, 0  ;;  %v45_v34 = vperm.slane %v37_v18, 0  ;;  %v106_v35 = vperm.slane %v27_v14, 7  ;;  %v46_v36 = vperm.slane %v38_v20, 0 }
   0xc   :  { %v87_v37 = vperm.slane %v79_v21, 2  ;;  %v88_v38 = vperm.slane %v80_v22, 2  ;;  %v89_v39 = vperm.slane %v81_v23, 2  ;;  %v63_v40 = vperm.slane %v55_v24, 1 }
   0xd   :  { %v64_v41 = vperm.slane %v56_v25, 1  ;;  %v65_v42 = vperm.slane %v57_v26, 1  ;;  %v66_v43 = vperm.slane %v58_v27, 1  ;;  %v90_v44 = vperm.slane %v82_v28, 2 }
   0xe   :  { %v111_v45 = vperm.slane %v103_v29, 3  ;;  %v112_v46 = vperm.slane %v104_v30, 3  ;;  %v113_v47 = vperm.slane %v105_v31, 3  ;;  %v114_v51 = vperm.slane %v106_v35, 3 }
  0x13   :  { %139 = vset.pattern.permute.xlu0 %v143_v4 }
  0x74   :  { %v31_v15 = vpop.permute.xlu0 %30  ;;  %v77_v19 = vpop.permute.xlu1 %76 }
  0x75   :  { %v47_v48 = vmul.f32 %v43_v32, %v31_v15  ;;  %v48_v49 = vmul.f32 %v44_v33, %v31_v15  ;;  %v49_v50 = vmul.f32 %v45_v34, %v31_v15  ;;  %v50_v52 = vmul.f32 %v46_v36, %v31_v15 }
  0x76   :  { %v91_v53 = vmul.f32 %v87_v37, %v77_v19  ;;  %v92_v54 = vmul.f32 %v88_v38, %v77_v19  ;;  %v93_v55 = vmul.f32 %v89_v39, %v77_v19  ;;  %v94_v62 = vmul.f32 %v90_v44, %v77_v19 }
  0x7d   :  { %v53_v56 = vpop.permute.xlu0 %52  ;;  %v101_v57 = vpop.permute.xlu1 %100 }
  0x7e   :  { %v67_v58 = vmul.f32 %v63_v40, %v53_v56  ;;  %v68_v59 = vmul.f32 %v64_v41, %v53_v56  ;;  %v69_v60 = vmul.f32 %v65_v42, %v53_v56  ;;  %v70_v61 = vmul.f32 %v66_v43, %v53_v56 }
  0x7f   :  { %v115_v63 = vmul.f32 %v111_v45, %v101_v57  ;;  %v116_v0 = vmul.f32 %v112_v46, %v101_v57  ;;  %v117_v1 = vmul.f32 %v113_v47, %v101_v57  ;;  %v118_v6 = vmul.f32 %v114_v51, %v101_v57 }
  0x80   :  { %v71_v2 = vadd.f32 %v67_v58, %v47_v48  ;;  %v72_v3 = vadd.f32 %v68_v59, %v48_v49  ;;  %v73_v4 = vadd.f32 %v69_v60, %v49_v50  ;;  %v74_v5 = vadd.f32 %v70_v61, %v50_v52 }
  0x82   :  { %v95_v7 = vadd.f32 %v91_v53, %v71_v2  ;;  %v96_v8 = vadd.f32 %v92_v54, %v72_v3  ;;  %v97_v9 = vadd.f32 %v93_v55, %v73_v4  ;;  %v98_v10 = vadd.f32 %v94_v62, %v74_v5 }
  0x84   :  { %v119_v11 = vadd.f32 %v115_v63, %v95_v7  ;;  %v120_v12 = vadd.f32 %v116_v0, %v96_v8  ;;  %v121_v13 = vadd.f32 %v117_v1, %v97_v9  ;;  %v122_v14 = vadd.f32 %v118_v6, %v98_v10 }
  0x86   :  { %123 = vst [vmem:[%s206_s4] sm:$0xff] %v119_v11 }
  0x87   :  { %124 = vst [vmem:[%s206_s4 + $0x8] sm:$0xff] %v120_v12 }
  0x88   :  { %125 = vst [vmem:[%s206_s4 + $0x10] sm:$0xff] %v121_v13 }
  0x89   :  { %126 = vst [vmem:[%s206_s4 + $0x18] sm:$0xff] %v122_v14 }

</bundles_post_ra>
